<compile_context>
chip_gen: v7x
topology: tpu7x:2x2x1
jax: 0.10.0
libtpu: 0.0.40
codegen_flags: <defaults>
</compile_context>

<pallas_src>
import functools
import math

import jax
import jax.numpy as jnp
from jax.experimental import pallas as pl
from jax.experimental.pallas import tpu as pltpu


# ----------------------------- small helpers --------------------------------

@functools.lru_cache(maxsize=None)
def _vmem_cap_bytes():
    try:
        return int(getattr(pltpu.get_tpu_info(), "vmem_capacity_bytes", 64 << 20))
    except Exception:  # interpret mode / older jax: fall back to v7x physical.
        return 64 << 20


def _vmem_limit(block_bytes):
    # Explicit scoped-VMEM budget derived from the block sizes (+ slack),
    # clamped so a tile sized for v6e can never request more than v7x can give.
    want = block_bytes + (4 << 20)
    return int(min(max(want, 8 << 20), _vmem_cap_bytes() * 3 // 4))


def _pick_m_tile(m):
    """m is a multiple of 8. Largest multiple of 8 dividing m, <= 256, leaving
    >= 2 grid steps (pipelining + v7x second TensorCore); falls back to m."""
    best = m
    for t in range(8, min(256, m // 2) + 1, 8):
        if m % t == 0:
            best = t
    return best


# ------------------------------ Pallas kernels -------------------------------

def _conv_kernel(a_ref, w_ref, b_ref, o_ref, *, nq):
    """Fused 3x3 conv (+bias +ReLU) and, when nq == 4, the following 2x2 maxpool.

    a_ref: (nq, tm, K) bf16  im2col rows, all 9 taps folded into K = 9*Cin;
                             for nq == 4 the leading axis holds the four 2x2
                             pool-window positions of each pooled output pixel.
    w_ref: (K, tn)      bf16
    b_ref: (1, tn)      f32
    o_ref: (tm, tn)     bf16

    relu(max_q(x_q) + b) == maxpool(relu(x_q + b)) (max/bias/ReLU commute), so
    pooling is a running elementwise max over the nq MXU results; only the
    pooled tile ever reaches HBM. Blocks are capped at 256x128, so the f32
    accumulator is <= 128 KB and plain value semantics does not spill vregs.
    """
    w = w_ref[...]
    acc = jnp.dot(a_ref[0], w, preferred_element_type=jnp.float32)
    for q in range(1, nq):
        acc = jnp.maximum(acc, jnp.dot(a_ref[q], w,
                                       preferred_element_type=jnp.float32))
    o_ref[...] = jnp.maximum(acc + b_ref[...], 0.0).astype(o_ref.dtype)


def _mean_kernel(x_ref, o_ref):
    # (N, HW, C) -> mean over spatial axis, f32 accumulation.
    o_ref[...] = jnp.mean(x_ref[...].astype(jnp.float32), axis=1).astype(o_ref.dtype)


def _avgpool_fc_kernel(x_ref, w_ref, b_ref, o_ref):
    # Fused AdaptiveAvgPool2d((1,1)) + flatten + Linear (lane-padded classes).
    xm = jnp.mean(x_ref[...].astype(jnp.float32), axis=1)          # (N, C) f32
    acc = jnp.dot(xm.astype(jnp.bfloat16), w_ref[...],
                  preferred_element_type=jnp.float32)               # (N, lanes)
    o_ref[...] = acc + b_ref[...]


# ------------------------------ layer wrappers -------------------------------

def conv3x3_relu(x, w, b, fuse_pool=False):
    """3x3 conv (pad=1, stride=1) + bias + ReLU, optionally fused 2x2 maxpool.

    x: (N, H, W, Cin) bf16 NHWC; w: (3, 3, Cin, Cout) f32; b: (Cout,) f32.
    Returns (N, H, W, Cout) bf16, or (N, H//2, W//2, Cout) bf16 if fuse_pool.
    """
    N, H, W, C = x.shape
    Cout = w.shape[-1]
    K = 9 * C

    # im2col in XLA glue: all 9 taps folded into the lane (K) dim so the kernel
    # is a single MXU matmul per slab. Tap order (dh, dw, cin) matches
    # w.reshape(9*Cin, Cout).
    # TODO(synk): at large spatial resolutions (activation bytes >> weight
    # bytes) this 9x im2col copy should be replaced by an H-row-tiled kernel
    # doing the taps in-VMEM; irrelevant at the <=16x16 shapes exercised here.
    xp = jnp.pad(x, ((0, 0), (1, 1), (1, 1), (0, 0)))
    cols = jnp.concatenate(
        [xp[:, dh:dh + H, dw:dw + W, :] for dh in range(3) for dw in range(3)],
        axis=-1)                                             # (N, H, W, 9C) bf16

    if fuse_pool:
        # Quadrant-major rows: slab q = (di, dj) holds conv-output pixel
        # (2*ho + di, 2*wo + dj) for every pooled pixel (n, ho, wo); pooled rows
        # come out in (n, ho, wo) order = NHWC for the next layer.
        Ho, Wo = H // 2, W // 2
        a = jnp.stack(
            [cols[:, di:2 * Ho:2, dj:2 * Wo:2, :].reshape(N * Ho * Wo, K)
             for di in (0, 1) for dj in (0, 1)], axis=0)     # (4, Mq, K)
        nq, Mq, out_h, out_w = 4, N * Ho * Wo, Ho, Wo
    else:
        a = cols.reshape(1, N * H * W, K)
        nq, Mq, out_h, out_w = 1, N * H * W, H, W

    Kp = -(-K // 8) * 8
    Mp = -(-Mq // 8) * 8
    if Kp != K or Mp != Mq:
        a = jnp.pad(a, ((0, 0), (0, Mp - Mq), (0, Kp - K)))
    a = a.astype(jnp.bfloat16)

    wm = w.reshape(K, Cout)
    if Kp != K:
        wm = jnp.pad(wm, ((0, Kp - K), (0, 0)))
    wm = wm.astype(jnp.bfloat16)
    bb = b.reshape(1, Cout).astype(jnp.float32)

    # Cout tile: 128 matches the MXU/lane width on every generation and gives
    # >= 2 Cout tiles for the 256/512-channel layers.
    tn = Cout if (Cout <= 128 or Cout % 128 != 0) else 128
    tm = _pick_m_tile(Mp)
    # Cout tiles OUTER, M tiles INNER: weight block index constant across
    # consecutive steps -> each weight tile DMA'd once, batched M blocks stream.
    grid = (Cout // tn, Mp // tm)

    vmem = _vmem_limit(2 * (nq * tm * Kp * 2 + Kp * tn * 2 + tn * 4
                            + tm * tn * 2) + tm * tn * 4)

    out = pl.pallas_call(
        functools.partial(_conv_kernel, nq=nq),
        out_shape=jax.ShapeDtypeStruct((Mp, Cout), jnp.bfloat16),
        grid=grid,
        in_specs=[
            pl.BlockSpec((nq, tm, Kp), lambda j, i: (0, i, 0)),
            pl.BlockSpec((Kp, tn), lambda j, i: (0, j)),
            pl.BlockSpec((1, tn), lambda j, i: (0, j)),
        ],
        out_specs=pl.BlockSpec((tm, tn), lambda j, i: (i, j)),
        compiler_params=pltpu.CompilerParams(
            dimension_semantics=("parallel", "parallel"),
            vmem_limit_bytes=vmem),
    )(a, wm, bb)

    if Mp != Mq:
        out = out[:Mq]
    return out.reshape(N, out_h, out_w, Cout)


def global_avgpool(x):
    """AdaptiveAvgPool2d((1,1)) + flatten.  (N,H,W,C) -> (N,C) f32."""
    N, H, W, C = x.shape
    xr = x.reshape(N, H * W, C)
    vmem = _vmem_limit(2 * (N * H * W * C * 2 + N * C * 4))
    return pl.pallas_call(
        _mean_kernel,
        out_shape=jax.ShapeDtypeStruct((N, C), jnp.float32),
        compiler_params=pltpu.CompilerParams(vmem_limit_bytes=vmem),
    )(xr)


def avgpool_fc(x, w, b):
    """Fused avgpool(1,1) + flatten + Linear.  (N,H,W,C) -> (N, classes) f32."""
    N, H, W, C = x.shape
    nc = w.shape[-1]
    ncp = -(-nc // 128) * 128          # lane-dense output, no masked vst.msk
    wp = jnp.pad(w, ((0, 0), (0, ncp - nc))).astype(jnp.bfloat16)
    bp = jnp.pad(b, (0, ncp - nc)).reshape(1, ncp).astype(jnp.float32)
    xr = x.reshape(N, H * W, C)
    vmem = _vmem_limit(2 * (N * H * W * C * 2 + C * ncp * 2 + N * ncp * 4))
    out = pl.pallas_call(
        _avgpool_fc_kernel,
        out_shape=jax.ShapeDtypeStruct((N, ncp), jnp.float32),
        compiler_params=pltpu.CompilerParams(vmem_limit_bytes=vmem),
    )(xr, wp, bp)
    return out[:, :nc]


# ------------------------------ model definition -----------------------------

CFG = [64, "M", 128, "M", 256, "M", 512]   # small VGG-style features (no BN)


def init_params(key, cfg=CFG, in_channels=3, num_classes=10):
    params = {"convs": []}
    c = in_channels
    for v in cfg:
        if v == "M":
            continue
        key, kw = jax.random.split(key)
        std = math.sqrt(2.0 / (3 * 3 * v))        # torch: normal_(0, sqrt(2/n))
        w = std * jax.random.normal(kw, (3, 3, c, v), dtype=jnp.float32)
        params["convs"].append((w, jnp.zeros((v,), jnp.float32)))
        c = v
    key, kw = jax.random.split(key)
    fc_w = 0.01 * jax.random.normal(kw, (c, num_classes), dtype=jnp.float32)
    params["fc"] = (fc_w, jnp.zeros((num_classes,), jnp.float32))
    return params


def _maxpool2x2_xla(x):
    # TODO(synk): a standalone 'M' (not preceded by a conv) falls back to XLA;
    # never hit with the default cfg, where every pool is fused into the conv.
    N, H, W, C = x.shape
    Ho, Wo = H // 2, W // 2
    return x[:, :2 * Ho, :2 * Wo, :].reshape(N, Ho, 2, Wo, 2, C).max(axis=(2, 4))


def vgg_forward(params, x_nchw, cfg=CFG, full_model=True):
    # NCHW f32 (torch layout) -> NHWC bf16 activations; f32 accumulation in-kernel.
    x = jnp.transpose(x_nchw, (0, 2, 3, 1)).astype(jnp.bfloat16)
    ci, i = 0, 0
    while i < len(cfg):
        if cfg[i] == "M":
            x = _maxpool2x2_xla(x)
            i += 1
        else:
            w, b = params["convs"][ci]
            ci += 1
            fuse = i + 1 < len(cfg) and cfg[i + 1] == "M"
            x = conv3x3_relu(x, w, b, fuse_pool=fuse)   # pool fused in epilogue
            i += 2 if fuse else 1
    # TODO(synk): mocov3 MLP-head variant (Linear+ReLU+Linear) not instantiated.
    if full_model:
        fw, fb = params["fc"]
        return avgpool_fc(x, fw, fb)                    # avgpool + flatten + fc
    return global_avgpool(x)                            # == flatten(avgpool(x), 1)


def _reference_forward(params, x_nchw, cfg=CFG, full_model=True):
    # Pure-XLA f32 reference of the torch forward (for a tolerance check).
    x = jnp.transpose(x_nchw, (0, 2, 3, 1))
    ci = 0
    for v in cfg:
        if v == "M":
            N, H, W, C = x.shape
            x = x[:, :H // 2 * 2, :W // 2 * 2, :].reshape(
                N, H // 2, 2, W // 2, 2, C).max(axis=(2, 4))
        else:
            w, b = params["convs"][ci]
            ci += 1
            x = jax.lax.conv_general_dilated(
                x, w, window_strides=(1, 1), padding="SAME",
                dimension_numbers=("NHWC", "HWIO", "NHWC"))
            x = jnp.maximum(x + b, 0.0)
    pooled = jnp.mean(x, axis=(1, 2))
    if full_model:
        fw, fb = params["fc"]
        return pooled @ fw + fb
    return pooled


# ----------------------------------- main ------------------------------------

if __name__ == "__main__":
    key = jax.random.PRNGKey(0)
    key, kx = jax.random.split(key)
    x = jax.random.normal(kx, (2, 3, 16, 16), dtype=jnp.float32)  # NCHW like torch

    params = init_params(key, CFG, in_channels=3, num_classes=10)

    fwd = jax.jit(functools.partial(vgg_forward, cfg=tuple(CFG), full_model=True))
    out = fwd(params, x)
    jax.block_until_ready(out)

    assert out.shape == (2, 10), out.shape
    assert out.dtype == jnp.float32

    # Tolerance check vs a pure-XLA f32 reference (kernels use bf16 operands
    # with f32 accumulation, so exact match is not expected).
    ref = _reference_forward(params, x, cfg=tuple(CFG), full_model=True)
    err = float(jnp.max(jnp.abs(out - ref)))
    scale = float(jnp.max(jnp.abs(ref)))
    assert err <= 0.1 * scale + 0.05, (err, scale)

    print("KERNEL_OK")
</pallas_src>

<mosaic_0001>
module attributes {stable_mosaic.version = 11 : i64} {
  func.func @_conv_kernel(%arg0: i32, %arg1: i32, %arg2: memref<4x64x32xbf16, #tpu.memory_space<vmem>>, %arg3: memref<32x64xbf16, #tpu.memory_space<vmem>>, %arg4: memref<1x64xf32, #tpu.memory_space<vmem>>, %arg5: memref<64x64xbf16, #tpu.memory_space<vmem>>) attributes {dimension_semantics = [#tpu.dimension_semantics<parallel>, #tpu.dimension_semantics<parallel>], iteration_bounds = array<i64: 1, 2>, scalar_prefetch = 0 : i64, scratch_operands = 0 : i64, tpu.core_type = #tpu.core_type<tc>, window_params = [{transform_indices = @transform_0, window_bounds = array<i64: 4, 64, 32>}, {transform_indices = @transform_1, window_bounds = array<i64: 32, 64>}, {transform_indices = @transform_2, window_bounds = array<i64: 1, 64>}, {transform_indices = @transform_3, window_bounds = array<i64: 64, 64>}]} {
    %c0 = arith.constant 0 : index
    %c0_0 = arith.constant 0 : index
    %0 = vector.load %arg3[%c0, %c0_0] : memref<32x64xbf16, #tpu.memory_space<vmem>>, vector<32x64xbf16>
    %c0_1 = arith.constant 0 : index
    %c0_2 = arith.constant 0 : index
    %c0_3 = arith.constant 0 : index
    %1 = vector.load %arg2[%c0_1, %c0_2, %c0_3] : memref<4x64x32xbf16, #tpu.memory_space<vmem>>, vector<1x64x32xbf16>
    %2 = vector.shape_cast %1 : vector<1x64x32xbf16> to vector<64x32xbf16>
    %cst = arith.constant dense<0.000000e+00> : vector<64x64xf32>
    %3 = tpu.matmul %2, %0, %cst {dimension_numbers = #tpu.dot_dimension_numbers<[1], [0], [0], [1], [0, 0, 1, 1], [], []>} : vector<64x32xbf16>, vector<32x64xbf16>, vector<64x64xf32> -> vector<64x64xf32>
    %c1 = arith.constant 1 : index
    %c0_4 = arith.constant 0 : index
    %c0_5 = arith.constant 0 : index
    %4 = vector.load %arg2[%c1, %c0_4, %c0_5] : memref<4x64x32xbf16, #tpu.memory_space<vmem>>, vector<1x64x32xbf16>
    %5 = vector.shape_cast %4 : vector<1x64x32xbf16> to vector<64x32xbf16>
    %cst_6 = arith.constant dense<0.000000e+00> : vector<64x64xf32>
    %6 = tpu.matmul %5, %0, %cst_6 {dimension_numbers = #tpu.dot_dimension_numbers<[1], [0], [0], [1], [0, 0, 1, 1], [], []>} : vector<64x32xbf16>, vector<32x64xbf16>, vector<64x64xf32> -> vector<64x64xf32>
    %7 = arith.maximumf %3, %6 : vector<64x64xf32>
    %c2 = arith.constant 2 : index
    %c0_7 = arith.constant 0 : index
    %c0_8 = arith.constant 0 : index
    %8 = vector.load %arg2[%c2, %c0_7, %c0_8] : memref<4x64x32xbf16, #tpu.memory_space<vmem>>, vector<1x64x32xbf16>
    %9 = vector.shape_cast %8 : vector<1x64x32xbf16> to vector<64x32xbf16>
    %cst_9 = arith.constant dense<0.000000e+00> : vector<64x64xf32>
    %10 = tpu.matmul %9, %0, %cst_9 {dimension_numbers = #tpu.dot_dimension_numbers<[1], [0], [0], [1], [0, 0, 1, 1], [], []>} : vector<64x32xbf16>, vector<32x64xbf16>, vector<64x64xf32> -> vector<64x64xf32>
    %11 = arith.maximumf %7, %10 : vector<64x64xf32>
    %c3 = arith.constant 3 : index
    %c0_10 = arith.constant 0 : index
    %c0_11 = arith.constant 0 : index
    %12 = vector.load %arg2[%c3, %c0_10, %c0_11] : memref<4x64x32xbf16, #tpu.memory_space<vmem>>, vector<1x64x32xbf16>
    %13 = vector.shape_cast %12 : vector<1x64x32xbf16> to vector<64x32xbf16>
    %cst_12 = arith.constant dense<0.000000e+00> : vector<64x64xf32>
    %14 = tpu.matmul %13, %0, %cst_12 {dimension_numbers = #tpu.dot_dimension_numbers<[1], [0], [0], [1], [0, 0, 1, 1], [], []>} : vector<64x32xbf16>, vector<32x64xbf16>, vector<64x64xf32> -> vector<64x64xf32>
    %15 = arith.maximumf %11, %14 : vector<64x64xf32>
    %c0_13 = arith.constant 0 : index
    %c0_14 = arith.constant 0 : index
    %16 = vector.load %arg4[%c0_13, %c0_14] : memref<1x64xf32, #tpu.memory_space<vmem>>, vector<1x64xf32>
    %17 = vector.broadcast %16 : vector<1x64xf32> to vector<64x64xf32>
    %18 = arith.addf %15, %17 : vector<64x64xf32>
    %cst_15 = arith.constant 0.000000e+00 : f32
    %19 = vector.broadcast %cst_15 : f32 to vector<64x64xf32>
    %20 = arith.maximumf %18, %19 : vector<64x64xf32>
    %21 = arith.truncf %20 : vector<64x64xf32> to vector<64x64xbf16>
    %c0_16 = arith.constant 0 : index
    %c0_17 = arith.constant 0 : index
    %22 = vector.load %arg5[%c0_16, %c0_17] : memref<64x64xbf16, #tpu.memory_space<vmem>>, vector<64x64xbf16>
    tpu.vector_store %arg5[%c0_16, %c0_17], %21 {strides = array<i32>} : memref<64x64xbf16, #tpu.memory_space<vmem>>, vector<64x64xbf16>,
    return
  }
  func.func @transform_0(%arg0: i32, %arg1: i32) -> (i32, i32, i32) {
    %c0_i32 = arith.constant 0 : i32
    %c0_i32_0 = arith.constant 0 : i32
    %c0_i32_1 = arith.constant 0 : i32
    return %c0_i32, %arg1, %c0_i32_0 : i32, i32, i32
  }
  func.func @transform_1(%arg0: i32, %arg1: i32) -> (i32, i32) {
    %c0_i32 = arith.constant 0 : i32
    %c0_i32_0 = arith.constant 0 : i32
    return %c0_i32, %arg0 : i32, i32
  }
  func.func @transform_2(%arg0: i32, %arg1: i32) -> (i32, i32) {
    %c0_i32 = arith.constant 0 : i32
    %c0_i32_0 = arith.constant 0 : i32
    return %c0_i32, %arg0 : i32, i32
  }
  func.func @transform_3(%arg0: i32, %arg1: i32) -> (i32, i32) {
    %c0_i32 = arith.constant 0 : i32
    return %arg1, %arg0 : i32, i32
  }
}

module attributes {stable_mosaic.version = 11 : i64} {
  func.func @_conv_kernel(%arg0: i32, %arg1: i32, %arg2: memref<4x16x576xbf16, #tpu.memory_space<vmem>>, %arg3: memref<576x128xbf16, #tpu.memory_space<vmem>>, %arg4: memref<1x128xf32, #tpu.memory_space<vmem>>, %arg5: memref<16x128xbf16, #tpu.memory_space<vmem>>) attributes {dimension_semantics = [#tpu.dimension_semantics<parallel>, #tpu.dimension_semantics<parallel>], iteration_bounds = array<i64: 1, 2>, scalar_prefetch = 0 : i64, scratch_operands = 0 : i64, tpu.core_type = #tpu.core_type<tc>, window_params = [{transform_indices = @transform_0, window_bounds = array<i64: 4, 16, 576>}, {transform_indices = @transform_1, window_bounds = array<i64: 576, 128>}, {transform_indices = @transform_2, window_bounds = array<i64: 1, 128>}, {transform_indices = @transform_3, window_bounds = array<i64: 16, 128>}]} {
    %c0 = arith.constant 0 : index
    %c0_0 = arith.constant 0 : index
    %0 = vector.load %arg3[%c0, %c0_0] : memref<576x128xbf16, #tpu.memory_space<vmem>>, vector<576x128xbf16>
    %c0_1 = arith.constant 0 : index
    %c0_2 = arith.constant 0 : index
    %c0_3 = arith.constant 0 : index
    %1 = vector.load %arg2[%c0_1, %c0_2, %c0_3] : memref<4x16x576xbf16, #tpu.memory_space<vmem>>, vector<1x16x576xbf16>
    %2 = vector.shape_cast %1 : vector<1x16x576xbf16> to vector<16x576xbf16>
    %cst = arith.constant dense<0.000000e+00> : vector<16x128xf32>
    %3 = tpu.matmul %2, %0, %cst {dimension_numbers = #tpu.dot_dimension_numbers<[1], [0], [0], [1], [0, 0, 1, 1], [], []>} : vector<16x576xbf16>, vector<576x128xbf16>, vector<16x128xf32> -> vector<16x128xf32>
    %c1 = arith.constant 1 : index
    %c0_4 = arith.constant 0 : index
    %c0_5 = arith.constant 0 : index
    %4 = vector.load %arg2[%c1, %c0_4, %c0_5] : memref<4x16x576xbf16, #tpu.memory_space<vmem>>, vector<1x16x576xbf16>
    %5 = vector.shape_cast %4 : vector<1x16x576xbf16> to vector<16x576xbf16>
    %cst_6 = arith.constant dense<0.000000e+00> : vector<16x128xf32>
    %6 = tpu.matmul %5, %0, %cst_6 {dimension_numbers = #tpu.dot_dimension_numbers<[1], [0], [0], [1], [0, 0, 1, 1], [], []>} : vector<16x576xbf16>, vector<576x128xbf16>, vector<16x128xf32> -> vector<16x128xf32>
    %7 = arith.maximumf %3, %6 : vector<16x128xf32>
    %c2 = arith.constant 2 : index
    %c0_7 = arith.constant 0 : index
    %c0_8 = arith.constant 0 : index
    %8 = vector.load %arg2[%c2, %c0_7, %c0_8] : memref<4x16x576xbf16, #tpu.memory_space<vmem>>, vector<1x16x576xbf16>
    %9 = vector.shape_cast %8 : vector<1x16x576xbf16> to vector<16x576xbf16>
    %cst_9 = arith.constant dense<0.000000e+00> : vector<16x128xf32>
    %10 = tpu.matmul %9, %0, %cst_9 {dimension_numbers = #tpu.dot_dimension_numbers<[1], [0], [0], [1], [0, 0, 1, 1], [], []>} : vector<16x576xbf16>, vector<576x128xbf16>, vector<16x128xf32> -> vector<16x128xf32>
    %11 = arith.maximumf %7, %10 : vector<16x128xf32>
    %c3 = arith.constant 3 : index
    %c0_10 = arith.constant 0 : index
    %c0_11 = arith.constant 0 : index
    %12 = vector.load %arg2[%c3, %c0_10, %c0_11] : memref<4x16x576xbf16, #tpu.memory_space<vmem>>, vector<1x16x576xbf16>
    %13 = vector.shape_cast %12 : vector<1x16x576xbf16> to vector<16x576xbf16>
    %cst_12 = arith.constant dense<0.000000e+00> : vector<16x128xf32>
    %14 = tpu.matmul %13, %0, %cst_12 {dimension_numbers = #tpu.dot_dimension_numbers<[1], [0], [0], [1], [0, 0, 1, 1], [], []>} : vector<16x576xbf16>, vector<576x128xbf16>, vector<16x128xf32> -> vector<16x128xf32>
    %15 = arith.maximumf %11, %14 : vector<16x128xf32>
    %c0_13 = arith.constant 0 : index
    %c0_14 = arith.constant 0 : index
    %16 = vector.load %arg4[%c0_13, %c0_14] : memref<1x128xf32, #tpu.memory_space<vmem>>, vector<1x128xf32>
    %17 = vector.broadcast %16 : vector<1x128xf32> to vector<16x128xf32>
    %18 = arith.addf %15, %17 : vector<16x128xf32>
    %cst_15 = arith.constant 0.000000e+00 : f32
    %19 = vector.broadcast %cst_15 : f32 to vector<16x128xf32>
    %20 = arith.maximumf %18, %19 : vector<16x128xf32>
    %21 = arith.truncf %20 : vector<16x128xf32> to vector<16x128xbf16>
    %c0_16 = arith.constant 0 : index
    %c0_17 = arith.constant 0 : index
    %22 = vector.load %arg5[%c0_16, %c0_17] : memref<16x128xbf16, #tpu.memory_space<vmem>>, vector<16x128xbf16>
    tpu.vector_store %arg5[%c0_16, %c0_17], %21 {strides = array<i32>} : memref<16x128xbf16, #tpu.memory_space<vmem>>, vector<16x128xbf16>,
    return
  }
  func.func @transform_0(%arg0: i32, %arg1: i32) -> (i32, i32, i32) {
    %c0_i32 = arith.constant 0 : i32
    %c0_i32_0 = arith.constant 0 : i32
    %c0_i32_1 = arith.constant 0 : i32
    return %c0_i32, %arg1, %c0_i32_0 : i32, i32, i32
  }
  func.func @transform_1(%arg0: i32, %arg1: i32) -> (i32, i32) {
    %c0_i32 = arith.constant 0 : i32
    %c0_i32_0 = arith.constant 0 : i32
    return %c0_i32, %arg0 : i32, i32
  }
  func.func @transform_2(%arg0: i32, %arg1: i32) -> (i32, i32) {
    %c0_i32 = arith.constant 0 : i32
    %c0_i32_0 = arith.constant 0 : i32
    return %c0_i32, %arg0 : i32, i32
  }
  func.func @transform_3(%arg0: i32, %arg1: i32) -> (i32, i32) {
    %c0_i32 = arith.constant 0 : i32
    return %arg1, %arg0 : i32, i32
  }
}

module attributes {stable_mosaic.version = 11 : i64} {
  func.func @_conv_kernel(%arg0: i32, %arg1: i32, %arg2: memref<4x8x1152xbf16, #tpu.memory_space<vmem>>, %arg3: memref<1152x128xbf16, #tpu.memory_space<vmem>>, %arg4: memref<1x128xf32, #tpu.memory_space<vmem>>, %arg5: memref<8x128xbf16, #tpu.memory_space<vmem>>) attributes {dimension_semantics = [#tpu.dimension_semantics<parallel>, #tpu.dimension_semantics<parallel>], iteration_bounds = array<i64: 2, 1>, scalar_prefetch = 0 : i64, scratch_operands = 0 : i64, tpu.core_type = #tpu.core_type<tc>, window_params = [{transform_indices = @transform_0, window_bounds = array<i64: 4, 8, 1152>}, {transform_indices = @transform_1, window_bounds = array<i64: 1152, 128>}, {transform_indices = @transform_2, window_bounds = array<i64: 1, 128>}, {transform_indices = @transform_3, window_bounds = array<i64: 8, 128>}]} {
    %c0 = arith.constant 0 : index
    %c0_0 = arith.constant 0 : index
    %0 = vector.load %arg3[%c0, %c0_0] : memref<1152x128xbf16, #tpu.memory_space<vmem>>, vector<1152x128xbf16>
    %c0_1 = arith.constant 0 : index
    %c0_2 = arith.constant 0 : index
    %c0_3 = arith.constant 0 : index
    %1 = vector.load %arg2[%c0_1, %c0_2, %c0_3] : memref<4x8x1152xbf16, #tpu.memory_space<vmem>>, vector<1x8x1152xbf16>
    %2 = vector.shape_cast %1 : vector<1x8x1152xbf16> to vector<8x1152xbf16>
    %cst = arith.constant dense<0.000000e+00> : vector<8x128xf32>
    %3 = tpu.matmul %2, %0, %cst {dimension_numbers = #tpu.dot_dimension_numbers<[1], [0], [0], [1], [0, 0, 1, 1], [], []>} : vector<8x1152xbf16>, vector<1152x128xbf16>, vector<8x128xf32> -> vector<8x128xf32>
    %c1 = arith.constant 1 : index
    %c0_4 = arith.constant 0 : index
    %c0_5 = arith.constant 0 : index
    %4 = vector.load %arg2[%c1, %c0_4, %c0_5] : memref<4x8x1152xbf16, #tpu.memory_space<vmem>>, vector<1x8x1152xbf16>
    %5 = vector.shape_cast %4 : vector<1x8x1152xbf16> to vector<8x1152xbf16>
    %cst_6 = arith.constant dense<0.000000e+00> : vector<8x128xf32>
    %6 = tpu.matmul %5, %0, %cst_6 {dimension_numbers = #tpu.dot_dimension_numbers<[1], [0], [0], [1], [0, 0, 1, 1], [], []>} : vector<8x1152xbf16>, vector<1152x128xbf16>, vector<8x128xf32> -> vector<8x128xf32>
    %7 = arith.maximumf %3, %6 : vector<8x128xf32>
    %c2 = arith.constant 2 : index
    %c0_7 = arith.constant 0 : index
    %c0_8 = arith.constant 0 : index
    %8 = vector.load %arg2[%c2, %c0_7, %c0_8] : memref<4x8x1152xbf16, #tpu.memory_space<vmem>>, vector<1x8x1152xbf16>
    %9 = vector.shape_cast %8 : vector<1x8x1152xbf16> to vector<8x1152xbf16>
    %cst_9 = arith.constant dense<0.000000e+00> : vector<8x128xf32>
    %10 = tpu.matmul %9, %0, %cst_9 {dimension_numbers = #tpu.dot_dimension_numbers<[1], [0], [0], [1], [0, 0, 1, 1], [], []>} : vector<8x1152xbf16>, vector<1152x128xbf16>, vector<8x128xf32> -> vector<8x128xf32>
    %11 = arith.maximumf %7, %10 : vector<8x128xf32>
    %c3 = arith.constant 3 : index
    %c0_10 = arith.constant 0 : index
    %c0_11 = arith.constant 0 : index
    %12 = vector.load %arg2[%c3, %c0_10, %c0_11] : memref<4x8x1152xbf16, #tpu.memory_space<vmem>>, vector<1x8x1152xbf16>
    %13 = vector.shape_cast %12 : vector<1x8x1152xbf16> to vector<8x1152xbf16>
    %cst_12 = arith.constant dense<0.000000e+00> : vector<8x128xf32>
    %14 = tpu.matmul %13, %0, %cst_12 {dimension_numbers = #tpu.dot_dimension_numbers<[1], [0], [0], [1], [0, 0, 1, 1], [], []>} : vector<8x1152xbf16>, vector<1152x128xbf16>, vector<8x128xf32> -> vector<8x128xf32>
    %15 = arith.maximumf %11, %14 : vector<8x128xf32>
    %c0_13 = arith.constant 0 : index
    %c0_14 = arith.constant 0 : index
    %16 = vector.load %arg4[%c0_13, %c0_14] : memref<1x128xf32, #tpu.memory_space<vmem>>, vector<1x128xf32>
    %17 = vector.broadcast %16 : vector<1x128xf32> to vector<8x128xf32>
    %18 = arith.addf %15, %17 : vector<8x128xf32>
    %cst_15 = arith.constant 0.000000e+00 : f32
    %19 = vector.broadcast %cst_15 : f32 to vector<8x128xf32>
    %20 = arith.maximumf %18, %19 : vector<8x128xf32>
    %21 = arith.truncf %20 : vector<8x128xf32> to vector<8x128xbf16>
    %c0_16 = arith.constant 0 : index
    %c0_17 = arith.constant 0 : index
    %22 = vector.load %arg5[%c0_16, %c0_17] : memref<8x128xbf16, #tpu.memory_space<vmem>>, vector<8x128xbf16>
    tpu.vector_store %arg5[%c0_16, %c0_17], %21 {strides = array<i32>} : memref<8x128xbf16, #tpu.memory_space<vmem>>, vector<8x128xbf16>,
    return
  }
  func.func @transform_0(%arg0: i32, %arg1: i32) -> (i32, i32, i32) {
    %c0_i32 = arith.constant 0 : i32
    %c0_i32_0 = arith.constant 0 : i32
    %c0_i32_1 = arith.constant 0 : i32
    return %c0_i32, %arg1, %c0_i32_0 : i32, i32, i32
  }
  func.func @transform_1(%arg0: i32, %arg1: i32) -> (i32, i32) {
    %c0_i32 = arith.constant 0 : i32
    %c0_i32_0 = arith.constant 0 : i32
    return %c0_i32, %arg0 : i32, i32
  }
  func.func @transform_2(%arg0: i32, %arg1: i32) -> (i32, i32) {
    %c0_i32 = arith.constant 0 : i32
    %c0_i32_0 = arith.constant 0 : i32
    return %c0_i32, %arg0 : i32, i32
  }
  func.func @transform_3(%arg0: i32, %arg1: i32) -> (i32, i32) {
    %c0_i32 = arith.constant 0 : i32
    return %arg1, %arg0 : i32, i32
  }
}

module attributes {stable_mosaic.version = 11 : i64} {
  func.func @_conv_kernel(%arg0: i32, %arg1: i32, %arg2: memref<1x8x2304xbf16, #tpu.memory_space<vmem>>, %arg3: memref<2304x128xbf16, #tpu.memory_space<vmem>>, %arg4: memref<1x128xf32, #tpu.memory_space<vmem>>, %arg5: memref<8x128xbf16, #tpu.memory_space<vmem>>) attributes {dimension_semantics = [#tpu.dimension_semantics<parallel>, #tpu.dimension_semantics<parallel>], iteration_bounds = array<i64: 4, 1>, scalar_prefetch = 0 : i64, scratch_operands = 0 : i64, tpu.core_type = #tpu.core_type<tc>, window_params = [{transform_indices = @transform_0, window_bounds = array<i64: 1, 8, 2304>}, {transform_indices = @transform_1, window_bounds = array<i64: 2304, 128>}, {transform_indices = @transform_2, window_bounds = array<i64: 1, 128>}, {transform_indices = @transform_3, window_bounds = array<i64: 8, 128>}]} {
    %c0 = arith.constant 0 : index
    %c0_0 = arith.constant 0 : index
    %0 = vector.load %arg3[%c0, %c0_0] : memref<2304x128xbf16, #tpu.memory_space<vmem>>, vector<2304x128xbf16>
    %c0_1 = arith.constant 0 : index
    %c0_2 = arith.constant 0 : index
    %c0_3 = arith.constant 0 : index
    %1 = vector.load %arg2[%c0_1, %c0_2, %c0_3] : memref<1x8x2304xbf16, #tpu.memory_space<vmem>>, vector<1x8x2304xbf16>
    %2 = vector.shape_cast %1 : vector<1x8x2304xbf16> to vector<8x2304xbf16>
    %cst = arith.constant dense<0.000000e+00> : vector<8x128xf32>
    %3 = tpu.matmul %2, %0, %cst {dimension_numbers = #tpu.dot_dimension_numbers<[1], [0], [0], [1], [0, 0, 1, 1], [], []>} : vector<8x2304xbf16>, vector<2304x128xbf16>, vector<8x128xf32> -> vector<8x128xf32>
    %c0_4 = arith.constant 0 : index
    %c0_5 = arith.constant 0 : index
    %4 = vector.load %arg4[%c0_4, %c0_5] : memref<1x128xf32, #tpu.memory_space<vmem>>, vector<1x128xf32>
    %5 = vector.broadcast %4 : vector<1x128xf32> to vector<8x128xf32>
    %6 = arith.addf %3, %5 : vector<8x128xf32>
    %cst_6 = arith.constant 0.000000e+00 : f32
    %7 = vector.broadcast %cst_6 : f32 to vector<8x128xf32>
    %8 = arith.maximumf %6, %7 : vector<8x128xf32>
    %9 = arith.truncf %8 : vector<8x128xf32> to vector<8x128xbf16>
    %c0_7 = arith.constant 0 : index
    %c0_8 = arith.constant 0 : index
    %10 = vector.load %arg5[%c0_7, %c0_8] : memref<8x128xbf16, #tpu.memory_space<vmem>>, vector<8x128xbf16>
    tpu.vector_store %arg5[%c0_7, %c0_8], %9 {strides = array<i32>} : memref<8x128xbf16, #tpu.memory_space<vmem>>, vector<8x128xbf16>,
    return
  }
  func.func @transform_0(%arg0: i32, %arg1: i32) -> (i32, i32, i32) {
    %c0_i32 = arith.constant 0 : i32
    %c0_i32_0 = arith.constant 0 : i32
    %c0_i32_1 = arith.constant 0 : i32
    return %c0_i32, %arg1, %c0_i32_0 : i32, i32, i32
  }
  func.func @transform_1(%arg0: i32, %arg1: i32) -> (i32, i32) {
    %c0_i32 = arith.constant 0 : i32
    %c0_i32_0 = arith.constant 0 : i32
    return %c0_i32, %arg0 : i32, i32
  }
  func.func @transform_2(%arg0: i32, %arg1: i32) -> (i32, i32) {
    %c0_i32 = arith.constant 0 : i32
    %c0_i32_0 = arith.constant 0 : i32
    return %c0_i32, %arg0 : i32, i32
  }
  func.func @transform_3(%arg0: i32, %arg1: i32) -> (i32, i32) {
    %c0_i32 = arith.constant 0 : i32
    return %arg1, %arg0 : i32, i32
  }
}

module attributes {stable_mosaic.version = 11 : i64} {
  func.func @_avgpool_fc_kernel(%arg0: memref<2x4x512xbf16, #tpu.memory_space<vmem>>, %arg1: memref<512x128xbf16, #tpu.memory_space<vmem>>, %arg2: memref<1x128xf32, #tpu.memory_space<vmem>>, %arg3: memref<2x128xf32, #tpu.memory_space<vmem>>) attributes {dimension_semantics = [], scalar_prefetch = 0 : i64, scratch_operands = 0 : i64, tpu.core_type = #tpu.core_type<tc>} {
    %c0 = arith.constant 0 : index
    %c0_0 = arith.constant 0 : index
    %c0_1 = arith.constant 0 : index
    %0 = vector.load %arg0[%c0, %c0_0, %c0_1] : memref<2x4x512xbf16, #tpu.memory_space<vmem>>, vector<2x4x512xbf16>
    %1 = arith.extf %0 : vector<2x4x512xbf16> to vector<2x4x512xf32>
    %cst = arith.constant dense<0.000000e+00> : vector<2x512xf32>
    %2 = vector.multi_reduction <add>, %1, %cst [1] : vector<2x4x512xf32> to vector<2x512xf32>
    %cst_2 = arith.constant 4.000000e+00 : f32
    %3 = vector.broadcast %cst_2 : f32 to vector<2x512xf32>
    %4 = arith.divf %2, %3 : vector<2x512xf32>
    %5 = arith.truncf %4 : vector<2x512xf32> to vector<2x512xbf16>
    %c0_3 = arith.constant 0 : index
    %c0_4 = arith.constant 0 : index
    %6 = vector.load %arg1[%c0_3, %c0_4] : memref<512x128xbf16, #tpu.memory_space<vmem>>, vector<512x128xbf16>
    %cst_5 = arith.constant dense<0.000000e+00> : vector<2x128xf32>
    %7 = tpu.matmul %5, %6, %cst_5 {dimension_numbers = #tpu.dot_dimension_numbers<[1], [0], [0], [1], [0, 0, 1, 1], [], []>} : vector<2x512xbf16>, vector<512x128xbf16>, vector<2x128xf32> -> vector<2x128xf32>
    %c0_6 = arith.constant 0 : index
    %c0_7 = arith.constant 0 : index
    %8 = vector.load %arg2[%c0_6, %c0_7] : memref<1x128xf32, #tpu.memory_space<vmem>>, vector<1x128xf32>
    %9 = vector.broadcast %8 : vector<1x128xf32> to vector<2x128xf32>
    %10 = arith.addf %7, %9 : vector<2x128xf32>
    %c0_8 = arith.constant 0 : index
    %c0_9 = arith.constant 0 : index
    %11 = vector.load %arg3[%c0_8, %c0_9] : memref<2x128xf32, #tpu.memory_space<vmem>>, vector<2x128xf32>
    tpu.vector_store %arg3[%c0_8, %c0_9], %10 {strides = array<i32>} : memref<2x128xf32, #tpu.memory_space<vmem>>, vector<2x128xf32>,
    return
  }
}

</mosaic_0001>

<bundles_post_ra>
// kernel: vgg_forward.5
= control target key start
LH: loop header
LB: loop body
LE: loop exit
PB: predicated region body
PF: predicated region fallthrough
CT: control target
= control target key end

     0   :  { %8 = vsyncpa [#allocation4], 0  ;;  %s1361_s12 = smov 0   ;;  %s1363_s13 = smov 0   ;;  %s1547_s0 = inlined_call_operand.vmem [shape: bf16[4,128,32], index: 0, kind: input, shape index: {}]   ;;  %s1548_s1 = inlined_call_operand.vmem [shape: bf16[32,64], index: 1, kind: input, shape index: {}]   ;;  %s1549_s2 = inlined_call_operand.hbm [shape: f32[1,64], index: 2, kind: input, shape index: {}]   ;;  %s1550_s3 = inlined_call_operand.vmem [shape: bf16[128,64], index: 3, kind: output, shape index: {}]  }
   0x1   :  { %s1365_s14 = smov 0   ;;  %s1367_s15 = smov 0  }
   0x2   :  { %s1369_s16 = smov 0  }
   0x3 LB: > { %s1035_s17 = sadd.s32 4294967295, %s1338_s16   ;;  %s23_s18 = sadd.s32 1, %s1334_s15  ;;  %s1338_s16 = sphi %s1369_s16, %s14_s16   ;;  %s1334_s15 = sphi %s1367_s15, %s1564_s15   ;;  %s1330_s14 = sphi %s1365_s14, %s1563_s14   ;;  %s1326_s13 = sphi %s1363_s13, %s1562_s13   ;;  %s1322_s12 = sphi %s1361_s12, %s1561_s12  }
   0x4   : > { %p24_p0 = scmp.ge.s32.totalorder %s23_s18, 2  ;;  %s33_s19 = sadd.s32 1, %s1326_s13 }
   0x5   : > { %p40_p1 = scmp.ne.s32.totalorder %s1326_s13, %s1322_s12  ;;  %p41_p2 = scmp.eq.s32.totalorder %s1338_s16, 0 }
   0x6   : > { %s1566_s18 = smov (%p24_p0, %s23_s18), 0  ;;  %p1037_p4 = scmp.ge.s32.totalorder %s1338_s16, 1 }
   0x7   : > { %p1394_p3 = por %p41_p2, %p40_p1  ;;  %s30_s21 = ssub.s32 %s1334_s15, %s1566_s18 }
   0x8   : > { %p137_p5 = scmp.lt.s32.totalorder %s1338_s16, 3  ;;  %p31_p6 = scmp.eq.s32.totalorder %s30_s21, 0 }
   0x9   : > { %s1554_s20 = scalar_select %p1394_p3, 1, 0 }
   0xa   : > { %p1402_p7 = pnand %p1037_p4, %p137_p5  ;;  %p1406_p8 = scmp.eq.s32.totalorder %s1035_s17, 0 }
   0xb   : > { %s1411_s24 = scalar_select %p31_p6, %s1326_s13, %s33_s19  }
   0xc   : > { %s1555_s22 = scalar_select %p1402_p7, 1, 0 }
   0xd   : > { %s1556_s23 = scalar_select %p1406_p8, 1, 0 }
   0xe   : > { %p1203_p9 = pneg %p1402_p7  ;;  %s1340_s25 = smov [#allocation3]  }
   0xf   : > { %s159_s26 = sshll.u32 %s1340_s25, 4  ;;  %s1268_s30 = scalar_lea.hbm %s1549_s2, 16  ;;  %s160_s26 = int_to_ptr.vmem [resolvable:$true] %s159_s26 }
  0x10   : > { %p1417_p10 = pnand %p1406_p8, %p1203_p9  ;;  %p1269_p11 = scmp.ne.s32.totalorder %s1549_s2, %s1268_s30 }
  0x11   : > { %p1275_p1 = scmp.lt.u32.totalorder %s1268_s30, %s1549_s2 }
  0x12   : > { %p1270_p12 = pneg %p1417_p10 }
  0x14   : > { %p1271_p13 = pnand %p1270_p12, %p1269_p11 }
  0x16   : > { %p1272_p0 = pneg %p1271_p13 }
  0x18   : > { %p1277_p2 = pnand %p1275_p1, %p1272_p0 }
  0x1a   : > { %1280 = shalt.err (!%p1277_p2)
}
  0x1b   : > { %s1281_s8 = scalar_lea.vmem %s160_s26, 16  ;;  %s1288_s9 = scalar_lea.vmem %s160_s26, 32 }
  0x1c   : > { %p1282_p4 = scmp.ne.s32.totalorder %s160_s26, %s1281_s8  ;;  %p1289_p9 = scmp.lt.s32.totalorder %s160_s26, %s160_s26 }
  0x1d   : > { %p1290_p8 = scmp.lt.s32.totalorder %s1288_s9, %s1281_s8 }
  0x1e   : > { %p1284_p5 = pnand %p1282_p4, %p1270_p12 }
  0x1f   : > { %p1291_p7 = por %p1290_p8, %p1289_p9 }
  0x20   : > { %p1285_p6 = pneg %p1284_p5 }
  0x22   : > { %p1292_p3 = pnand %p1291_p7, %p1285_p6 }
  0x24   : > { %1295 = shalt.err (!%p1292_p3)
}
  0x25   : > { %1206 = dma.hbm_to_vmem [thread:$0]  (!%p1417_p10), %s1549_s2, 16, %s160_s26, [#allocation4]  }
  0x26   : > { %p1040_p11 = scmp.ge.s32.totalorder %s1338_s16, 2 }
  0x27   : > { %p1558_p13 = scmp.ne.s32.totalorder (!%p1040_p11), %s1554_s20, 0 }
  0x28   : > { %166 = sbr.rel (%p1040_p11) target bundleno = 59 (0x3b), region = 24 }
  0x2f   : > { %169 = sbr.rel (!%p1558_p13) target bundleno = 59 (0x3b), region = 28  ;;  %s171_s17 = sand.u32 (%p1558_p13), 1, %s1326_s13  }
  0x30   : > { %s1118_s19 = sshll.u32 (%p1558_p13), %s1334_s15, 5  ;;  %s1041_s21 = sshll.u32 (%p1558_p13), %s171_s17, 7 }
  0x31   : > { %s1445_s29 = scalar_lea.vmem (%p1558_p13), %s1547_s0, %s1118_s19  ;;  %s173_s20 = scalar_lea.vmem (%p1558_p13), [#allocation2], %s1041_s21 }
  0x32   : > { %v192_v0 = vld [vmem:[%s1445_s29] sm:$0xff] (%p1558_p13)   ;;  %v196_v1 = vld [vmem:[%s1445_s29 + $0x8] sm:$0xff] (%p1558_p13)   ;;  %v200_v2 = vld [vmem:[%s1445_s29 + $0x10] sm:$0xff] (%p1558_p13)  }
  0x33   : > { %193 = vst [vmem:[%s173_s20] sm:$0xff] (%p1558_p13), %v192_v0   ;;  %197 = vst [vmem:[%s173_s20 + $0x8] sm:$0xff] (%p1558_p13), %v196_v1   ;;  %v204_v3 = vld [vmem:[%s1445_s29 + $0x18] sm:$0xff] (%p1558_p13)   ;;  %v208_v4 = vld [vmem:[%s1445_s29 + $0x40] sm:$0xff] (%p1558_p13)  }
  0x34   : > { %201 = vst [vmem:[%s173_s20 + $0x10] sm:$0xff] (%p1558_p13), %v200_v2   ;;  %v212_v5 = vld [vmem:[%s1445_s29 + $0x48] sm:$0xff] (%p1558_p13)   ;;  %205 = vst [vmem:[%s173_s20 + $0x18] sm:$0xff] (%p1558_p13), %v204_v3   ;;  %v216_v6 = vld [vmem:[%s1445_s29 + $0x50] sm:$0xff] (%p1558_p13)  }
  0x35   : > { %209 = vst [vmem:[%s173_s20 + $0x20] sm:$0xff] (%p1558_p13), %v208_v4   ;;  %213 = vst [vmem:[%s173_s20 + $0x28] sm:$0xff] (%p1558_p13), %v212_v5   ;;  %v220_v7 = vld [vmem:[%s1445_s29 + $0x58] sm:$0xff] (%p1558_p13)   ;;  %v224_v8 = vld [vmem:[%s1445_s29 + $0x80] sm:$0xff] (%p1558_p13)  }
  0x36   : > { %217 = vst [vmem:[%s173_s20 + $0x30] sm:$0xff] %v216_v6   ;;  %221 = vst [vmem:[%s173_s20 + $0x38] sm:$0xff] %v220_v7   ;;  %v228_v9 = vld [vmem:[%s1445_s29 + $0x88] sm:$0xff]   ;;  %v232_v10 = vld [vmem:[%s1445_s29 + $0x90] sm:$0xff]  }
  0x37   : > { %225 = vst [vmem:[%s173_s20 + $0x40] sm:$0xff] %v224_v8   ;;  %v236_v11 = vld [vmem:[%s1445_s29 + $0x98] sm:$0xff]   ;;  %229 = vst [vmem:[%s173_s20 + $0x48] sm:$0xff] %v228_v9   ;;  %v240_v12 = vld [vmem:[%s1445_s29 + $0xc0] sm:$0xff]  }
  0x38   : > { %233 = vst [vmem:[%s173_s20 + $0x50] sm:$0xff] %v232_v10   ;;  %237 = vst [vmem:[%s173_s20 + $0x58] sm:$0xff] %v236_v11   ;;  %v244_v13 = vld [vmem:[%s1445_s29 + $0xc8] sm:$0xff]   ;;  %v248_v14 = vld [vmem:[%s1445_s29 + $0xd0] sm:$0xff]  }
  0x39   : > { %241 = vst [vmem:[%s173_s20 + $0x60] sm:$0xff] %v240_v12   ;;  %245 = vst [vmem:[%s173_s20 + $0x68] sm:$0xff] %v244_v13   ;;  %v252_v15 = vld [vmem:[%s1445_s29 + $0xd8] sm:$0xff]  }
  0x3a   : > { %249 = vst [vmem:[%s173_s20 + $0x70] sm:$0xff] %v248_v14   ;;  %253 = vst [vmem:[%s173_s20 + $0x78] sm:$0xff] %v252_v15  }
  0x3b PF: > { %p1559_p3 = scmp.ne.s32.totalorder %s1555_s22, 0 }
  0x3c   : > { %s348_s26 = sand.u32 (!%p1559_p3), 1, %s1322_s12   ;;  %p1560_p7 = scmp.ne.s32.totalorder (!%p1559_p3), %s1556_s23, 0 }
  0x3d   : > { %345 = sbr.rel (%p1559_p3) target bundleno = 328 (0x148), region = 69  ;;  %s1045_s27 = sshll.u32 (!%p1559_p3), %s348_s26, 7 }
  0x3e   : > { %s1466_s30 = scalar_lea.vmem (!%p1559_p3), [#allocation2], %s1045_s27 }
  0x44   : > { %1317 = dma.done.wait (%p1560_p7), [#allocation4], 16  }
  0x45   : > { %1319 = vsyncadd (%p1560_p7), [#allocation4], 4294967280  ;;  %v1250_v16 = vld [vmem:[%s1548_s1] sm:$0xff]   ;;  %v1251_v17 = vld [vmem:[%s1548_s1 + $0x8] sm:$0xff]   ;;  %vm441_vm0 = vcmask 261120   ;;  %s1047_s12 = sshll.u32 %s1330_s14, 3 }
  0x46   : > { %1151 = vmatprep.subr.bf16.mxu0 %v1250_v16  ;;  %1163 = vmatprep.subr.bf16.mxu1 %v1250_v16  ;;  %v1252_v18 = vld [vmem:[%s1466_s30] sm:$0xff]   ;;  %v1254_v20 = vld [vmem:[%s1466_s30 + $0x8] sm:$0xff]   ;;  %v1256_v22 = vld [vmem:[%s1466_s30 + $0x10] sm:$0xff]   ;;  %p388_p8 = scmp.lt.s32.totalorder %s1047_s12, 15  ;;  %vm916_vm1 = vcmask 519168  }
  0x47   : > { %1152 = vmatpush3.bf16.msra.mxu0 %v1250_v16  ;;  %1164 = vmatpush3.bf16.msra.mxu1 %v1250_v16  ;;  %v1253_v19 = vld [vmem:[%s1466_s30 + $0x20] sm:$0xff]   ;;  %v1255_v21 = vld [vmem:[%s1466_s30 + $0x28] sm:$0xff]   ;;  %v1257_v23 = vld [vmem:[%s1466_s30 + $0x30] sm:$0xff]  }
  0x48   : > { %1153 = vmatprep.subr.bf16.mxu0 %v1251_v17  ;;  %1165 = vmatprep.subr.bf16.mxu1 %v1251_v17  ;;  %v1258_v24 = vld [vmem:[%s1466_s30 + $0x18] sm:$0xff]   ;;  %v1260_v26 = vld [vmem:[%s1466_s30 + $0x40] sm:$0xff]   ;;  %v1262_v28 = vld [vmem:[%s1466_s30 + $0x48] sm:$0xff]   ;;  %s1568_s12 = smov (!%p388_p8, %s1047_s12), 15 }
  0x49   : > { %1155 = vmatprep.mubr.msk.bf16.mxu0 %vm441_vm0, %v1252_v18  ;;  %1167 = vmatprep.mubr.msk.bf16.mxu1 %vm441_vm0, %v1253_v19  ;;  %v1259_v25 = vld [vmem:[%s1466_s30 + $0x38] sm:$0xff]   ;;  %v1261_v27 = vld [vmem:[%s1466_s30 + $0x60] sm:$0xff]   ;;  %v1263_v29 = vld [vmem:[%s1466_s30 + $0x68] sm:$0xff]   ;;  %s1048_s14 = sshll.u32 %s1568_s12, 2 }
  0x4a   : > { %v1264_v30 = vld [vmem:[%s1466_s30 + $0x50] sm:$0xff]   ;;  %v1266_v32 = vld [vmem:[%s1466_s30 + $0x58] sm:$0xff]   ;;  %v1107_v63 = vld [vmem:[#allocation3] ss:$0 sm:$0xff]  ;;  %s1514_s8 = scalar_lea.vmem %s1550_s3, %s1048_s14 }
  0x4b   : > { %1154 = vmatpush3.bf16.msra.mxu0 %v1251_v17  ;;  %1166 = vmatpush3.bf16.msra.mxu1 %v1251_v17  ;;  %v1265_v31 = vld [vmem:[%s1466_s30 + $0x70] sm:$0xff]   ;;  %v1267_v33 = vld [vmem:[%s1466_s30 + $0x78] sm:$0xff]  }
  0x4c   : > { %1175 = vmatprep.subr.bf16.mxu0 %v1250_v16  ;;  %1187 = vmatprep.subr.bf16.mxu1 %v1250_v16 }
  0x4e   : > { %1156 = vmatmul.mubr.msk.bf16.vlgmr.msra.gmra.mrb[0].mxu0 %vm441_vm0, %v1254_v20  ;;  %1168 = vmatmul.mubr.msk.bf16.vlgmr.msra.gmra.mrb[0].mxu1 %vm441_vm0, %v1255_v21 }
  0x4f   : > { %1176 = vmatpush3.bf16.msra.mxu0 %v1250_v16  ;;  %1188 = vmatpush3.bf16.msra.mxu1 %v1250_v16 }
  0x50   : > { %1159 = vmatprep.mubr.msk.bf16.mxu0 %vm441_vm0, %v1256_v22  ;;  %1171 = vmatprep.mubr.msk.bf16.mxu1 %vm441_vm0, %v1257_v23 }
  0x51   : > { %1177 = vmatprep.subr.bf16.mxu0 %v1251_v17  ;;  %1189 = vmatprep.subr.bf16.mxu1 %v1251_v17 }
  0x53   : > { %1178 = vmatpush3.bf16.msra.mxu0 %v1251_v17  ;;  %1190 = vmatpush3.bf16.msra.mxu1 %v1251_v17 }
  0x56   : > { %1160 = vmatmul.mubr.msk.bf16.gmra.mrb[4].mxu0 %vm441_vm0, %v1258_v24  ;;  %1172 = vmatmul.mubr.msk.bf16.gmra.mrb[4].mxu1 %vm441_vm0, %v1259_v25 }
  0x57   : > { %1179 = vmatprep.mubr.msk.bf16.mxu0 %vm441_vm0, %v1260_v26  ;;  %1191 = vmatprep.mubr.msk.bf16.mxu1 %vm441_vm0, %v1261_v27 }
  0x5e   : > { %1180 = vmatmul.mubr.msk.bf16.vlgmr.msra.gmra.mrb[8].mxu0 %vm441_vm0, %v1262_v28  ;;  %1192 = vmatmul.mubr.msk.bf16.vlgmr.msra.gmra.mrb[8].mxu1 %vm441_vm0, %v1263_v29 }
  0x5f   : > { %1183 = vmatprep.mubr.msk.bf16.mxu0 %vm441_vm0, %v1264_v30  ;;  %1195 = vmatprep.mubr.msk.bf16.mxu1 %vm441_vm0, %v1265_v31 }
  0x66   : > { %1184 = vmatmul.mubr.msk.bf16.gmra.mrb[12].mxu0 %vm441_vm0, %v1266_v32  ;;  %1196 = vmatmul.mubr.msk.bf16.gmra.mrb[12].mxu1 %vm441_vm0, %v1267_v33 }
 0x121   : > { %v1157_v34 = vpop.f32.mrb[0].mxu0  ;;  %v1169_v35 = vpop.f32.mrb[0].mxu1 }
 0x122   : > { %v627_v36 = vmax.f32 %v1157_v34, %v1169_v35  ;;  %v488_v37 = vpop.f32.mrb[1].mxu0  ;;  %v594_v38 = vpop.f32.mrb[1].mxu1 }
 0x123   : > { %v625_v39 = vmax.f32 %v488_v37, %v594_v38  ;;  %v1158_v40 = vpop.f32.mrb[2].mxu0  ;;  %v1170_v41 = vpop.f32.mrb[2].mxu1 }
 0x124   : > { %v628_v42 = vmax.f32 %v1158_v40, %v1170_v41  ;;  %v491_v43 = vpop.f32.mrb[3].mxu0  ;;  %v597_v44 = vpop.f32.mrb[3].mxu1 }
 0x125   : > { %v626_v45 = vmax.f32 %v491_v43, %v597_v44 }
 0x129   : > { %v1161_v46 = vpop.f32.mrb[4].mxu0  ;;  %v1173_v47 = vpop.f32.mrb[4].mxu1 }
 0x12a   : > { %v631_v48 = vmax.f32 %v1161_v46, %v1173_v47  ;;  %v504_v49 = vpop.f32.mrb[5].mxu0  ;;  %v610_v50 = vpop.f32.mrb[5].mxu1 }
 0x12b   : > { %v629_v51 = vmax.f32 %v504_v49, %v610_v50  ;;  %v1162_v52 = vpop.f32.mrb[6].mxu0  ;;  %v1174_v53 = vpop.f32.mrb[6].mxu1 }
 0x12c   : > { %v632_v54 = vmax.f32 %v1162_v52, %v1174_v53  ;;  %v507_v55 = vpop.f32.mrb[7].mxu0  ;;  %v613_v56 = vpop.f32.mrb[7].mxu1 }
 0x12d   : > { %v630_v57 = vmax.f32 %v507_v55, %v613_v56 }
 0x131   : > { %v1181_v58 = vpop.f32.mrb[8].mxu0  ;;  %v1193_v59 = vpop.f32.mrb[8].mxu1 }
 0x132   : > { %v741_v60 = vmax.f32 %v627_v36, %v1181_v58  ;;  %v708_v61 = vpop.f32.mrb[9].mxu0  ;;  %v822_v62 = vpop.f32.mrb[9].mxu1 }
 0x133   : > { %v739_v0 = vmax.f32 %v625_v39, %v708_v61  ;;  %v1182_v1 = vpop.f32.mrb[10].mxu0  ;;  %v1194_v2 = vpop.f32.mrb[10].mxu1 }
 0x134   : > { %v855_v3 = vmax.f32 %v741_v60, %v1193_v59  ;;  %v742_v4 = vmax.f32 %v628_v42, %v1182_v1  ;;  %v711_v5 = vpop.f32.mrb[11].mxu0  ;;  %v825_v6 = vpop.f32.mrb[11].mxu1 }
 0x135   : > { %v853_v7 = vmax.f32 %v739_v0, %v822_v62  ;;  %v740_v8 = vmax.f32 %v626_v45, %v711_v5 }
 0x136   : > { %v870_v9 = vadd.f32 %v1107_v63, %v855_v3  ;;  %v856_v10 = vmax.f32 %v742_v4, %v1194_v2 }
 0x137   : > { %v868_v11 = vadd.f32 %v1107_v63, %v853_v7  ;;  %v854_v12 = vmax.f32 %v740_v8, %v825_v6 }
 0x138   : > { %v878_v13 = vmax.f32 %v870_v9, 0.0  ;;  %v871_v14 = vadd.f32 %v1107_v63, %v856_v10 }
 0x139   : > { %v876_v15 = vmax.f32 %v868_v11, 0.0  ;;  %v869_v16 = vadd.f32 %v1107_v63, %v854_v12  ;;  %v1185_v17 = vpop.f32.mrb[12].mxu0  ;;  %v1197_v18 = vpop.f32.mrb[12].mxu1 }
 0x13a   : > { %v1121_v19 = vpack.c.bf16 %v878_v13, %v878_v13  ;;  %v879_v20 = vmax.f32 %v871_v14, 0.0  ;;  %v745_v21 = vmax.f32 %v631_v48, %v1185_v17  ;;  %v724_v22 = vpop.f32.mrb[13].mxu0  ;;  %v838_v23 = vpop.f32.mrb[13].mxu1 }
 0x13b   : > { %v1119_v24 = vpack.c.bf16 %v876_v15, %v876_v15  ;;  %v877_v25 = vmax.f32 %v869_v16, 0.0  ;;  %v743_v26 = vmax.f32 %v629_v51, %v724_v22  ;;  %v1186_v27 = vpop.f32.mrb[14].mxu0  ;;  %v1198_v28 = vpop.f32.mrb[14].mxu1 }
 0x13c   : > { %919 = vst.msk [vmem:[%s1514_s8 + $0x8] sm:$0xf] %vm916_vm1, %v1121_v19  ;;  %v1122_v29 = vpack.c.bf16 %v879_v20, %v879_v20  ;;  %v859_v30 = vmax.f32 %v745_v21, %v1197_v18  ;;  %v746_v31 = vmax.f32 %v632_v54, %v1186_v27  ;;  %v727_v32 = vpop.f32.mrb[15].mxu0  ;;  %v841_v33 = vpop.f32.mrb[15].mxu1 }
 0x13d   : > { %917 = vst.msk [vmem:[%s1514_s8] sm:$0xf] %vm916_vm1, %v1119_v24  ;;  %v1120_v34 = vpack.c.bf16 %v877_v25, %v877_v25  ;;  %v857_v35 = vmax.f32 %v743_v26, %v838_v23  ;;  %v744_v36 = vmax.f32 %v630_v57, %v727_v32 }
 0x13e   : > { %920 = vst.msk [vmem:[%s1514_s8 + $0xc] sm:$0xf] %vm916_vm1, %v1122_v29  ;;  %v874_v37 = vadd.f32 %v1107_v63, %v859_v30  ;;  %v860_v38 = vmax.f32 %v746_v31, %v1198_v28 }
 0x13f   : > { %918 = vst.msk [vmem:[%s1514_s8 + $0x4] sm:$0xf] %vm916_vm1, %v1120_v34  ;;  %v872_v39 = vadd.f32 %v1107_v63, %v857_v35  ;;  %v858_v40 = vmax.f32 %v744_v36, %v841_v33 }
 0x140   : > { %v882_v41 = vmax.f32 %v874_v37, 0.0  ;;  %v875_v42 = vadd.f32 %v1107_v63, %v860_v38 }
 0x141   : > { %v880_v43 = vmax.f32 %v872_v39, 0.0  ;;  %v873_v44 = vadd.f32 %v1107_v63, %v858_v40 }
 0x142   : > { %v1125_v45 = vpack.c.bf16 %v882_v41, %v882_v41  ;;  %v883_v46 = vmax.f32 %v875_v42, 0.0 }
 0x143   : > { %v1123_v47 = vpack.c.bf16 %v880_v43, %v880_v43  ;;  %v881_v48 = vmax.f32 %v873_v44, 0.0 }
 0x144   : > { %923 = vst.msk [vmem:[%s1514_s8 + $0x18] sm:$0xf] %vm916_vm1, %v1125_v45  ;;  %v1126_v49 = vpack.c.bf16 %v883_v46, %v883_v46 }
 0x145   : > { %921 = vst.msk [vmem:[%s1514_s8 + $0x10] sm:$0xf] %vm916_vm1, %v1123_v47  ;;  %v1124_v50 = vpack.c.bf16 %v881_v48, %v881_v48 }
 0x146   : > { %924 = vst.msk [vmem:[%s1514_s8 + $0x1c] sm:$0xf] %vm916_vm1, %v1126_v49 }
 0x147   : > { %922 = vst.msk [vmem:[%s1514_s8 + $0x14] sm:$0xf] %vm916_vm1, %v1124_v50 }
 0x148 PF: > { %s14_s16 = sadd.s32 1, %s1338_s16   ;;  %s1561_s12 = smov %s1326_s13 }
 0x149   : > { %p11_p10 = scmp.ge.s32.totalorder %s14_s16, 4   ;;  %s1562_s13 = smov %s1411_s24 }
 0x14a   : > { %s1563_s14 = smov %s1334_s15  ;;  %s1564_s15 = smov %s1566_s18 }
 0x14b   :  { %13 = sbr.rel (!%p11_p10) target bundleno = 3 (0x3), region = 120 }
 0x152   :  { %953 = vsyncpa [#allocation4], 1 }
 0x153   :  { %955 = vsyncpa [#allocation4 + $0x1], 1 }

// kernel: vgg_forward.6
= control target key start
LH: loop header
LB: loop body
LE: loop exit
PB: predicated region body
PF: predicated region fallthrough
CT: control target
= control target key end

     0   :  { %s1893_s12 = smov 0   ;;  %s1895_s13 = smov 0   ;;  %s2387_s0 = inlined_call_operand.vmem [shape: bf16[4,32,576], index: 0, kind: input, shape index: {}]   ;;  %s2388_s1 = inlined_call_operand.vmem [shape: bf16[576,128], index: 1, kind: input, shape index: {}]   ;;  %s2389_s2 = inlined_call_operand.vmem [shape: f32[1,128], index: 2, kind: input, shape index: {}]   ;;  %s2390_s3 = inlined_call_operand.vmem [shape: bf16[32,128], index: 3, kind: output, shape index: {}]  }
   0x1   :  { %s1897_s14 = smov 0   ;;  %s1899_s15 = smov 0  }
   0x2   :  { %s1901_s16 = smov 0  }
   0x3 LB: > { %s22_s17 = sadd.s32 1, %s1865_s15  ;;  %p39_p1 = scmp.ne.s32.totalorder %s1857_s13, %s1853_s12  ;;  %s1869_s16 = sphi %s1901_s16, %s13_s16   ;;  %s1865_s15 = sphi %s1899_s15, %s2394_s15   ;;  %s1861_s14 = sphi %s1897_s14, %s2393_s14   ;;  %s1857_s13 = sphi %s1895_s13, %s2392_s13   ;;  %s1853_s12 = sphi %s1893_s12, %s2391_s12  }
   0x4   : > { %p23_p0 = scmp.ge.s32.totalorder %s22_s17, 2  ;;  %p40_p2 = scmp.eq.s32.totalorder %s1869_s16, 0 }
   0x5   : > { %s32_s19 = sadd.s32 1, %s1857_s13  ;;  %p1365_p5 = scmp.ge.s32.totalorder %s1869_s16, 2 }
   0x6   : > { %s2396_s17 = smov (%p23_p0, %s22_s17), 0  ;;  %p41_p3 = por %p40_p2, %p39_p1 }
   0x7   : > { %s29_s18 = ssub.s32 %s1865_s15, %s2396_s17  ;;  %158 = sbr.rel (%p1365_p5) target bundleno = 32 (0x20), region = 24 }
   0x8   : > { %p30_p4 = scmp.eq.s32.totalorder %s29_s18, 0 }
   0xa   : > { %s1928_s20 = scalar_select %p30_p4, %s1857_s13, %s32_s19  }
   0xe   : > { %161 = sbr.rel (!%p41_p3) target bundleno = 32 (0x20), region = 28  ;;  %s163_s21 = sand.u32 (%p41_p3), 1, %s1857_s13  }
   0xf   : > { %s1723_s22 = smul.u32 (%p41_p3), 40, %s1865_s15 }
  0x10   : > { %s1722_s23 = smul.u32 (%p41_p3), 160, %s163_s21 }
  0x11   : > { %s1936_s26 = scalar_lea.vmem (%p41_p3), %s2387_s0, %s1723_s22 }
  0x12   : > { %v184_v0 = vld [vmem:[%s1936_s26] sm:$0xff] (%p41_p3)  ;;  %v186_v1 = vld [vmem:[%s1936_s26 + $0x8] sm:$0xff] (%p41_p3)  ;;  %v188_v2 = vld [vmem:[%s1936_s26 + $0x14] sm:$0xff] (%p41_p3)  ;;  %s1941_s27 = scalar_lea.vmem (%p41_p3), [#allocation2], %s1722_s23 }
  0x13   : > { %185 = vst [vmem:[%s1941_s27] sm:$0xff] (%p41_p3), %v184_v0  ;;  %187 = vst [vmem:[%s1941_s27 + $0x8] sm:$0xff] (%p41_p3), %v186_v1  ;;  %v190_v3 = vld [vmem:[%s1936_s26 + $0x1c] sm:$0xff] (%p41_p3)  ;;  %v192_v4 = vld [vmem:[%s1936_s26 + $0x50] sm:$0xff] (%p41_p3) }
  0x14   : > { %189 = vst [vmem:[%s1941_s27 + $0x14] sm:$0xff] (%p41_p3), %v188_v2  ;;  %v194_v5 = vld [vmem:[%s1936_s26 + $0x58] sm:$0xff] (%p41_p3)  ;;  %191 = vst [vmem:[%s1941_s27 + $0x1c] sm:$0xff] (%p41_p3), %v190_v3  ;;  %v196_v6 = vld [vmem:[%s1936_s26 + $0x64] sm:$0xff] (%p41_p3) }
  0x15   : > { %193 = vst [vmem:[%s1941_s27 + $0x28] sm:$0xff] %v192_v4  ;;  %195 = vst [vmem:[%s1941_s27 + $0x30] sm:$0xff] %v194_v5  ;;  %v198_v7 = vld [vmem:[%s1936_s26 + $0x6c] sm:$0xff]  ;;  %v200_v8 = vld [vmem:[%s1936_s26 + $0xa0] sm:$0xff] }
  0x16   : > { %197 = vst [vmem:[%s1941_s27 + $0x3c] sm:$0xff] %v196_v6  ;;  %199 = vst [vmem:[%s1941_s27 + $0x44] sm:$0xff] %v198_v7  ;;  %v202_v9 = vld [vmem:[%s1936_s26 + $0xa8] sm:$0xff]  ;;  %v204_v10 = vld [vmem:[%s1936_s26 + $0xb4] sm:$0xff] }
  0x17   : > { %201 = vst [vmem:[%s1941_s27 + $0x50] sm:$0xff] %v200_v8  ;;  %v206_v11 = vld [vmem:[%s1936_s26 + $0xbc] sm:$0xff]  ;;  %203 = vst [vmem:[%s1941_s27 + $0x58] sm:$0xff] %v202_v9  ;;  %v208_v12 = vld [vmem:[%s1936_s26 + $0xf0] sm:$0xff] }
  0x18   : > { %205 = vst [vmem:[%s1941_s27 + $0x64] sm:$0xff] %v204_v10  ;;  %207 = vst [vmem:[%s1941_s27 + $0x6c] sm:$0xff] %v206_v11  ;;  %v210_v13 = vld [vmem:[%s1936_s26 + $0xf8] sm:$0xff]  ;;  %v212_v14 = vld [vmem:[%s1936_s26 + $0x104] sm:$0xff] }
  0x19   : > { %209 = vst [vmem:[%s1941_s27 + $0x78] sm:$0xff] %v208_v12  ;;  %211 = vst [vmem:[%s1941_s27 + $0x80] sm:$0xff] %v210_v13  ;;  %v214_v15 = vld [vmem:[%s1936_s26 + $0x10c] sm:$0xff]  ;;  %v1371_v17 = vld [vmem:[%s1936_s26 + $0x24] sm:$0xf] }
  0x1a   : > { %213 = vst [vmem:[%s1941_s27 + $0x8c] sm:$0xff] %v212_v14  ;;  %v1369_v16 = vld [vmem:[%s1936_s26 + $0x10] sm:$0xf]  ;;  %215 = vst [vmem:[%s1941_s27 + $0x94] sm:$0xff] %v214_v15  ;;  %v1373_v18 = vld [vmem:[%s1936_s26 + $0x60] sm:$0xf] }
  0x1b   : > { %1370 = vst [vmem:[%s1941_s27 + $0x10] sm:$0xf] %v1369_v16  ;;  %1372 = vst [vmem:[%s1941_s27 + $0x24] sm:$0xf] %v1371_v17  ;;  %v1375_v19 = vld [vmem:[%s1936_s26 + $0x74] sm:$0xf] }
  0x1c   : > { %v1377_v20 = vld [vmem:[%s1936_s26 + $0xb0] sm:$0xf]  ;;  %1374 = vst [vmem:[%s1941_s27 + $0x38] sm:$0xf] %v1373_v18  ;;  %1376 = vst [vmem:[%s1941_s27 + $0x4c] sm:$0xf] %v1375_v19 }
  0x1d   : > { %1378 = vst [vmem:[%s1941_s27 + $0x60] sm:$0xf] %v1377_v20  ;;  %v1379_v21 = vld [vmem:[%s1936_s26 + $0xc4] sm:$0xf]  ;;  %v1381_v22 = vld [vmem:[%s1936_s26 + $0x100] sm:$0xf] }
  0x1e   : > { %v1383_v23 = vld [vmem:[%s1936_s26 + $0x114] sm:$0xf]  ;;  %1380 = vst [vmem:[%s1941_s27 + $0x74] sm:$0xf] %v1379_v21  ;;  %1382 = vst [vmem:[%s1941_s27 + $0x88] sm:$0xf] %v1381_v22 }
  0x1f   : > { %1384 = vst [vmem:[%s1941_s27 + $0x9c] sm:$0xf] %v1383_v23 }
  0x20 PF: > { %p1385_p6 = scmp.ge.s32.totalorder %s1869_s16, 1  ;;  %p243_p7 = scmp.lt.s32.totalorder %s1869_s16, 3 }
  0x22   : > { %p244_p8 = pnand %p1385_p6, %p243_p7 }
  0x23   : > { %v1993_v24 = vld [vmem:[%s2388_s1 + $0x40] sm:$0xff] (!%p244_p8)   ;;  %v2016_v28 = vld [vmem:[%s2388_s1 + $0x48] sm:$0xff] (!%p244_p8)   ;;  %v2040_v32 = vld [vmem:[%s2388_s1 + $0x50] sm:$0xff] (!%p244_p8)   ;;  %s250_s7 = sand.u32 (!%p244_p8), 1, %s1853_s12   ;;  %v1871_v58 = vmov (!%p244_p8), 0.0   ;;  %vm1872_vm0 = vmmov (!%p244_p8), 0  }
  0x24   : > { %247 = sbr.rel (%p244_p8) target bundleno = 427 (0x1ab), region = 54  ;;  %v1998_v25 = vld [vmem:[%s2388_s1 + $0xc0] sm:$0xff] (!%p244_p8)   ;;  %1478 = vmatprep.subr.bf16.mxu0 (!%p244_p8), %v1993_v24  ;;  %v2022_v29 = vld [vmem:[%s2388_s1 + $0xc8] sm:$0xff] (!%p244_p8)   ;;  %v2046_v33 = vld [vmem:[%s2388_s1 + $0xd0] sm:$0xff] (!%p244_p8)   ;;  %vm620_vm1 = vcmask (!%p244_p8), 523264   ;;  %s1386_s21 = sshll.u32 (!%p244_p8), %s1861_s14, 1 }
  0x25   : > { %v2004_v26 = vld [vmem:[%s2388_s1] sm:$0xff] (!%p244_p8)   ;;  %1500 = vmatprep.subr.bf16.mxu1 (!%p244_p8), %v1998_v25  ;;  %v2028_v30 = vld [vmem:[%s2388_s1 + $0x8] sm:$0xff] (!%p244_p8)   ;;  %v2052_v34 = vld [vmem:[%s2388_s1 + $0x10] sm:$0xff] (!%p244_p8)   ;;  %s1724_s12 = smul.u32 (!%p244_p8), 160, %s250_s7  ;;  %p292_p9 = scmp.lt.s32.totalorder (!%p244_p8), %s1386_s21, 3 }
  0x26   : > { %v2010_v27 = vld [vmem:[%s2388_s1 + $0x80] sm:$0xff] (!%p244_p8)   ;;  %1479 = vmatpush3.bf16.msra.mxu0 (!%p244_p8), %v2004_v26  ;;  %v2034_v31 = vld [vmem:[%s2388_s1 + $0x88] sm:$0xff] (!%p244_p8)   ;;  %v2058_v35 = vld [vmem:[%s2388_s1 + $0x90] sm:$0xff] (!%p244_p8)  }
  0x27   : > { %1501 = vmatpush3.bf16.msra.mxu1 (!%p244_p8), %v2010_v27  ;;  %1480 = vmatprep.subr.bf16.mxu0 (!%p244_p8), %v2016_v28  ;;  %v2064_v36 = vld [vmem:[%s2388_s1 + $0x58] sm:$0xff] (!%p244_p8)   ;;  %v2088_v40 = vld [vmem:[%s2388_s1 + $0x60] sm:$0xff] (!%p244_p8)   ;;  %v2112_v44 = vld [vmem:[%s2388_s1 + $0x68] sm:$0xff] (!%p244_p8)   ;;  %s2182_s6 = scalar_lea.vmem (!%p244_p8), [#allocation2], %s1724_s12 }
  0x28   : > { %1502 = vmatprep.subr.bf16.mxu1 (!%p244_p8), %v2022_v29  ;;  %v2070_v37 = vld [vmem:[%s2388_s1 + $0xd8] sm:$0xff] (!%p244_p8)   ;;  %v2094_v41 = vld [vmem:[%s2388_s1 + $0xe0] sm:$0xff] (!%p244_p8)   ;;  %v2118_v45 = vld [vmem:[%s2388_s1 + $0xe8] sm:$0xff] (!%p244_p8)  }
  0x29   : > { %v2076_v38 = vld [vmem:[%s2388_s1 + $0x18] sm:$0xff] (!%p244_p8)   ;;  %v2100_v42 = vld [vmem:[%s2388_s1 + $0x20] sm:$0xff] (!%p244_p8)   ;;  %v2124_v46 = vld [vmem:[%s2388_s1 + $0x28] sm:$0xff] (!%p244_p8)  }
  0x2a   : > { %1481 = vmatpush3.bf16.msra.mxu0 (!%p244_p8), %v2028_v30  ;;  %v2082_v39 = vld [vmem:[%s2388_s1 + $0x98] sm:$0xff] (!%p244_p8)   ;;  %v2106_v43 = vld [vmem:[%s2388_s1 + $0xa0] sm:$0xff] (!%p244_p8)   ;;  %v2131_v47 = vld [vmem:[%s2388_s1 + $0xa8] sm:$0xff] (!%p244_p8)  }
  0x2b   : > { %1503 = vmatpush3.bf16.msra.mxu1 %v2034_v31  ;;  %1482 = vmatprep.subr.bf16.mxu0 %v2040_v32  ;;  %v2137_v48 = vld [vmem:[%s2388_s1 + $0x70] sm:$0xff]   ;;  %v2161_v52 = vld [vmem:[%s2388_s1 + $0x78] sm:$0xff]   ;;  %v1804_v60 = vld [vmem:[%s2182_s6 + $0xc] ss:$20 sps:$4 sm:$0xff]   ;;  %s2398_s21 = smov (!%p292_p9, %s1386_s21), 3 }
  0x2c   : > { %1504 = vmatprep.subr.bf16.mxu1 %v2046_v33  ;;  %v2143_v49 = vld [vmem:[%s2388_s1 + $0xf0] sm:$0xff]   ;;  %v2167_v53 = vld [vmem:[%s2388_s1 + $0xf8] sm:$0xff]   ;;  %v2194_v61 = vld [vmem:[%s2388_s1 + $0x100] sm:$0xff]   ;;  %697 = vmatprep.mubr.bf16.mxu1 %v1804_v60  ;;  %s1387_s14 = sshll.u32 %s2398_s21, 2 }
  0x2d   : > { %v2149_v50 = vld [vmem:[%s2388_s1 + $0x30] sm:$0xff]   ;;  %v2173_v54 = vld [vmem:[%s2388_s1 + $0x38] sm:$0xff]   ;;  %v2200_v62 = vld [vmem:[%s2388_s1 + $0x108] sm:$0xff]   ;;  %s298_s26 = scalar_lea.vmem %s2390_s3, %s1387_s14 }
  0x2e   : > { %1483 = vmatpush3.bf16.msra.mxu0 %v2052_v34  ;;  %v2155_v51 = vld [vmem:[%s2388_s1 + $0xb0] sm:$0xff]   ;;  %v2179_v55 = vld [vmem:[%s2388_s1 + $0xb8] sm:$0xff]   ;;  %v1812_v63 = vld [vmem:[%s2182_s6 + $0x2c] ss:$20 sps:$4 sm:$0xff]  }
  0x2f   : > { %1505 = vmatpush3.bf16.msra.mxu1 %v2058_v35  ;;  %1484 = vmatprep.subr.bf16.mxu0 %v2064_v36  ;;  %v1799_v56 = vld [vmem:[%s2182_s6] ss:$20 sps:$4 sm:$0xff]   ;;  %v1801_v57 = vld [vmem:[%s2182_s6 + $0x4] ss:$20 sps:$4 sm:$0xff]   ;;  %v1802_v59 = vld [vmem:[%s2182_s6 + $0x8] ss:$20 sps:$4 sm:$0xff]  }
  0x30   : > { %1506 = vmatprep.subr.bf16.mxu1 %v2070_v37  ;;  %656 = vmatprep.mubr.bf16.mxu0 %v1801_v57  ;;  %v2212_v0 = vld [vmem:[%s2388_s1 + $0x110] sm:$0xff]   ;;  %v2221_v1 = vld [vmem:[%s2388_s1 + $0x118] sm:$0xff]  }
  0x31   : > { %v1809_v2 = vld [vmem:[%s2182_s6 + $0x10] ss:$20 sps:$4 sm:$0xff]   ;;  %v1815_v3 = vld [vmem:[%s2182_s6 + $0x34] ss:$20 sps:$4 sm:$0xff]   ;;  %v1816_v6 = vld [vmem:[%s2182_s6 + $0x38] ss:$20 sps:$4 sm:$0xff]  }
  0x32   : > { %1485 = vmatpush3.bf16.msra.mxu0 %v2076_v38  ;;  %v1810_v4 = vld [vmem:[%s2182_s6 + $0x28] ss:$20 sps:$4 sm:$0xff]   ;;  %v1813_v5 = vld [vmem:[%s2182_s6 + $0x30] ss:$20 sps:$4 sm:$0xff]   ;;  %v1820_v10 = vld [vmem:[%s2182_s6 + $0x58] ss:$20 sps:$4 sm:$0xff]  }
  0x33   : > { %1507 = vmatpush3.bf16.msra.mxu1 %v2082_v39  ;;  %1486 = vmatprep.subr.bf16.mxu0 %v2088_v40  ;;  %v1819_v7 = vld [vmem:[%s2182_s6 + $0x54] ss:$20 sps:$4 sm:$0xff]   ;;  %v1822_v8 = vld [vmem:[%s2182_s6 + $0x5c] ss:$20 sps:$4 sm:$0xff]   ;;  %v1829_v13 = vld [vmem:[%s2182_s6 + $0x84] ss:$20 sps:$4 sm:$0xff]  }
  0x34   : > { %1508 = vmatprep.subr.bf16.mxu1 %v2094_v41  ;;  %v1817_v9 = vld [vmem:[%s2182_s6 + $0x50] ss:$20 sps:$4 sm:$0xff]   ;;  %v1823_v12 = vld [vmem:[%s2182_s6 + $0x60] ss:$20 sps:$4 sm:$0xff]   ;;  %v1824_v14 = vld [vmem:[%s2182_s6 + $0x78] ss:$20 sps:$4 sm:$0xff]  }
  0x35   : > { %v1826_v11 = vld [vmem:[%s2182_s6 + $0x7c] ss:$20 sps:$4 sm:$0xff]   ;;  %v1827_v15 = vld [vmem:[%s2182_s6 + $0x80] ss:$20 sps:$4 sm:$0xff]  }
  0x36   : > { %1487 = vmatpush3.bf16.msra.mxu0 %v2100_v42  ;;  %v1830_v16 = vld [vmem:[%s2182_s6 + $0x88] ss:$20 sps:$4 sm:$0xff]  }
  0x37   : > { %1509 = vmatpush3.bf16.msra.mxu1 %v2106_v43  ;;  %1488 = vmatprep.subr.bf16.mxu0 %v2112_v44 }
  0x38   : > { %1510 = vmatprep.subr.bf16.mxu1 %v2118_v45 }
  0x3a   : > { %1489 = vmatpush3.bf16.msra.mxu0 %v2124_v46 }
  0x3b   : > { %1511 = vmatpush3.bf16.msra.mxu1 %v2131_v47  ;;  %1490 = vmatprep.subr.bf16.mxu0 %v2137_v48 }
  0x3c   : > { %1512 = vmatprep.subr.bf16.mxu1 %v2143_v49 }
  0x3e   : > { %1491 = vmatpush3.bf16.msra.mxu0 %v2149_v50 }
  0x3f   : > { %1513 = vmatpush3.bf16.msra.mxu1 %v2155_v51  ;;  %1492 = vmatprep.subr.bf16.mxu0 %v2161_v52 }
  0x40   : > { %1514 = vmatprep.subr.bf16.mxu1 %v2167_v53 }
  0x42   : > { %1493 = vmatpush3.bf16.msra.mxu0 %v2173_v54 }
  0x43   : > { %1515 = vmatpush3.bf16.msra.mxu1 %v2179_v55  ;;  %1674 = vmatprep.subr.bf16.mxu0 %v1871_v58 }
  0x44   : > { %1527 = vmatprep.subr.bf16.mxu1 %v1993_v24 }
  0x45   : > { %657 = vmatmul.mubr.bf16.vlgmr.msra.gmra.mrb[0].mxu0 %v1799_v56 }
  0x46   : > { %698 = vmatmul.mubr.bf16.vlgmr.msra.gmra.mrb[0].mxu1 %v1802_v59  ;;  %1675 = vmatpush3.bf16.msra.mxu0 %v2194_v61 }
  0x47   : > { %1528 = vmatpush3.bf16.msra.mxu1 %v2004_v26  ;;  %1676 = vmatprep.subr.bf16.mxu0 %v1871_v58 }
  0x48   : > { %1529 = vmatprep.subr.bf16.mxu1 %v2016_v28  ;;  %1682 = vmatprep.mubr.msk.bf16.mxu0 %vm1872_vm0, %v1871_v58 }
  0x49   : > { %814 = vmatprep.mubr.bf16.mxu1 %v1812_v63 }
  0x4a   : > { %1677 = vmatpush3.bf16.msra.mxu0 %v2200_v62 }
  0x4b   : > { %1530 = vmatpush3.bf16.msra.mxu1 %v2028_v30  ;;  %1678 = vmatprep.subr.bf16.mxu0 %v1871_v58 }
  0x4c   : > { %1531 = vmatprep.subr.bf16.mxu1 %v2040_v32 }
  0x4e   : > { %1679 = vmatpush3.bf16.msra.mxu0 %v2212_v0 }
  0x4f   : > { %1532 = vmatpush3.bf16.msra.mxu1 %v2052_v34  ;;  %1680 = vmatprep.subr.bf16.mxu0 %v1871_v58 }
  0x50   : > { %1533 = vmatprep.subr.bf16.mxu1 %v2064_v36 }
  0x52   : > { %1681 = vmatpush3.bf16.msra.mxu0 %v2221_v1 }
  0x53   : > { %1534 = vmatpush3.bf16.msra.mxu1 %v2076_v38  ;;  %1549 = vmatprep.subr.bf16.mxu0 %v1998_v25 }
  0x54   : > { %1535 = vmatprep.subr.bf16.mxu1 %v2088_v40 }
  0x55   : > { %1683 = vmatmul.mubr.msk.bf16.vlgmr.msra.gmra.mrb[4].mxu0 %vm620_vm1, %v1809_v2 }
  0x56   : > { %1550 = vmatpush3.bf16.msra.mxu0 %v2010_v27  ;;  %855 = vmatprep.mubr.bf16.mxu0 %v1815_v3 }
  0x57   : > { %1536 = vmatpush3.bf16.msra.mxu1 %v2100_v42  ;;  %1551 = vmatprep.subr.bf16.mxu0 %v2022_v29 }
  0x58   : > { %1537 = vmatprep.subr.bf16.mxu1 %v2112_v44 }
  0x5a   : > { %1552 = vmatpush3.bf16.msra.mxu0 %v2034_v31 }
  0x5b   : > { %1538 = vmatpush3.bf16.msra.mxu1 %v2124_v46  ;;  %1553 = vmatprep.subr.bf16.mxu0 %v2046_v33 }
  0x5c   : > { %1539 = vmatprep.subr.bf16.mxu1 %v2137_v48 }
  0x5e   : > { %1554 = vmatpush3.bf16.msra.mxu0 %v2058_v35 }
  0x5f   : > { %1540 = vmatpush3.bf16.msra.mxu1 %v2149_v50  ;;  %1555 = vmatprep.subr.bf16.mxu0 %v2070_v37 }
  0x60   : > { %1541 = vmatprep.subr.bf16.mxu1 %v2161_v52 }
  0x62   : > { %1556 = vmatpush3.bf16.msra.mxu0 %v2082_v39 }
  0x63   : > { %1542 = vmatpush3.bf16.msra.mxu1 %v2173_v54  ;;  %1557 = vmatprep.subr.bf16.mxu0 %v2094_v41 }
  0x64   : > { %1686 = vmatprep.subr.bf16.mxu1 %v1871_v58 }
  0x66   : > { %815 = vmatmul.mubr.bf16.vlgmr.msra.gmra.mrb[4].mxu1 %v1810_v4  ;;  %1558 = vmatpush3.bf16.msra.mxu0 %v2106_v43 }
  0x67   : > { %1687 = vmatpush3.bf16.msra.mxu1 %v2194_v61  ;;  %1559 = vmatprep.subr.bf16.mxu0 %v2118_v45 }
  0x68   : > { %1688 = vmatprep.subr.bf16.mxu1 %v1871_v58  ;;  %1694 = vmatprep.mubr.msk.bf16.mxu1 %vm1872_vm0, %v1871_v58 }
  0x6a   : > { %1560 = vmatpush3.bf16.msra.mxu0 %v2131_v47 }
  0x6b   : > { %1689 = vmatpush3.bf16.msra.mxu1 %v2200_v62  ;;  %1561 = vmatprep.subr.bf16.mxu0 %v2143_v49 }
  0x6c   : > { %1690 = vmatprep.subr.bf16.mxu1 %v1871_v58 }
  0x6e   : > { %1562 = vmatpush3.bf16.msra.mxu0 %v2155_v51 }
  0x6f   : > { %1691 = vmatpush3.bf16.msra.mxu1 %v2212_v0  ;;  %1563 = vmatprep.subr.bf16.mxu0 %v2167_v53 }
  0x70   : > { %1692 = vmatprep.subr.bf16.mxu1 %v1871_v58 }
  0x72   : > { %1564 = vmatpush3.bf16.msra.mxu0 %v2179_v55 }
  0x73   : > { %1693 = vmatpush3.bf16.msra.mxu1 %v2221_v1  ;;  %1576 = vmatprep.subr.bf16.mxu0 %v1993_v24 }
  0x74   : > { %1598 = vmatprep.subr.bf16.mxu1 %v1998_v25 }
  0x75   : > { %856 = vmatmul.mubr.bf16.vlgmr.msra.gmra.mrb[8].mxu0 %v1813_v5 }
  0x76   : > { %1695 = vmatmul.mubr.msk.bf16.vlgmr.msra.gmra.mrb[8].mxu1 %vm620_vm1, %v1816_v6  ;;  %1577 = vmatpush3.bf16.msra.mxu0 %v2004_v26 }
  0x77   : > { %1599 = vmatpush3.bf16.msra.mxu1 %v2010_v27  ;;  %1578 = vmatprep.subr.bf16.mxu0 %v2016_v28 }
  0x78   : > { %1600 = vmatprep.subr.bf16.mxu1 %v2022_v29  ;;  %974 = vmatprep.mubr.bf16.mxu0 %v1819_v7 }
  0x79   : > { %1015 = vmatprep.mubr.bf16.mxu1 %v1822_v8 }
  0x7a   : > { %1579 = vmatpush3.bf16.msra.mxu0 %v2028_v30 }
  0x7b   : > { %1601 = vmatpush3.bf16.msra.mxu1 %v2034_v31  ;;  %1580 = vmatprep.subr.bf16.mxu0 %v2040_v32 }
  0x7c   : > { %1602 = vmatprep.subr.bf16.mxu1 %v2046_v33 }
  0x7e   : > { %1581 = vmatpush3.bf16.msra.mxu0 %v2052_v34 }
  0x7f   : > { %1603 = vmatpush3.bf16.msra.mxu1 %v2058_v35  ;;  %1582 = vmatprep.subr.bf16.mxu0 %v2064_v36 }
  0x80   : > { %1604 = vmatprep.subr.bf16.mxu1 %v2070_v37 }
  0x82   : > { %1583 = vmatpush3.bf16.msra.mxu0 %v2076_v38 }
  0x83   : > { %1605 = vmatpush3.bf16.msra.mxu1 %v2082_v39  ;;  %1584 = vmatprep.subr.bf16.mxu0 %v2088_v40 }
  0x84   : > { %1606 = vmatprep.subr.bf16.mxu1 %v2094_v41 }
  0x86   : > { %1585 = vmatpush3.bf16.msra.mxu0 %v2100_v42 }
  0x87   : > { %1607 = vmatpush3.bf16.msra.mxu1 %v2106_v43  ;;  %1586 = vmatprep.subr.bf16.mxu0 %v2112_v44 }
  0x88   : > { %1608 = vmatprep.subr.bf16.mxu1 %v2118_v45 }
  0x8a   : > { %1587 = vmatpush3.bf16.msra.mxu0 %v2124_v46 }
  0x8b   : > { %1609 = vmatpush3.bf16.msra.mxu1 %v2131_v47  ;;  %1588 = vmatprep.subr.bf16.mxu0 %v2137_v48 }
  0x8c   : > { %1610 = vmatprep.subr.bf16.mxu1 %v2143_v49 }
  0x8e   : > { %1589 = vmatpush3.bf16.msra.mxu0 %v2149_v50 }
  0x8f   : > { %1611 = vmatpush3.bf16.msra.mxu1 %v2155_v51  ;;  %1590 = vmatprep.subr.bf16.mxu0 %v2161_v52 }
  0x90   : > { %1612 = vmatprep.subr.bf16.mxu1 %v2167_v53 }
  0x92   : > { %1591 = vmatpush3.bf16.msra.mxu0 %v2173_v54 }
  0x93   : > { %1613 = vmatpush3.bf16.msra.mxu1 %v2179_v55  ;;  %1698 = vmatprep.subr.bf16.mxu0 %v1871_v58 }
  0x94   : > { %1625 = vmatprep.subr.bf16.mxu1 %v1993_v24 }
  0x95   : > { %975 = vmatmul.mubr.bf16.vlgmr.msra.gmra.mrb[12].mxu0 %v1817_v9 }
  0x96   : > { %1016 = vmatmul.mubr.bf16.vlgmr.msra.gmra.mrb[12].mxu1 %v1820_v10  ;;  %1699 = vmatpush3.bf16.msra.mxu0 %v2194_v61 }
  0x97   : > { %1626 = vmatpush3.bf16.msra.mxu1 %v2004_v26  ;;  %1700 = vmatprep.subr.bf16.mxu0 %v1871_v58 }
  0x98   : > { %1627 = vmatprep.subr.bf16.mxu1 %v2016_v28  ;;  %1706 = vmatprep.mubr.msk.bf16.mxu0 %vm1872_vm0, %v1871_v58 }
  0x99   : > { %1134 = vmatprep.mubr.bf16.mxu1 %v1826_v11 }
  0x9a   : > { %1701 = vmatpush3.bf16.msra.mxu0 %v2200_v62 }
  0x9b   : > { %1628 = vmatpush3.bf16.msra.mxu1 %v2028_v30  ;;  %1702 = vmatprep.subr.bf16.mxu0 %v1871_v58 }
  0x9c   : > { %1629 = vmatprep.subr.bf16.mxu1 %v2040_v32 }
  0x9e   : > { %1703 = vmatpush3.bf16.msra.mxu0 %v2212_v0 }
  0x9f   : > { %1630 = vmatpush3.bf16.msra.mxu1 %v2052_v34  ;;  %1704 = vmatprep.subr.bf16.mxu0 %v1871_v58 }
  0xa0   : > { %1631 = vmatprep.subr.bf16.mxu1 %v2064_v36 }
  0xa2   : > { %1705 = vmatpush3.bf16.msra.mxu0 %v2221_v1 }
  0xa3   : > { %1632 = vmatpush3.bf16.msra.mxu1 %v2076_v38  ;;  %1647 = vmatprep.subr.bf16.mxu0 %v1998_v25 }
  0xa4   : > { %1633 = vmatprep.subr.bf16.mxu1 %v2088_v40 }
  0xa5   : > { %1707 = vmatmul.mubr.msk.bf16.vlgmr.msra.gmra.mrb[16].mxu0 %vm620_vm1, %v1823_v12 }
  0xa6   : > { %1648 = vmatpush3.bf16.msra.mxu0 %v2010_v27  ;;  %1175 = vmatprep.mubr.bf16.mxu0 %v1829_v13 }
  0xa7   : > { %1634 = vmatpush3.bf16.msra.mxu1 %v2100_v42  ;;  %1649 = vmatprep.subr.bf16.mxu0 %v2022_v29 }
  0xa8   : > { %1635 = vmatprep.subr.bf16.mxu1 %v2112_v44 }
  0xaa   : > { %1650 = vmatpush3.bf16.msra.mxu0 %v2034_v31 }
  0xab   : > { %1636 = vmatpush3.bf16.msra.mxu1 %v2124_v46  ;;  %1651 = vmatprep.subr.bf16.mxu0 %v2046_v33 }
  0xac   : > { %1637 = vmatprep.subr.bf16.mxu1 %v2137_v48 }
  0xae   : > { %1652 = vmatpush3.bf16.msra.mxu0 %v2058_v35 }
  0xaf   : > { %1638 = vmatpush3.bf16.msra.mxu1 %v2149_v50  ;;  %1653 = vmatprep.subr.bf16.mxu0 %v2070_v37 }
  0xb0   : > { %1639 = vmatprep.subr.bf16.mxu1 %v2161_v52 }
  0xb2   : > { %1654 = vmatpush3.bf16.msra.mxu0 %v2082_v39 }
  0xb3   : > { %1640 = vmatpush3.bf16.msra.mxu1 %v2173_v54  ;;  %1655 = vmatprep.subr.bf16.mxu0 %v2094_v41 }
  0xb4   : > { %1710 = vmatprep.subr.bf16.mxu1 %v1871_v58 }
  0xb6   : > { %1656 = vmatpush3.bf16.msra.mxu0 %v2106_v43  ;;  %1135 = vmatmul.mubr.bf16.vlgmr.msra.gmra.mrb[16].mxu1 %v1824_v14 }
  0xb7   : > { %1711 = vmatpush3.bf16.msra.mxu1 %v2194_v61  ;;  %1657 = vmatprep.subr.bf16.mxu0 %v2118_v45 }
  0xb8   : > { %1712 = vmatprep.subr.bf16.mxu1 %v1871_v58  ;;  %1718 = vmatprep.mubr.msk.bf16.mxu1 %vm1872_vm0, %v1871_v58 }
  0xba   : > { %1658 = vmatpush3.bf16.msra.mxu0 %v2131_v47 }
  0xbb   : > { %1713 = vmatpush3.bf16.msra.mxu1 %v2200_v62  ;;  %1659 = vmatprep.subr.bf16.mxu0 %v2143_v49 }
  0xbc   : > { %1714 = vmatprep.subr.bf16.mxu1 %v1871_v58 }
  0xbe   : > { %1660 = vmatpush3.bf16.msra.mxu0 %v2155_v51 }
  0xbf   : > { %1715 = vmatpush3.bf16.msra.mxu1 %v2212_v0  ;;  %1661 = vmatprep.subr.bf16.mxu0 %v2167_v53 }
  0xc0   : > { %1716 = vmatprep.subr.bf16.mxu1 %v1871_v58 }
  0xc2   : > { %1662 = vmatpush3.bf16.msra.mxu0 %v2179_v55 }
  0xc3   : > { %1717 = vmatpush3.bf16.msra.mxu1 %v2221_v1 }
  0xc5   : > { %1176 = vmatmul.mubr.bf16.vlgmr.msra.gmra.mrb[20].mxu0 %v1827_v15 }
  0xc6   : > { %1719 = vmatmul.mubr.msk.bf16.vlgmr.msra.gmra.mrb[20].mxu1 %vm620_vm1, %v1830_v16 }
 0x118   : > { %v1494_v17 = vpop.f32.mrb[0].mxu0 }
 0x119   : > { %v1516_v18 = vpop.f32.mrb[0].mxu1  ;;  %v1495_v19 = vpop.f32.mrb[1].mxu0 }
 0x11a   : > { %v1496_v20 = vadd.f32 %v1495_v19, %v1494_v17  ;;  %v1517_v21 = vpop.f32.mrb[1].mxu1  ;;  %v1497_v22 = vpop.f32.mrb[2].mxu0 }
 0x11b   : > { %v1518_v23 = vadd.f32 %v1517_v21, %v1516_v18  ;;  %v1519_v24 = vpop.f32.mrb[2].mxu1  ;;  %v1498_v25 = vpop.f32.mrb[3].mxu0 }
 0x11c   : > { %v1499_v26 = vadd.f32 %v1498_v25, %v1497_v22  ;;  %v1520_v27 = vpop.f32.mrb[3].mxu1 }
 0x11d   : > { %v1521_v28 = vadd.f32 %v1520_v27, %v1519_v24  ;;  %v700_v29 = vadd.f32 %v1518_v23, %v1496_v20 }
 0x11f   : > { %v703_v30 = vadd.f32 %v1521_v28, %v1499_v26 }
 0x128   : > { %v740_v31 = vpop.f32.mrb[4].mxu0 }
 0x129   : > { %v741_v32 = vadd.f32 %v740_v31, %v700_v29  ;;  %v1684_v33 = vpop.f32.mrb[5].mxu0 }
 0x12a   : > { %v743_v34 = vpop.f32.mrb[6].mxu0 }
 0x12b   : > { %v744_v35 = vadd.f32 %v743_v34, %v703_v30  ;;  %v1685_v36 = vpop.f32.mrb[7].mxu0 }
 0x12c   : > { %v1466_v36 = vld [vmem:[%s2389_s2] ss:$0 sm:$0xff] }
 0x139   : > { %v1543_v37 = vpop.f32.mrb[4].mxu1 }
 0x13a   : > { %v1544_v38 = vpop.f32.mrb[5].mxu1 }
 0x13b   : > { %v1545_v39 = vadd.f32 %v1544_v38, %v1543_v37  ;;  %v1546_v40 = vpop.f32.mrb[6].mxu1 }
 0x13c   : > { %v1547_v41 = vpop.f32.mrb[7].mxu1 }
 0x13d   : > { %v1548_v42 = vadd.f32 %v1547_v41, %v1546_v40 }
 0x148   : > { %v1565_v43 = vpop.f32.mrb[8].mxu0 }
 0x149   : > { %v1566_v44 = vpop.f32.mrb[9].mxu0  ;;  %v898_v45 = vpop.f32.mrb[8].mxu1 }
 0x14a   : > { %v1567_v46 = vadd.f32 %v1566_v44, %v1565_v43  ;;  %v1568_v47 = vpop.f32.mrb[10].mxu0  ;;  %v1696_v48 = vpop.f32.mrb[9].mxu1 }
 0x14b   : > { %v1569_v49 = vpop.f32.mrb[11].mxu0  ;;  %v901_v50 = vpop.f32.mrb[10].mxu1 }
 0x14c   : > { %v1570_v51 = vadd.f32 %v1569_v49, %v1568_v47  ;;  %v858_v52 = vadd.f32 %v1567_v46, %v1545_v39  ;;  %v1697_v53 = vpop.f32.mrb[11].mxu1 }
 0x14e   : > { %v899_v54 = vadd.f32 %v898_v45, %v858_v52  ;;  %v861_v55 = vadd.f32 %v1570_v51, %v1548_v42 }
 0x150   : > { %v905_v56 = vmax.f32 %v741_v32, %v899_v54  ;;  %v902_v57 = vadd.f32 %v901_v50, %v861_v55 }
 0x152   : > { %v906_v58 = vmax.f32 %v744_v35, %v902_v57 }
 0x168   : > { %v1592_v59 = vpop.f32.mrb[12].mxu0 }
 0x169   : > { %v1614_v60 = vpop.f32.mrb[12].mxu1  ;;  %v1593_v61 = vpop.f32.mrb[13].mxu0 }
 0x16a   : > { %v1594_v62 = vadd.f32 %v1593_v61, %v1592_v59  ;;  %v1615_v63 = vpop.f32.mrb[13].mxu1  ;;  %v1595_v0 = vpop.f32.mrb[14].mxu0 }
 0x16b   : > { %v1616_v1 = vadd.f32 %v1615_v63, %v1614_v60  ;;  %v1617_v2 = vpop.f32.mrb[14].mxu1  ;;  %v1596_v3 = vpop.f32.mrb[15].mxu0 }
 0x16c   : > { %v1597_v4 = vadd.f32 %v1596_v3, %v1595_v0  ;;  %v1618_v5 = vpop.f32.mrb[15].mxu1 }
 0x16d   : > { %v1619_v6 = vadd.f32 %v1618_v5, %v1617_v2  ;;  %v1018_v7 = vadd.f32 %v1616_v1, %v1594_v62 }
 0x16f   : > { %v1021_v8 = vadd.f32 %v1619_v6, %v1597_v4 }
 0x178   : > { %v1058_v9 = vpop.f32.mrb[16].mxu0 }
 0x179   : > { %v1059_v10 = vadd.f32 %v1058_v9, %v1018_v7  ;;  %v1708_v11 = vpop.f32.mrb[17].mxu0 }
 0x17a   : > { %v1061_v12 = vpop.f32.mrb[18].mxu0 }
 0x17b   : > { %v1065_v13 = vmax.f32 %v905_v56, %v1059_v10  ;;  %v1062_v14 = vadd.f32 %v1061_v12, %v1021_v8  ;;  %v1709_v15 = vpop.f32.mrb[19].mxu0 }
 0x17d   : > { %v1066_v16 = vmax.f32 %v906_v58, %v1062_v14 }
 0x189   : > { %v1641_v17 = vpop.f32.mrb[16].mxu1 }
 0x18a   : > { %v1642_v18 = vpop.f32.mrb[17].mxu1 }
 0x18b   : > { %v1643_v19 = vadd.f32 %v1642_v18, %v1641_v17  ;;  %v1644_v20 = vpop.f32.mrb[18].mxu1 }
 0x18c   : > { %v1645_v21 = vpop.f32.mrb[19].mxu1 }
 0x18d   : > { %v1646_v22 = vadd.f32 %v1645_v21, %v1644_v20 }
 0x198   : > { %v1663_v23 = vpop.f32.mrb[20].mxu0 }
 0x199   : > { %v1664_v24 = vpop.f32.mrb[21].mxu0  ;;  %v1218_v25 = vpop.f32.mrb[20].mxu1 }
 0x19a   : > { %v1665_v26 = vadd.f32 %v1664_v24, %v1663_v23  ;;  %v1666_v27 = vpop.f32.mrb[22].mxu0  ;;  %v1720_v28 = vpop.f32.mrb[21].mxu1 }
 0x19b   : > { %v1667_v29 = vpop.f32.mrb[23].mxu0  ;;  %v1221_v30 = vpop.f32.mrb[22].mxu1 }
 0x19c   : > { %v1178_v31 = vadd.f32 %v1665_v26, %v1643_v19  ;;  %v1668_v32 = vadd.f32 %v1667_v29, %v1666_v27  ;;  %v1721_v33 = vpop.f32.mrb[23].mxu1 }
 0x19e   : > { %v1219_v34 = vadd.f32 %v1218_v25, %v1178_v31  ;;  %v1181_v35 = vadd.f32 %v1668_v32, %v1646_v22 }
 0x1a0   : > { %v1225_v37 = vmax.f32 %v1065_v13, %v1219_v34  ;;  %v1222_v38 = vadd.f32 %v1221_v30, %v1181_v35 }
 0x1a2   : > { %v1234_v39 = vadd.f32 %v1466_v36, %v1225_v37  ;;  %v1226_v40 = vmax.f32 %v1066_v16, %v1222_v38 }
 0x1a4   : > { %v1235_v41 = vadd.f32 %v1466_v36, %v1226_v40  ;;  %v1236_v42 = vmax.f32 %v1234_v39, 0.0 }
 0x1a6   : > { %v1237_v43 = vmax.f32 %v1235_v41, 0.0 }
 0x1a8   : > { %v1476_v44 = vpack.c.bf16 %v1237_v43, %v1236_v42 }
 0x1aa   : > { %1477 = vst [vmem:[%s298_s26] sm:$0xff] %v1476_v44  }
 0x1ab PF: > { %s13_s16 = sadd.s32 1, %s1869_s16   ;;  %s2391_s12 = smov %s1857_s13 }
 0x1ac   : > { %p10_p10 = scmp.ge.s32.totalorder %s13_s16, 4   ;;  %s2392_s13 = smov %s1928_s20 }
 0x1ad   : > { %s2393_s14 = smov %s1865_s15  ;;  %s2394_s15 = smov %s2396_s17 }
 0x1ae   :  { %12 = sbr.rel (!%p10_p10) target bundleno = 3 (0x3), region = 108 }

// kernel: vgg_forward.7
= control target key start
LH: loop header
LB: loop body
LE: loop exit
PB: predicated region body
PF: predicated region fallthrough
CT: control target
= control target key end

     0   :  { %s3312_s12 = smov 0   ;;  %s3314_s13 = smov 0   ;;  %s4324_s0 = inlined_call_operand.vmem [shape: bf16[4,8,1152], index: 0, kind: input, shape index: {}]   ;;  %s4325_s1 = inlined_call_operand.vmem [shape: bf16[1152,256], index: 1, kind: input, shape index: {}]   ;;  %s4326_s2 = inlined_call_operand.vmem [shape: f32[1,256], index: 2, kind: input, shape index: {}]   ;;  %s4327_s3 = inlined_call_operand.vmem [shape: bf16[8,256], index: 3, kind: output, shape index: {}]  }
   0x1   :  { %s3316_s14 = smov 0   ;;  %s3318_s15 = smov 0  }
   0x2   :  { %s3320_s16 = smov 0  }
   0x3 LB: > { %s25_s17 = sadd.s32 1, %s3284_s15  ;;  %p65_p1 = scmp.ne.s32.totalorder %s3276_s13, %s3272_s12  ;;  %s3288_s16 = sphi %s3320_s16, %s13_s16   ;;  %s3284_s15 = sphi %s3318_s15, %s4431_s15   ;;  %s3280_s14 = sphi %s3316_s14, %s4430_s14   ;;  %s3276_s13 = sphi %s3314_s13, %s4429_s13   ;;  %s3272_s12 = sphi %s3312_s12, %s4428_s12  }
   0x4   : > { %p27_p0 = scmp.ge.s32.totalorder %s25_s17, 2  ;;  %p66_p2 = scmp.eq.s32.totalorder %s3288_s16, 0 }
   0x5   : > { %s58_s19 = sadd.s32 1, %s3276_s13  ;;  %p2492_p5 = scmp.ge.s32.totalorder %s3288_s16, 2 }
   0x6   : > { %s4433_s17 = smov (%p27_p0, %s25_s17), 0  ;;  %p67_p3 = por %p66_p2, %p65_p1 }
   0x7   : > { %s55_s18 = ssub.s32 %s3284_s15, %s4433_s17  ;;  %153 = sbr.rel (%p2492_p5) target bundleno = 114 (0x72), region = 20 }
   0x8   : > { %p56_p4 = scmp.eq.s32.totalorder %s55_s18, 0 }
   0xa   : > { %s3347_s20 = scalar_select %p56_p4, %s3276_s13, %s58_s19  }
   0xe   : > { %156 = sbr.rel (!%p67_p3) target bundleno = 114 (0x72), region = 24  ;;  %s158_s21 = sand.u32 (%p67_p3), 1, %s3276_s13  }
   0xf   : > { %s2493_s22 = sshll.u32 (%p67_p3), %s3284_s15, 2  ;;  %s3090_s23 = smul.u32 (%p67_p3), 576, %s158_s21 }
  0x10   : > { %s3355_s26 = scalar_lea.vmem (%p67_p3), %s4325_s1, %s2493_s22 }
  0x11   : > { %v178_v0 = vld [vmem:[%s3355_s26] sm:$0xf] (%p67_p3)  ;;  %v180_v1 = vld [vmem:[%s3355_s26 + $0x8] sm:$0xf] (%p67_p3)  ;;  %v182_v2 = vld [vmem:[%s3355_s26 + $0x10] sm:$0xf] (%p67_p3) }
  0x12   : > { %v184_v3 = vld [vmem:[%s3355_s26 + $0x18] sm:$0xf] (%p67_p3)  ;;  %v186_v4 = vld [vmem:[%s3355_s26 + $0x20] sm:$0xf] (%p67_p3)  ;;  %s3362_s27 = scalar_lea.vmem (%p67_p3), [#allocation2], %s3090_s23 }
  0x13   : > { %179 = vst [vmem:[%s3362_s27] sm:$0xf] (%p67_p3), %v178_v0  ;;  %181 = vst [vmem:[%s3362_s27 + $0x4] sm:$0xf] (%p67_p3), %v180_v1  ;;  %v188_v5 = vld [vmem:[%s3355_s26 + $0x28] sm:$0xf] (%p67_p3) }
  0x14   : > { %183 = vst [vmem:[%s3362_s27 + $0x8] sm:$0xf] (%p67_p3), %v182_v2  ;;  %185 = vst [vmem:[%s3362_s27 + $0xc] sm:$0xf] (%p67_p3), %v184_v3  ;;  %v190_v6 = vld [vmem:[%s3355_s26 + $0x30] sm:$0xf] (%p67_p3) }
  0x15   : > { %187 = vst [vmem:[%s3362_s27 + $0x10] sm:$0xf] %v186_v4  ;;  %v192_v7 = vld [vmem:[%s3355_s26 + $0x38] sm:$0xf]  ;;  %189 = vst [vmem:[%s3362_s27 + $0x14] sm:$0xf] %v188_v5 }
  0x16   : > { %191 = vst [vmem:[%s3362_s27 + $0x18] sm:$0xf] %v190_v6  ;;  %193 = vst [vmem:[%s3362_s27 + $0x1c] sm:$0xf] %v192_v7  ;;  %v194_v8 = vld [vmem:[%s3355_s26 + $0x40] sm:$0xf] }
  0x17   : > { %v196_v9 = vld [vmem:[%s3355_s26 + $0x48] sm:$0xf]  ;;  %v198_v10 = vld [vmem:[%s3355_s26 + $0x50] sm:$0xf]  ;;  %195 = vst [vmem:[%s3362_s27 + $0x20] sm:$0xf] %v194_v8 }
  0x18   : > { %197 = vst [vmem:[%s3362_s27 + $0x24] sm:$0xf] %v196_v9  ;;  %199 = vst [vmem:[%s3362_s27 + $0x28] sm:$0xf] %v198_v10  ;;  %v200_v11 = vld [vmem:[%s3355_s26 + $0x58] sm:$0xf] }
  0x19   : > { %v202_v12 = vld [vmem:[%s3355_s26 + $0x60] sm:$0xf]  ;;  %v204_v13 = vld [vmem:[%s3355_s26 + $0x68] sm:$0xf]  ;;  %201 = vst [vmem:[%s3362_s27 + $0x2c] sm:$0xf] %v200_v11 }
  0x1a   : > { %203 = vst [vmem:[%s3362_s27 + $0x30] sm:$0xf] %v202_v12  ;;  %205 = vst [vmem:[%s3362_s27 + $0x34] sm:$0xf] %v204_v13  ;;  %v206_v14 = vld [vmem:[%s3355_s26 + $0x70] sm:$0xf] }
  0x1b   : > { %v208_v15 = vld [vmem:[%s3355_s26 + $0x78] sm:$0xf]  ;;  %v210_v16 = vld [vmem:[%s3355_s26 + $0x80] sm:$0xf]  ;;  %207 = vst [vmem:[%s3362_s27 + $0x38] sm:$0xf] %v206_v14 }
  0x1c   : > { %209 = vst [vmem:[%s3362_s27 + $0x3c] sm:$0xf] %v208_v15  ;;  %211 = vst [vmem:[%s3362_s27 + $0x40] sm:$0xf] %v210_v16  ;;  %v212_v17 = vld [vmem:[%s3355_s26 + $0x88] sm:$0xf] }
  0x1d   : > { %v214_v18 = vld [vmem:[%s3355_s26 + $0x90] sm:$0xf]  ;;  %v216_v19 = vld [vmem:[%s3355_s26 + $0x98] sm:$0xf]  ;;  %213 = vst [vmem:[%s3362_s27 + $0x44] sm:$0xf] %v212_v17 }
  0x1e   : > { %215 = vst [vmem:[%s3362_s27 + $0x48] sm:$0xf] %v214_v18  ;;  %217 = vst [vmem:[%s3362_s27 + $0x4c] sm:$0xf] %v216_v19  ;;  %v218_v20 = vld [vmem:[%s3355_s26 + $0xa0] sm:$0xf] }
  0x1f   : > { %v220_v21 = vld [vmem:[%s3355_s26 + $0xa8] sm:$0xf]  ;;  %v222_v22 = vld [vmem:[%s3355_s26 + $0xb0] sm:$0xf]  ;;  %219 = vst [vmem:[%s3362_s27 + $0x50] sm:$0xf] %v218_v20 }
  0x20   : > { %221 = vst [vmem:[%s3362_s27 + $0x54] sm:$0xf] %v220_v21  ;;  %223 = vst [vmem:[%s3362_s27 + $0x58] sm:$0xf] %v222_v22  ;;  %v224_v23 = vld [vmem:[%s3355_s26 + $0xb8] sm:$0xf] }
  0x21   : > { %v226_v24 = vld [vmem:[%s3355_s26 + $0xc0] sm:$0xf]  ;;  %v228_v25 = vld [vmem:[%s3355_s26 + $0xc8] sm:$0xf]  ;;  %225 = vst [vmem:[%s3362_s27 + $0x5c] sm:$0xf] %v224_v23 }
  0x22   : > { %227 = vst [vmem:[%s3362_s27 + $0x60] sm:$0xf] %v226_v24  ;;  %229 = vst [vmem:[%s3362_s27 + $0x64] sm:$0xf] %v228_v25  ;;  %v230_v26 = vld [vmem:[%s3355_s26 + $0xd0] sm:$0xf] }
  0x23   : > { %v232_v27 = vld [vmem:[%s3355_s26 + $0xd8] sm:$0xf]  ;;  %v234_v28 = vld [vmem:[%s3355_s26 + $0xe0] sm:$0xf]  ;;  %231 = vst [vmem:[%s3362_s27 + $0x68] sm:$0xf] %v230_v26 }
  0x24   : > { %233 = vst [vmem:[%s3362_s27 + $0x6c] sm:$0xf] %v232_v27  ;;  %235 = vst [vmem:[%s3362_s27 + $0x70] sm:$0xf] %v234_v28  ;;  %v236_v29 = vld [vmem:[%s3355_s26 + $0xe8] sm:$0xf] }
  0x25   : > { %v238_v30 = vld [vmem:[%s3355_s26 + $0xf0] sm:$0xf]  ;;  %v240_v31 = vld [vmem:[%s3355_s26 + $0xf8] sm:$0xf]  ;;  %237 = vst [vmem:[%s3362_s27 + $0x74] sm:$0xf] %v236_v29 }
  0x26   : > { %239 = vst [vmem:[%s3362_s27 + $0x78] sm:$0xf] %v238_v30  ;;  %241 = vst [vmem:[%s3362_s27 + $0x7c] sm:$0xf] %v240_v31  ;;  %v242_v32 = vld [vmem:[%s3355_s26 + $0x100] sm:$0xf] }
  0x27   : > { %v244_v33 = vld [vmem:[%s3355_s26 + $0x108] sm:$0xf]  ;;  %v246_v34 = vld [vmem:[%s3355_s26 + $0x110] sm:$0xf]  ;;  %243 = vst [vmem:[%s3362_s27 + $0x80] sm:$0xf] %v242_v32 }
  0x28   : > { %245 = vst [vmem:[%s3362_s27 + $0x84] sm:$0xf] %v244_v33  ;;  %247 = vst [vmem:[%s3362_s27 + $0x88] sm:$0xf] %v246_v34  ;;  %v248_v35 = vld [vmem:[%s3355_s26 + $0x118] sm:$0xf] }
  0x29   : > { %v250_v36 = vld [vmem:[%s3355_s26 + $0x120] sm:$0xf]  ;;  %v252_v37 = vld [vmem:[%s3355_s26 + $0x128] sm:$0xf]  ;;  %249 = vst [vmem:[%s3362_s27 + $0x8c] sm:$0xf] %v248_v35 }
  0x2a   : > { %251 = vst [vmem:[%s3362_s27 + $0x90] sm:$0xf] %v250_v36  ;;  %253 = vst [vmem:[%s3362_s27 + $0x94] sm:$0xf] %v252_v37  ;;  %v254_v38 = vld [vmem:[%s3355_s26 + $0x130] sm:$0xf] }
  0x2b   : > { %v256_v39 = vld [vmem:[%s3355_s26 + $0x138] sm:$0xf]  ;;  %v258_v40 = vld [vmem:[%s3355_s26 + $0x140] sm:$0xf]  ;;  %255 = vst [vmem:[%s3362_s27 + $0x98] sm:$0xf] %v254_v38 }
  0x2c   : > { %257 = vst [vmem:[%s3362_s27 + $0x9c] sm:$0xf] %v256_v39  ;;  %259 = vst [vmem:[%s3362_s27 + $0xa0] sm:$0xf] %v258_v40  ;;  %v260_v41 = vld [vmem:[%s3355_s26 + $0x148] sm:$0xf] }
  0x2d   : > { %v262_v42 = vld [vmem:[%s3355_s26 + $0x150] sm:$0xf]  ;;  %v264_v43 = vld [vmem:[%s3355_s26 + $0x158] sm:$0xf]  ;;  %261 = vst [vmem:[%s3362_s27 + $0xa4] sm:$0xf] %v260_v41 }
  0x2e   : > { %263 = vst [vmem:[%s3362_s27 + $0xa8] sm:$0xf] %v262_v42  ;;  %265 = vst [vmem:[%s3362_s27 + $0xac] sm:$0xf] %v264_v43  ;;  %v266_v44 = vld [vmem:[%s3355_s26 + $0x160] sm:$0xf] }
  0x2f   : > { %v268_v45 = vld [vmem:[%s3355_s26 + $0x168] sm:$0xf]  ;;  %v270_v46 = vld [vmem:[%s3355_s26 + $0x170] sm:$0xf]  ;;  %267 = vst [vmem:[%s3362_s27 + $0xb0] sm:$0xf] %v266_v44 }
  0x30   : > { %269 = vst [vmem:[%s3362_s27 + $0xb4] sm:$0xf] %v268_v45  ;;  %271 = vst [vmem:[%s3362_s27 + $0xb8] sm:$0xf] %v270_v46  ;;  %v272_v47 = vld [vmem:[%s3355_s26 + $0x178] sm:$0xf] }
  0x31   : > { %v274_v48 = vld [vmem:[%s3355_s26 + $0x180] sm:$0xf]  ;;  %v276_v49 = vld [vmem:[%s3355_s26 + $0x188] sm:$0xf]  ;;  %273 = vst [vmem:[%s3362_s27 + $0xbc] sm:$0xf] %v272_v47 }
  0x32   : > { %275 = vst [vmem:[%s3362_s27 + $0xc0] sm:$0xf] %v274_v48  ;;  %277 = vst [vmem:[%s3362_s27 + $0xc4] sm:$0xf] %v276_v49  ;;  %v278_v50 = vld [vmem:[%s3355_s26 + $0x190] sm:$0xf] }
  0x33   : > { %v280_v51 = vld [vmem:[%s3355_s26 + $0x198] sm:$0xf]  ;;  %v282_v52 = vld [vmem:[%s3355_s26 + $0x1a0] sm:$0xf]  ;;  %279 = vst [vmem:[%s3362_s27 + $0xc8] sm:$0xf] %v278_v50 }
  0x34   : > { %281 = vst [vmem:[%s3362_s27 + $0xcc] sm:$0xf] %v280_v51  ;;  %283 = vst [vmem:[%s3362_s27 + $0xd0] sm:$0xf] %v282_v52  ;;  %v284_v53 = vld [vmem:[%s3355_s26 + $0x1a8] sm:$0xf] }
  0x35   : > { %v286_v54 = vld [vmem:[%s3355_s26 + $0x1b0] sm:$0xf]  ;;  %v288_v55 = vld [vmem:[%s3355_s26 + $0x1b8] sm:$0xf]  ;;  %285 = vst [vmem:[%s3362_s27 + $0xd4] sm:$0xf] %v284_v53 }
  0x36   : > { %287 = vst [vmem:[%s3362_s27 + $0xd8] sm:$0xf] %v286_v54  ;;  %289 = vst [vmem:[%s3362_s27 + $0xdc] sm:$0xf] %v288_v55  ;;  %v290_v56 = vld [vmem:[%s3355_s26 + $0x1c0] sm:$0xf] }
  0x37   : > { %v292_v57 = vld [vmem:[%s3355_s26 + $0x1c8] sm:$0xf]  ;;  %v294_v58 = vld [vmem:[%s3355_s26 + $0x1d0] sm:$0xf]  ;;  %291 = vst [vmem:[%s3362_s27 + $0xe0] sm:$0xf] %v290_v56 }
  0x38   : > { %293 = vst [vmem:[%s3362_s27 + $0xe4] sm:$0xf] %v292_v57  ;;  %295 = vst [vmem:[%s3362_s27 + $0xe8] sm:$0xf] %v294_v58  ;;  %v296_v59 = vld [vmem:[%s3355_s26 + $0x1d8] sm:$0xf] }
  0x39   : > { %v298_v60 = vld [vmem:[%s3355_s26 + $0x1e0] sm:$0xf]  ;;  %v300_v61 = vld [vmem:[%s3355_s26 + $0x1e8] sm:$0xf]  ;;  %297 = vst [vmem:[%s3362_s27 + $0xec] sm:$0xf] %v296_v59 }
  0x3a   : > { %299 = vst [vmem:[%s3362_s27 + $0xf0] sm:$0xf] %v298_v60  ;;  %301 = vst [vmem:[%s3362_s27 + $0xf4] sm:$0xf] %v300_v61  ;;  %v302_v62 = vld [vmem:[%s3355_s26 + $0x1f0] sm:$0xf] }
  0x3b   : > { %v304_v63 = vld [vmem:[%s3355_s26 + $0x1f8] sm:$0xf]  ;;  %v306_v0 = vld [vmem:[%s3355_s26 + $0x200] sm:$0xf]  ;;  %303 = vst [vmem:[%s3362_s27 + $0xf8] sm:$0xf] %v302_v62 }
  0x3c   : > { %305 = vst [vmem:[%s3362_s27 + $0xfc] sm:$0xf] %v304_v63  ;;  %307 = vst [vmem:[%s3362_s27 + $0x100] sm:$0xf] %v306_v0  ;;  %v308_v1 = vld [vmem:[%s3355_s26 + $0x208] sm:$0xf] }
  0x3d   : > { %v310_v2 = vld [vmem:[%s3355_s26 + $0x210] sm:$0xf]  ;;  %v312_v3 = vld [vmem:[%s3355_s26 + $0x218] sm:$0xf]  ;;  %309 = vst [vmem:[%s3362_s27 + $0x104] sm:$0xf] %v308_v1 }
  0x3e   : > { %311 = vst [vmem:[%s3362_s27 + $0x108] sm:$0xf] %v310_v2  ;;  %313 = vst [vmem:[%s3362_s27 + $0x10c] sm:$0xf] %v312_v3  ;;  %v314_v4 = vld [vmem:[%s3355_s26 + $0x220] sm:$0xf] }
  0x3f   : > { %v316_v5 = vld [vmem:[%s3355_s26 + $0x228] sm:$0xf]  ;;  %v318_v6 = vld [vmem:[%s3355_s26 + $0x230] sm:$0xf]  ;;  %315 = vst [vmem:[%s3362_s27 + $0x110] sm:$0xf] %v314_v4 }
  0x40   : > { %317 = vst [vmem:[%s3362_s27 + $0x114] sm:$0xf] %v316_v5  ;;  %319 = vst [vmem:[%s3362_s27 + $0x118] sm:$0xf] %v318_v6  ;;  %v320_v7 = vld [vmem:[%s3355_s26 + $0x238] sm:$0xf] }
  0x41   : > { %v322_v8 = vld [vmem:[%s3355_s26 + $0x240] sm:$0xf]  ;;  %v324_v9 = vld [vmem:[%s3355_s26 + $0x248] sm:$0xf]  ;;  %321 = vst [vmem:[%s3362_s27 + $0x11c] sm:$0xf] %v320_v7 }
  0x42   : > { %323 = vst [vmem:[%s3362_s27 + $0x120] sm:$0xf] %v322_v8  ;;  %325 = vst [vmem:[%s3362_s27 + $0x124] sm:$0xf] %v324_v9  ;;  %v326_v10 = vld [vmem:[%s3355_s26 + $0x250] sm:$0xf] }
  0x43   : > { %v328_v11 = vld [vmem:[%s3355_s26 + $0x258] sm:$0xf]  ;;  %v330_v12 = vld [vmem:[%s3355_s26 + $0x260] sm:$0xf]  ;;  %327 = vst [vmem:[%s3362_s27 + $0x128] sm:$0xf] %v326_v10 }
  0x44   : > { %329 = vst [vmem:[%s3362_s27 + $0x12c] sm:$0xf] %v328_v11  ;;  %331 = vst [vmem:[%s3362_s27 + $0x130] sm:$0xf] %v330_v12  ;;  %v332_v13 = vld [vmem:[%s3355_s26 + $0x268] sm:$0xf] }
  0x45   : > { %v334_v14 = vld [vmem:[%s3355_s26 + $0x270] sm:$0xf]  ;;  %v336_v15 = vld [vmem:[%s3355_s26 + $0x278] sm:$0xf]  ;;  %333 = vst [vmem:[%s3362_s27 + $0x134] sm:$0xf] %v332_v13 }
  0x46   : > { %335 = vst [vmem:[%s3362_s27 + $0x138] sm:$0xf] %v334_v14  ;;  %337 = vst [vmem:[%s3362_s27 + $0x13c] sm:$0xf] %v336_v15  ;;  %v338_v16 = vld [vmem:[%s3355_s26 + $0x280] sm:$0xf] }
  0x47   : > { %v340_v17 = vld [vmem:[%s3355_s26 + $0x288] sm:$0xf]  ;;  %v342_v18 = vld [vmem:[%s3355_s26 + $0x290] sm:$0xf]  ;;  %339 = vst [vmem:[%s3362_s27 + $0x140] sm:$0xf] %v338_v16 }
  0x48   : > { %341 = vst [vmem:[%s3362_s27 + $0x144] sm:$0xf] %v340_v17  ;;  %343 = vst [vmem:[%s3362_s27 + $0x148] sm:$0xf] %v342_v18  ;;  %v344_v19 = vld [vmem:[%s3355_s26 + $0x298] sm:$0xf] }
  0x49   : > { %v346_v20 = vld [vmem:[%s3355_s26 + $0x2a0] sm:$0xf]  ;;  %v348_v21 = vld [vmem:[%s3355_s26 + $0x2a8] sm:$0xf]  ;;  %345 = vst [vmem:[%s3362_s27 + $0x14c] sm:$0xf] %v344_v19 }
  0x4a   : > { %347 = vst [vmem:[%s3362_s27 + $0x150] sm:$0xf] %v346_v20  ;;  %349 = vst [vmem:[%s3362_s27 + $0x154] sm:$0xf] %v348_v21  ;;  %v350_v22 = vld [vmem:[%s3355_s26 + $0x2b0] sm:$0xf] }
  0x4b   : > { %v352_v23 = vld [vmem:[%s3355_s26 + $0x2b8] sm:$0xf]  ;;  %v354_v24 = vld [vmem:[%s3355_s26 + $0x2c0] sm:$0xf]  ;;  %351 = vst [vmem:[%s3362_s27 + $0x158] sm:$0xf] %v350_v22 }
  0x4c   : > { %353 = vst [vmem:[%s3362_s27 + $0x15c] sm:$0xf] %v352_v23  ;;  %355 = vst [vmem:[%s3362_s27 + $0x160] sm:$0xf] %v354_v24  ;;  %v356_v25 = vld [vmem:[%s3355_s26 + $0x2c8] sm:$0xf] }
  0x4d   : > { %v358_v26 = vld [vmem:[%s3355_s26 + $0x2d0] sm:$0xf]  ;;  %v360_v27 = vld [vmem:[%s3355_s26 + $0x2d8] sm:$0xf]  ;;  %357 = vst [vmem:[%s3362_s27 + $0x164] sm:$0xf] %v356_v25 }
  0x4e   : > { %359 = vst [vmem:[%s3362_s27 + $0x168] sm:$0xf] %v358_v26  ;;  %361 = vst [vmem:[%s3362_s27 + $0x16c] sm:$0xf] %v360_v27  ;;  %v362_v28 = vld [vmem:[%s3355_s26 + $0x2e0] sm:$0xf] }
  0x4f   : > { %v364_v29 = vld [vmem:[%s3355_s26 + $0x2e8] sm:$0xf]  ;;  %v366_v30 = vld [vmem:[%s3355_s26 + $0x2f0] sm:$0xf]  ;;  %363 = vst [vmem:[%s3362_s27 + $0x170] sm:$0xf] %v362_v28 }
  0x50   : > { %365 = vst [vmem:[%s3362_s27 + $0x174] sm:$0xf] %v364_v29  ;;  %367 = vst [vmem:[%s3362_s27 + $0x178] sm:$0xf] %v366_v30  ;;  %v368_v31 = vld [vmem:[%s3355_s26 + $0x2f8] sm:$0xf] }
  0x51   : > { %v370_v32 = vld [vmem:[%s3355_s26 + $0x300] sm:$0xf]  ;;  %v372_v33 = vld [vmem:[%s3355_s26 + $0x308] sm:$0xf]  ;;  %369 = vst [vmem:[%s3362_s27 + $0x17c] sm:$0xf] %v368_v31 }
  0x52   : > { %371 = vst [vmem:[%s3362_s27 + $0x180] sm:$0xf] %v370_v32  ;;  %373 = vst [vmem:[%s3362_s27 + $0x184] sm:$0xf] %v372_v33  ;;  %v374_v34 = vld [vmem:[%s3355_s26 + $0x310] sm:$0xf] }
  0x53   : > { %v376_v35 = vld [vmem:[%s3355_s26 + $0x318] sm:$0xf]  ;;  %v378_v36 = vld [vmem:[%s3355_s26 + $0x320] sm:$0xf]  ;;  %375 = vst [vmem:[%s3362_s27 + $0x188] sm:$0xf] %v374_v34 }
  0x54   : > { %377 = vst [vmem:[%s3362_s27 + $0x18c] sm:$0xf] %v376_v35  ;;  %379 = vst [vmem:[%s3362_s27 + $0x190] sm:$0xf] %v378_v36  ;;  %v380_v37 = vld [vmem:[%s3355_s26 + $0x328] sm:$0xf] }
  0x55   : > { %v382_v38 = vld [vmem:[%s3355_s26 + $0x330] sm:$0xf]  ;;  %v384_v39 = vld [vmem:[%s3355_s26 + $0x338] sm:$0xf]  ;;  %381 = vst [vmem:[%s3362_s27 + $0x194] sm:$0xf] %v380_v37 }
  0x56   : > { %383 = vst [vmem:[%s3362_s27 + $0x198] sm:$0xf] %v382_v38  ;;  %385 = vst [vmem:[%s3362_s27 + $0x19c] sm:$0xf] %v384_v39  ;;  %v386_v40 = vld [vmem:[%s3355_s26 + $0x340] sm:$0xf] }
  0x57   : > { %v388_v41 = vld [vmem:[%s3355_s26 + $0x348] sm:$0xf]  ;;  %v390_v42 = vld [vmem:[%s3355_s26 + $0x350] sm:$0xf]  ;;  %387 = vst [vmem:[%s3362_s27 + $0x1a0] sm:$0xf] %v386_v40 }
  0x58   : > { %389 = vst [vmem:[%s3362_s27 + $0x1a4] sm:$0xf] %v388_v41  ;;  %391 = vst [vmem:[%s3362_s27 + $0x1a8] sm:$0xf] %v390_v42  ;;  %v392_v43 = vld [vmem:[%s3355_s26 + $0x358] sm:$0xf] }
  0x59   : > { %v394_v44 = vld [vmem:[%s3355_s26 + $0x360] sm:$0xf]  ;;  %v396_v45 = vld [vmem:[%s3355_s26 + $0x368] sm:$0xf]  ;;  %393 = vst [vmem:[%s3362_s27 + $0x1ac] sm:$0xf] %v392_v43 }
  0x5a   : > { %395 = vst [vmem:[%s3362_s27 + $0x1b0] sm:$0xf] %v394_v44  ;;  %397 = vst [vmem:[%s3362_s27 + $0x1b4] sm:$0xf] %v396_v45  ;;  %v398_v46 = vld [vmem:[%s3355_s26 + $0x370] sm:$0xf] }
  0x5b   : > { %v400_v47 = vld [vmem:[%s3355_s26 + $0x378] sm:$0xf]  ;;  %v402_v48 = vld [vmem:[%s3355_s26 + $0x380] sm:$0xf]  ;;  %399 = vst [vmem:[%s3362_s27 + $0x1b8] sm:$0xf] %v398_v46 }
  0x5c   : > { %401 = vst [vmem:[%s3362_s27 + $0x1bc] sm:$0xf] %v400_v47  ;;  %403 = vst [vmem:[%s3362_s27 + $0x1c0] sm:$0xf] %v402_v48  ;;  %v404_v49 = vld [vmem:[%s3355_s26 + $0x388] sm:$0xf] }
  0x5d   : > { %v406_v50 = vld [vmem:[%s3355_s26 + $0x390] sm:$0xf]  ;;  %v408_v51 = vld [vmem:[%s3355_s26 + $0x398] sm:$0xf]  ;;  %405 = vst [vmem:[%s3362_s27 + $0x1c4] sm:$0xf] %v404_v49 }
  0x5e   : > { %407 = vst [vmem:[%s3362_s27 + $0x1c8] sm:$0xf] %v406_v50  ;;  %409 = vst [vmem:[%s3362_s27 + $0x1cc] sm:$0xf] %v408_v51  ;;  %v410_v52 = vld [vmem:[%s3355_s26 + $0x3a0] sm:$0xf] }
  0x5f   : > { %v412_v53 = vld [vmem:[%s3355_s26 + $0x3a8] sm:$0xf]  ;;  %v414_v54 = vld [vmem:[%s3355_s26 + $0x3b0] sm:$0xf]  ;;  %411 = vst [vmem:[%s3362_s27 + $0x1d0] sm:$0xf] %v410_v52 }
  0x60   : > { %413 = vst [vmem:[%s3362_s27 + $0x1d4] sm:$0xf] %v412_v53  ;;  %415 = vst [vmem:[%s3362_s27 + $0x1d8] sm:$0xf] %v414_v54  ;;  %v416_v55 = vld [vmem:[%s3355_s26 + $0x3b8] sm:$0xf] }
  0x61   : > { %v418_v56 = vld [vmem:[%s3355_s26 + $0x3c0] sm:$0xf]  ;;  %v420_v57 = vld [vmem:[%s3355_s26 + $0x3c8] sm:$0xf]  ;;  %417 = vst [vmem:[%s3362_s27 + $0x1dc] sm:$0xf] %v416_v55 }
  0x62   : > { %419 = vst [vmem:[%s3362_s27 + $0x1e0] sm:$0xf] %v418_v56  ;;  %421 = vst [vmem:[%s3362_s27 + $0x1e4] sm:$0xf] %v420_v57  ;;  %v422_v58 = vld [vmem:[%s3355_s26 + $0x3d0] sm:$0xf] }
  0x63   : > { %v424_v59 = vld [vmem:[%s3355_s26 + $0x3d8] sm:$0xf]  ;;  %v426_v60 = vld [vmem:[%s3355_s26 + $0x3e0] sm:$0xf]  ;;  %423 = vst [vmem:[%s3362_s27 + $0x1e8] sm:$0xf] %v422_v58 }
  0x64   : > { %425 = vst [vmem:[%s3362_s27 + $0x1ec] sm:$0xf] %v424_v59  ;;  %427 = vst [vmem:[%s3362_s27 + $0x1f0] sm:$0xf] %v426_v60  ;;  %v428_v61 = vld [vmem:[%s3355_s26 + $0x3e8] sm:$0xf] }
  0x65   : > { %v430_v62 = vld [vmem:[%s3355_s26 + $0x3f0] sm:$0xf]  ;;  %v432_v63 = vld [vmem:[%s3355_s26 + $0x3f8] sm:$0xf]  ;;  %429 = vst [vmem:[%s3362_s27 + $0x1f4] sm:$0xf] %v428_v61 }
  0x66   : > { %431 = vst [vmem:[%s3362_s27 + $0x1f8] sm:$0xf] %v430_v62  ;;  %433 = vst [vmem:[%s3362_s27 + $0x1fc] sm:$0xf] %v432_v63  ;;  %v434_v0 = vld [vmem:[%s3355_s26 + $0x400] sm:$0xf] }
  0x67   : > { %v436_v1 = vld [vmem:[%s3355_s26 + $0x408] sm:$0xf]  ;;  %v438_v2 = vld [vmem:[%s3355_s26 + $0x410] sm:$0xf]  ;;  %435 = vst [vmem:[%s3362_s27 + $0x200] sm:$0xf] %v434_v0 }
  0x68   : > { %437 = vst [vmem:[%s3362_s27 + $0x204] sm:$0xf] %v436_v1  ;;  %439 = vst [vmem:[%s3362_s27 + $0x208] sm:$0xf] %v438_v2  ;;  %v440_v3 = vld [vmem:[%s3355_s26 + $0x418] sm:$0xf] }
  0x69   : > { %v442_v4 = vld [vmem:[%s3355_s26 + $0x420] sm:$0xf]  ;;  %v444_v5 = vld [vmem:[%s3355_s26 + $0x428] sm:$0xf]  ;;  %441 = vst [vmem:[%s3362_s27 + $0x20c] sm:$0xf] %v440_v3 }
  0x6a   : > { %443 = vst [vmem:[%s3362_s27 + $0x210] sm:$0xf] %v442_v4  ;;  %445 = vst [vmem:[%s3362_s27 + $0x214] sm:$0xf] %v444_v5  ;;  %v446_v6 = vld [vmem:[%s3355_s26 + $0x430] sm:$0xf] }
  0x6b   : > { %v448_v7 = vld [vmem:[%s3355_s26 + $0x438] sm:$0xf]  ;;  %v450_v8 = vld [vmem:[%s3355_s26 + $0x440] sm:$0xf]  ;;  %447 = vst [vmem:[%s3362_s27 + $0x218] sm:$0xf] %v446_v6 }
  0x6c   : > { %449 = vst [vmem:[%s3362_s27 + $0x21c] sm:$0xf] %v448_v7  ;;  %451 = vst [vmem:[%s3362_s27 + $0x220] sm:$0xf] %v450_v8  ;;  %v452_v9 = vld [vmem:[%s3355_s26 + $0x448] sm:$0xf] }
  0x6d   : > { %v454_v10 = vld [vmem:[%s3355_s26 + $0x450] sm:$0xf]  ;;  %v456_v11 = vld [vmem:[%s3355_s26 + $0x458] sm:$0xf]  ;;  %453 = vst [vmem:[%s3362_s27 + $0x224] sm:$0xf] %v452_v9 }
  0x6e   : > { %455 = vst [vmem:[%s3362_s27 + $0x228] sm:$0xf] %v454_v10  ;;  %457 = vst [vmem:[%s3362_s27 + $0x22c] sm:$0xf] %v456_v11  ;;  %v458_v12 = vld [vmem:[%s3355_s26 + $0x460] sm:$0xf] }
  0x6f   : > { %v460_v13 = vld [vmem:[%s3355_s26 + $0x468] sm:$0xf]  ;;  %v462_v14 = vld [vmem:[%s3355_s26 + $0x470] sm:$0xf]  ;;  %459 = vst [vmem:[%s3362_s27 + $0x230] sm:$0xf] %v458_v12 }
  0x70   : > { %461 = vst [vmem:[%s3362_s27 + $0x234] sm:$0xf] %v460_v13  ;;  %463 = vst [vmem:[%s3362_s27 + $0x238] sm:$0xf] %v462_v14  ;;  %v464_v15 = vld [vmem:[%s3355_s26 + $0x478] sm:$0xf] }
  0x71   : > { %465 = vst [vmem:[%s3362_s27 + $0x23c] sm:$0xf] %v464_v15 }
  0x72 PF: > { %p2494_p6 = scmp.ge.s32.totalorder %s3288_s16, 1  ;;  %p781_p7 = scmp.lt.s32.totalorder %s3288_s16, 3 }
  0x74   : > { %p782_p8 = pnand %p2494_p6, %p781_p7 }
  0x76   : > { %785 = sbr.rel (%p782_p8) target bundleno = 679 (0x2a7), region = 69 }
  0x7d   : > { %s788_s28 = sand.u32 1, %s3272_s12   ;;  %v3653_v16 = vld [vmem:[%s4324_s0] sm:$0xff]  ;;  %v3658_v17 = vld [vmem:[%s4324_s0 + $0x8] sm:$0xff]  ;;  %v3783_v49 = vld [vmem:[%s4324_s0 + $0x10] sm:$0xff]  ;;  %vm3291_vm0 = vmmov 0   ;;  %p827_p9 = scmp.lt.s32.totalorder %s3280_s14, 1 }
  0x7e   : > { %s3091_s6 = smul.u32 576, %s788_s28  ;;  %v2497_v18 = vcombine.high %v3653_v16, %v3653_v16  ;;  %v2499_v19 = vcombine.high %v3658_v17, %v3658_v17  ;;  %v3792_v51 = vld [vmem:[%s4324_s0 + $0x18] sm:$0xff]  ;;  %v2496_v54 = vcombine.low %v3653_v16, %v3653_v16  ;;  %v2498_v55 = vcombine.low %v3658_v17, %v3658_v17 }
  0x7f   : > { %v2501_v58 = vcombine.high %v3783_v49, %v3783_v49  ;;  %v2503_v60 = vcombine.high %v3792_v51, %v3792_v51  ;;  %s4435_s14 = smov (!%p827_p9, %s3280_s14), 1 }
  0x80   : > { %1484 = vmatprep.mubr.bf16.mxu0 %v2497_v18  ;;  %1524 = vmatprep.mubr.bf16.mxu1 %v2499_v19  ;;  %s3664_s7 = scalar_lea.vmem [#allocation2], %s3091_s6  ;;  %s829_s4 = scalar_lea.vmem %s4326_s2, %s4435_s14 }
  0x81   : > { %v3667_v20 = vld [vmem:[%s3664_s7 + $0x40] sm:$0xff]   ;;  %v3682_v24 = vld [vmem:[%s3664_s7 + $0x48] sm:$0xff]   ;;  %v3698_v28 = vld [vmem:[%s3664_s7 + $0x50] sm:$0xff]   ;;  %s2495_s5 = sshll.u32 %s4435_s14, 2 }
  0x82   : > { %v3670_v21 = vld [vmem:[%s3664_s7 + $0xc0] sm:$0xff]   ;;  %2622 = vmatprep.subr.bf16.mxu0 %v3667_v20  ;;  %v3686_v25 = vld [vmem:[%s3664_s7 + $0xc8] sm:$0xff]   ;;  %v3702_v29 = vld [vmem:[%s3664_s7 + $0xd0] sm:$0xff]   ;;  %s837_s9 = scalar_lea.vmem %s4327_s3, %s2495_s5 }
  0x83   : > { %v3674_v22 = vld [vmem:[%s3664_s7] sm:$0xff]   ;;  %2644 = vmatprep.subr.bf16.mxu1 %v3670_v21  ;;  %v3690_v26 = vld [vmem:[%s3664_s7 + $0x8] sm:$0xff]   ;;  %v3706_v30 = vld [vmem:[%s3664_s7 + $0x10] sm:$0xff]  }
  0x84   : > { %v3678_v23 = vld [vmem:[%s3664_s7 + $0x80] sm:$0xff]   ;;  %2623 = vmatpush3.bf16.msra.mxu0 %v3674_v22  ;;  %v3694_v27 = vld [vmem:[%s3664_s7 + $0x88] sm:$0xff]   ;;  %v3710_v31 = vld [vmem:[%s3664_s7 + $0x90] sm:$0xff]  }
  0x85   : > { %2645 = vmatpush3.bf16.msra.mxu1 %v3678_v23  ;;  %2624 = vmatprep.subr.bf16.mxu0 %v3682_v24  ;;  %v3714_v32 = vld [vmem:[%s3664_s7 + $0x58] sm:$0xff]   ;;  %v3730_v36 = vld [vmem:[%s3664_s7 + $0x60] sm:$0xff]   ;;  %v3746_v40 = vld [vmem:[%s3664_s7 + $0x68] sm:$0xff]  }
  0x86   : > { %2646 = vmatprep.subr.bf16.mxu1 %v3686_v25  ;;  %4378 = vst [vmem:[#allocation3_spill] sm:$0xff] %v3714_v32  ;;  %v3718_v33 = vld [vmem:[%s3664_s7 + $0xd8] sm:$0xff]   ;;  %4379 = vst [vmem:[#allocation4_spill] sm:$0xff] %v3730_v36  ;;  %v3734_v37 = vld [vmem:[%s3664_s7 + $0xe0] sm:$0xff]  }
  0x87   : > { %v3722_v34 = vld [vmem:[%s3664_s7 + $0x18] sm:$0xff]   ;;  %v3738_v38 = vld [vmem:[%s3664_s7 + $0x20] sm:$0xff]   ;;  %4380 = vst [vmem:[#allocation5_spill] sm:$0xff] %v3746_v40  ;;  %v3750_v41 = vld [vmem:[%s3664_s7 + $0xe8] sm:$0xff]  }
  0x88   : > { %2625 = vmatpush3.bf16.msra.mxu0 %v3690_v26  ;;  %v3726_v35 = vld [vmem:[%s3664_s7 + $0x98] sm:$0xff]   ;;  %v3742_v39 = vld [vmem:[%s3664_s7 + $0xa0] sm:$0xff]   ;;  %v3754_v42 = vld [vmem:[%s3664_s7 + $0x28] sm:$0xff]  }
  0x89   : > { %2647 = vmatpush3.bf16.msra.mxu1 %v3694_v27  ;;  %2626 = vmatprep.subr.bf16.mxu0 %v3698_v28  ;;  %4381 = vst [vmem:[#allocation6_spill] sm:$0xff] %v3754_v42  ;;  %v3758_v43 = vld [vmem:[%s3664_s7 + $0xa8] sm:$0xff]   ;;  %v3762_v44 = vld [vmem:[%s3664_s7 + $0x70] sm:$0xff]   ;;  %v3778_v48 = vld [vmem:[%s3664_s7 + $0x78] sm:$0xff]  }
  0x8a   : > { %2648 = vmatprep.subr.bf16.mxu1 %v3702_v29  ;;  %4382 = vst [vmem:[#allocation7_spill] sm:$0xff] %v3762_v44  ;;  %v3766_v45 = vld [vmem:[%s3664_s7 + $0xf0] sm:$0xff]   ;;  %4384 = vst [vmem:[#allocation9_spill] sm:$0xff] %v3778_v48  ;;  %v3787_v50 = vld [vmem:[%s3664_s7 + $0xf8] sm:$0xff]  }
  0x8b   : > { %v3770_v46 = vld [vmem:[%s3664_s7 + $0x30] sm:$0xff]   ;;  %v3796_v52 = vld [vmem:[%s3664_s7 + $0x38] sm:$0xff]   ;;  %v3808_v56 = vld [vmem:[%s3664_s7 + $0x140] sm:$0xff]  }
  0x8c   : > { %2627 = vmatpush3.bf16.msra.mxu0 %v3706_v30  ;;  %4383 = vst [vmem:[#allocation8_spill] sm:$0xff] %v3770_v46  ;;  %v3774_v47 = vld [vmem:[%s3664_s7 + $0xb0] sm:$0xff]   ;;  %v3800_v53 = vld [vmem:[%s3664_s7 + $0xb8] sm:$0xff]   ;;  %v3812_v57 = vld [vmem:[%s3664_s7 + $0x1c0] sm:$0xff]  }
  0x8d   : > { %2649 = vmatpush3.bf16.msra.mxu1 %v3710_v31  ;;  %2628 = vmatprep.subr.bf16.mxu0 %v3714_v32  ;;  %v3818_v59 = vld [vmem:[%s3664_s7 + $0x100] sm:$0xff]   ;;  %v3828_v62 = vld [vmem:[%s3664_s7 + $0x148] sm:$0xff]   ;;  %v3844_v2 = vld [vmem:[%s3664_s7 + $0x150] sm:$0xff]  }
  0x8e   : > { %2650 = vmatprep.subr.bf16.mxu1 %v3718_v33  ;;  %v3824_v61 = vld [vmem:[%s3664_s7 + $0x180] sm:$0xff]   ;;  %v3832_v63 = vld [vmem:[%s3664_s7 + $0x1c8] sm:$0xff]   ;;  %v3848_v3 = vld [vmem:[%s3664_s7 + $0x1d0] sm:$0xff]  }
  0x8f   : > { %v3836_v0 = vld [vmem:[%s3664_s7 + $0x108] sm:$0xff]   ;;  %v3852_v4 = vld [vmem:[%s3664_s7 + $0x110] sm:$0xff]   ;;  %v3860_v6 = vld [vmem:[%s3664_s7 + $0x158] sm:$0xff]  }
  0x90   : > { %2629 = vmatpush3.bf16.msra.mxu0 %v3722_v34  ;;  %v3840_v1 = vld [vmem:[%s3664_s7 + $0x188] sm:$0xff]   ;;  %v3856_v5 = vld [vmem:[%s3664_s7 + $0x190] sm:$0xff]   ;;  %v3864_v7 = vld [vmem:[%s3664_s7 + $0x1d8] sm:$0xff]  }
  0x91   : > { %2651 = vmatpush3.bf16.msra.mxu1 %v3726_v35  ;;  %2630 = vmatprep.subr.bf16.mxu0 %v3730_v36  ;;  %v3868_v8 = vld [vmem:[%s3664_s7 + $0x118] sm:$0xff]   ;;  %v3876_v10 = vld [vmem:[%s3664_s7 + $0x160] sm:$0xff]   ;;  %v3892_v14 = vld [vmem:[%s3664_s7 + $0x168] sm:$0xff]  }
  0x92   : > { %2652 = vmatprep.subr.bf16.mxu1 %v3734_v37  ;;  %v3872_v9 = vld [vmem:[%s3664_s7 + $0x198] sm:$0xff]   ;;  %v3880_v11 = vld [vmem:[%s3664_s7 + $0x1e0] sm:$0xff]   ;;  %v3896_v15 = vld [vmem:[%s3664_s7 + $0x1e8] sm:$0xff]  }
  0x93   : > { %4385 = vst [vmem:[#allocation10_spill] sm:$0xff] %v3872_v9  ;;  %4386 = vst [vmem:[#allocation11_spill] sm:$0xff] %v3880_v11  ;;  %v3884_v12 = vld [vmem:[%s3664_s7 + $0x120] sm:$0xff]   ;;  %v3900_v16 = vld [vmem:[%s3664_s7 + $0x128] sm:$0xff]  }
  0x94   : > { %2631 = vmatpush3.bf16.msra.mxu0 %v3738_v38  ;;  %v3888_v13 = vld [vmem:[%s3664_s7 + $0x1a0] sm:$0xff]   ;;  %4388 = vst [vmem:[#allocation13_spill] sm:$0xff] %v3896_v15  ;;  %v3904_v17 = vld [vmem:[%s3664_s7 + $0x1a8] sm:$0xff]   ;;  %v3908_v18 = vld [vmem:[%s3664_s7 + $0x170] sm:$0xff]  }
  0x95   : > { %2653 = vmatpush3.bf16.msra.mxu1 %v3742_v39  ;;  %2632 = vmatprep.subr.bf16.mxu0 %v3746_v40  ;;  %4387 = vst [vmem:[#allocation12_spill] sm:$0xff] %v3888_v13  ;;  %4389 = vst [vmem:[#allocation14_spill] sm:$0xff] %v3904_v17  ;;  %v3912_v19 = vld [vmem:[%s3664_s7 + $0x1f0] sm:$0xff]  }
  0x96   : > { %2654 = vmatprep.subr.bf16.mxu1 %v3750_v41  ;;  %4390 = vst [vmem:[#allocation15_spill] sm:$0xff] %v3912_v19 }
  0x98   : > { %2633 = vmatpush3.bf16.msra.mxu0 %v3754_v42 }
  0x99   : > { %2655 = vmatpush3.bf16.msra.mxu1 %v3758_v43  ;;  %2634 = vmatprep.subr.bf16.mxu0 %v3762_v44 }
  0x9a   : > { %2656 = vmatprep.subr.bf16.mxu1 %v3766_v45 }
  0x9c   : > { %2635 = vmatpush3.bf16.msra.mxu0 %v3770_v46 }
  0x9d   : > { %2657 = vmatpush3.bf16.msra.mxu1 %v3774_v47  ;;  %2636 = vmatprep.subr.bf16.mxu0 %v3778_v48 }
  0x9e   : > { %2658 = vmatprep.subr.bf16.mxu1 %v3787_v50 }
  0xa0   : > { %2637 = vmatpush3.bf16.msra.mxu0 %v3796_v52 }
  0xa1   : > { %2659 = vmatpush3.bf16.msra.mxu1 %v3800_v53  ;;  %2666 = vmatprep.subr.bf16.mxu0 %v3808_v56 }
  0xa2   : > { %2688 = vmatprep.subr.bf16.mxu1 %v3812_v57 }
  0xa3   : > { %1485 = vmatmul.mubr.bf16.vlgmr.msra.gmra.mrb[0].mxu0 %v2496_v54  ;;  %v3916_v54 = vld [vmem:[%s3664_s7 + $0x130] sm:$0xff]  }
  0xa4   : > { %1525 = vmatmul.mubr.bf16.vlgmr.msra.gmra.mrb[0].mxu1 %v2498_v55  ;;  %2667 = vmatpush3.bf16.msra.mxu0 %v3818_v59  ;;  %v3920_v55 = vld [vmem:[%s3664_s7 + $0x1b0] sm:$0xff]  }
  0xa5   : > { %2689 = vmatpush3.bf16.msra.mxu1 %v3824_v61  ;;  %1564 = vmatprep.mubr.bf16.mxu0 %v2501_v58  ;;  %4391 = vst [vmem:[#allocation16_spill] sm:$0xff] %v3920_v55  ;;  %v3924_v58 = vld [vmem:[%s3664_s7 + $0x178] sm:$0xff]  }
  0xa6   : > { %2668 = vmatprep.subr.bf16.mxu0 %v3828_v62  ;;  %1604 = vmatprep.mubr.bf16.mxu1 %v2503_v60  ;;  %v3928_v60 = vld [vmem:[%s3664_s7 + $0x1f8] sm:$0xff]  }
  0xa7   : > { %2690 = vmatprep.subr.bf16.mxu1 %v3832_v63  ;;  %4392 = vst [vmem:[#allocation17_spill] sm:$0xff] %v3928_v60 }
  0xa8   : > { %2669 = vmatpush3.bf16.msra.mxu0 %v3836_v0 }
  0xa9   : > { %2691 = vmatpush3.bf16.msra.mxu1 %v3840_v1  ;;  %2670 = vmatprep.subr.bf16.mxu0 %v3844_v2 }
  0xaa   : > { %2692 = vmatprep.subr.bf16.mxu1 %v3848_v3 }
  0xac   : > { %2671 = vmatpush3.bf16.msra.mxu0 %v3852_v4 }
  0xad   : > { %2693 = vmatpush3.bf16.msra.mxu1 %v3856_v5  ;;  %2672 = vmatprep.subr.bf16.mxu0 %v3860_v6 }
  0xae   : > { %2694 = vmatprep.subr.bf16.mxu1 %v3864_v7 }
  0xb0   : > { %2673 = vmatpush3.bf16.msra.mxu0 %v3868_v8 }
  0xb1   : > { %2695 = vmatpush3.bf16.msra.mxu1 %v3872_v9  ;;  %2674 = vmatprep.subr.bf16.mxu0 %v3876_v10  ;;  %v4356_v9 = vmov 0.0  }
  0xb2   : > { %2696 = vmatprep.subr.bf16.mxu1 %v3880_v11  ;;  %v3949_v11 = vld [vmem:[%s3664_s7 + $0x200] sm:$0xff]  }
  0xb3   : > { %4395 = vst [vmem:[#allocation20_spill] sm:$0xff] %v3949_v11 }
  0xb4   : > { %2675 = vmatpush3.bf16.msra.mxu0 %v3884_v12 }
  0xb5   : > { %2697 = vmatpush3.bf16.msra.mxu1 %v3888_v13  ;;  %2676 = vmatprep.subr.bf16.mxu0 %v3892_v14  ;;  %v2500_v13 = vcombine.low %v3783_v49, %v3783_v49  ;;  %v3958_v49 = vld [vmem:[%s3664_s7 + $0x208] sm:$0xff]  }
  0xb6   : > { %2698 = vmatprep.subr.bf16.mxu1 %v3896_v15  ;;  %v3937_v15 = vld [vmem:[%s4324_s0 + $0x24] sm:$0xff]  ;;  %4396 = vst [vmem:[#allocation21_spill] sm:$0xff] %v3958_v49 }
  0xb8   : > { %2677 = vmatpush3.bf16.msra.mxu0 %v3900_v16 }
  0xb9   : > { %2699 = vmatpush3.bf16.msra.mxu1 %v3904_v17  ;;  %2678 = vmatprep.subr.bf16.mxu0 %v3908_v18  ;;  %v3932_v17 = vld [vmem:[%s3664_s7 + $0x138] sm:$0xff]  }
  0xba   : > { %2700 = vmatprep.subr.bf16.mxu1 %v3912_v19  ;;  %4393 = vst [vmem:[#allocation18_spill] sm:$0xff] %v3932_v17  ;;  %v3941_v19 = vld [vmem:[%s3664_s7 + $0x1b8] sm:$0xff]  }
  0xbb   : > { %4394 = vst [vmem:[#allocation19_spill] sm:$0xff] %v3941_v19 }
  0xbc   : > { %2679 = vmatpush3.bf16.msra.mxu0 %v3916_v54 }
  0xbd   : > { %2701 = vmatpush3.bf16.msra.mxu1 %v3920_v55  ;;  %2680 = vmatprep.subr.bf16.mxu0 %v3924_v58  ;;  %v2502_v55 = vcombine.low %v3792_v51, %v3792_v51  ;;  %v3967_v51 = vld [vmem:[%s3664_s7 + $0x210] sm:$0xff]  }
  0xbe   : > { %2702 = vmatprep.subr.bf16.mxu1 %v3928_v60  ;;  %v2583_v60 = vcombine.high %v3937_v15, %v3937_v15  ;;  %4397 = vst [vmem:[#allocation22_spill] sm:$0xff] %v3967_v51 }
  0xc0   : > { %2681 = vmatpush3.bf16.msra.mxu0 %v3932_v17 }
  0xc1   : > { %2703 = vmatpush3.bf16.msra.mxu1 %v3941_v19  ;;  %3010 = vmatprep.subr.bf16.mxu0 %v4356_v9 }
  0xc2   : > { %2719 = vmatprep.subr.bf16.mxu1 %v3667_v20 }
  0xc3   : > { %1565 = vmatmul.mubr.bf16.vlgmr.msra.gmra.mrb[4].mxu0 %v2500_v13  ;;  %v3974_v13 = vld [vmem:[%s3664_s7 + $0x218] sm:$0xff]  }
  0xc4   : > { %1605 = vmatmul.mubr.bf16.vlgmr.msra.gmra.mrb[4].mxu1 %v2502_v55  ;;  %3011 = vmatpush3.bf16.msra.mxu0 %v3949_v11  ;;  %4398 = vst [vmem:[#allocation23_spill] sm:$0xff] %v3974_v13  ;;  %v3981_v55 = vld [vmem:[%s3664_s7 + $0x220] sm:$0xff]  }
  0xc5   : > { %2720 = vmatpush3.bf16.msra.mxu1 %v3674_v22  ;;  %3012 = vmatprep.subr.bf16.mxu0 %v4356_v9  ;;  %4399 = vst [vmem:[#allocation24_spill] sm:$0xff] %v3981_v55 }
  0xc6   : > { %2721 = vmatprep.subr.bf16.mxu1 %v3682_v24  ;;  %3026 = vmatprep.mubr.msk.bf16.mxu0 %vm3291_vm0, %v4356_v9 }
  0xc7   : > { %1722 = vmatprep.mubr.bf16.mxu1 %v2583_v60  ;;  %v3988_v60 = vld [vmem:[%s3664_s7 + $0x228] sm:$0xff]  }
  0xc8   : > { %3013 = vmatpush3.bf16.msra.mxu0 %v3958_v49  ;;  %4400 = vst [vmem:[#allocation25_spill] sm:$0xff] %v3988_v60 }
  0xc9   : > { %2722 = vmatpush3.bf16.msra.mxu1 %v3690_v26  ;;  %3014 = vmatprep.subr.bf16.mxu0 %v4356_v9 }
  0xca   : > { %2723 = vmatprep.subr.bf16.mxu1 %v3698_v28 }
  0xcc   : > { %3015 = vmatpush3.bf16.msra.mxu0 %v3967_v51 }
  0xcd   : > { %2724 = vmatpush3.bf16.msra.mxu1 %v3706_v30  ;;  %3016 = vmatprep.subr.bf16.mxu0 %v4356_v9 }
  0xce   : > { %2725 = vmatprep.subr.bf16.mxu1 %v3714_v32  ;;  %v3995_v32 = vld [vmem:[%s3664_s7 + $0x230] sm:$0xff]  }
  0xcf   : > { %4401 = vst [vmem:[#allocation26_spill] sm:$0xff] %v3995_v32 }
  0xd0   : > { %3017 = vmatpush3.bf16.msra.mxu0 %v3974_v13 }
  0xd1   : > { %2726 = vmatpush3.bf16.msra.mxu1 %v3722_v34  ;;  %3018 = vmatprep.subr.bf16.mxu0 %v4356_v9 }
  0xd2   : > { %2727 = vmatprep.subr.bf16.mxu1 %v3730_v36  ;;  %v4002_v36 = vld [vmem:[%s3664_s7 + $0x238] sm:$0xff]  }
  0xd4   : > { %3019 = vmatpush3.bf16.msra.mxu0 %v3981_v55 }
  0xd5   : > { %2728 = vmatpush3.bf16.msra.mxu1 %v3738_v38  ;;  %3020 = vmatprep.subr.bf16.mxu0 %v4356_v9 }
  0xd6   : > { %2729 = vmatprep.subr.bf16.mxu1 %v3746_v40  ;;  %v3214_v40 = vld [vmem:[%s4324_s0 + $0x20] ss:$0 sps:$4 sm:$0xff]  }
  0xd8   : > { %3021 = vmatpush3.bf16.msra.mxu0 %v3988_v60 }
  0xd9   : > { %2730 = vmatpush3.bf16.msra.mxu1 %v3754_v42  ;;  %3022 = vmatprep.subr.bf16.mxu0 %v4356_v9  ;;  %v2578_v42 = vld [vmem:[%s4324_s0 + $0x2c] sm:$0xff] }
  0xda   : > { %2731 = vmatprep.subr.bf16.mxu1 %v3762_v44  ;;  %v2582_v44 = vcombine.low %v3937_v15, %v3937_v15 }
  0xdc   : > { %3023 = vmatpush3.bf16.msra.mxu0 %v3995_v32 }
  0xdd   : > { %2732 = vmatpush3.bf16.msra.mxu1 %v3770_v46  ;;  %3024 = vmatprep.subr.bf16.mxu0 %v4356_v9  ;;  %v2579_v46 = vld [vmem:[%s4324_s0 + $0x34] sm:$0xff]  ;;  %v2585_v9 = vcombine.high %v2578_v42, %v2578_v42 }
  0xde   : > { %2733 = vmatprep.subr.bf16.mxu1 %v3778_v48  ;;  %v2587_v48 = vcombine.high %v2579_v46, %v2579_v46 }
  0xe0   : > { %3025 = vmatpush3.bf16.msra.mxu0 %v4002_v36 }
  0xe1   : > { %2734 = vmatpush3.bf16.msra.mxu1 %v3796_v52  ;;  %2741 = vmatprep.subr.bf16.mxu0 %v3670_v21 }
  0xe2   : > { %2763 = vmatprep.subr.bf16.mxu1 %v3808_v56 }
  0xe3   : > { %3027 = vmatmul.mubr.bf16.vlgmr.msra.gmra.mrb[8].mxu0 %v3214_v40  ;;  %v2584_v40 = vcombine.low %v2578_v42, %v2578_v42  ;;  %v4403_v42 = vld [vmem:[#allocation10_spill] sm:$0xff] }
  0xe4   : > { %1723 = vmatmul.mubr.bf16.vlgmr.msra.gmra.mrb[8].mxu1 %v2582_v44  ;;  %2742 = vmatpush3.bf16.msra.mxu0 %v3678_v23  ;;  %v2580_v44 = vld [vmem:[%s4324_s0 + $0x3c] sm:$0xff] }
  0xe5   : > { %2764 = vmatpush3.bf16.msra.mxu1 %v3818_v59  ;;  %2743 = vmatprep.subr.bf16.mxu0 %v3686_v25  ;;  %v2589_v15 = vcombine.high %v2580_v44, %v2580_v44 }
  0xe6   : > { %2765 = vmatprep.subr.bf16.mxu1 %v3828_v62  ;;  %1762 = vmatprep.mubr.bf16.mxu0 %v2585_v9  ;;  %v4402_v9 = vmov 0.0  }
  0xe7   : > { %1802 = vmatprep.mubr.bf16.mxu1 %v2587_v48  ;;  %v2586_v48 = vcombine.low %v2579_v46, %v2579_v46  ;;  %v4404_v46 = vld [vmem:[#allocation11_spill] sm:$0xff] }
  0xe8   : > { %2744 = vmatpush3.bf16.msra.mxu0 %v3694_v27 }
  0xe9   : > { %2766 = vmatpush3.bf16.msra.mxu1 %v3836_v0  ;;  %2745 = vmatprep.subr.bf16.mxu0 %v3702_v29 }
  0xea   : > { %2767 = vmatprep.subr.bf16.mxu1 %v3844_v2 }
  0xec   : > { %2746 = vmatpush3.bf16.msra.mxu0 %v3710_v31 }
  0xed   : > { %2768 = vmatpush3.bf16.msra.mxu1 %v3852_v4  ;;  %2747 = vmatprep.subr.bf16.mxu0 %v3718_v33 }
  0xee   : > { %2769 = vmatprep.subr.bf16.mxu1 %v3860_v6 }
  0xf0   : > { %2748 = vmatpush3.bf16.msra.mxu0 %v3726_v35 }
  0xf1   : > { %2770 = vmatpush3.bf16.msra.mxu1 %v3868_v8  ;;  %2749 = vmatprep.subr.bf16.mxu0 %v3734_v37 }
  0xf2   : > { %2771 = vmatprep.subr.bf16.mxu1 %v3876_v10 }
  0xf4   : > { %2750 = vmatpush3.bf16.msra.mxu0 %v3742_v39 }
  0xf5   : > { %2772 = vmatpush3.bf16.msra.mxu1 %v3884_v12  ;;  %2751 = vmatprep.subr.bf16.mxu0 %v3750_v41 }
  0xf6   : > { %2773 = vmatprep.subr.bf16.mxu1 %v3892_v14 }
  0xf8   : > { %2752 = vmatpush3.bf16.msra.mxu0 %v3758_v43 }
  0xf9   : > { %2774 = vmatpush3.bf16.msra.mxu1 %v3900_v16  ;;  %2753 = vmatprep.subr.bf16.mxu0 %v3766_v45 }
  0xfa   : > { %2775 = vmatprep.subr.bf16.mxu1 %v3908_v18 }
  0xfc   : > { %2754 = vmatpush3.bf16.msra.mxu0 %v3774_v47 }
  0xfd   : > { %2776 = vmatpush3.bf16.msra.mxu1 %v3916_v54  ;;  %2755 = vmatprep.subr.bf16.mxu0 %v3787_v50 }
  0xfe   : > { %2777 = vmatprep.subr.bf16.mxu1 %v3924_v58 }
 0x100   : > { %2756 = vmatpush3.bf16.msra.mxu0 %v3800_v53 }
 0x101   : > { %2778 = vmatpush3.bf16.msra.mxu1 %v3932_v17  ;;  %2785 = vmatprep.subr.bf16.mxu0 %v3812_v57  ;;  %v2592_v17 = vld [vmem:[%s4324_s0 + $0x50] sm:$0xff] }
 0x102   : > { %3030 = vmatprep.subr.bf16.mxu1 %v4402_v9 }
 0x103   : > { %1763 = vmatmul.mubr.bf16.vlgmr.msra.gmra.mrb[12].mxu0 %v2584_v40  ;;  %v4405_v40 = vld [vmem:[#allocation12_spill] sm:$0xff] }
 0x104   : > { %1803 = vmatmul.mubr.bf16.vlgmr.msra.gmra.mrb[12].mxu1 %v2586_v48  ;;  %2786 = vmatpush3.bf16.msra.mxu0 %v3824_v61  ;;  %v4406_v48 = vld [vmem:[#allocation13_spill] sm:$0xff] }
 0x105   : > { %3031 = vmatpush3.bf16.msra.mxu1 %v3949_v11  ;;  %2787 = vmatprep.subr.bf16.mxu0 %v3832_v63  ;;  %v2591_v11 = vld [vmem:[%s4324_s0 + $0x48] sm:$0xff] }
 0x106   : > { %3032 = vmatprep.subr.bf16.mxu1 %v4402_v9  ;;  %1842 = vmatprep.mubr.bf16.mxu0 %v2589_v15  ;;  %v4407_v15 = vld [vmem:[#allocation14_spill] sm:$0xff] }
 0x107   : > { %3046 = vmatprep.mubr.msk.bf16.mxu1 %vm3291_vm0, %v4402_v9 }
 0x108   : > { %2788 = vmatpush3.bf16.msra.mxu0 %v3840_v1 }
 0x109   : > { %3033 = vmatpush3.bf16.msra.mxu1 %v3958_v49  ;;  %2789 = vmatprep.subr.bf16.mxu0 %v3848_v3  ;;  %v4410_v49 = vld [vmem:[#allocation17_spill] sm:$0xff] }
 0x10a   : > { %3034 = vmatprep.subr.bf16.mxu1 %v4402_v9 }
 0x10c   : > { %2790 = vmatpush3.bf16.msra.mxu0 %v3856_v5 }
 0x10d   : > { %3035 = vmatpush3.bf16.msra.mxu1 %v3967_v51  ;;  %2791 = vmatprep.subr.bf16.mxu0 %v3864_v7  ;;  %v4408_v51 = vld [vmem:[#allocation15_spill] sm:$0xff] }
 0x10e   : > { %3036 = vmatprep.subr.bf16.mxu1 %v4402_v9 }
 0x110   : > { %2792 = vmatpush3.bf16.msra.mxu0 %v4403_v42 }
 0x111   : > { %3037 = vmatpush3.bf16.msra.mxu1 %v3974_v13  ;;  %2793 = vmatprep.subr.bf16.mxu0 %v4404_v46  ;;  %v4409_v13 = vld [vmem:[#allocation16_spill] sm:$0xff] }
 0x112   : > { %3038 = vmatprep.subr.bf16.mxu1 %v4402_v9 }
 0x114   : > { %2794 = vmatpush3.bf16.msra.mxu0 %v4405_v40 }
 0x115   : > { %3039 = vmatpush3.bf16.msra.mxu1 %v3981_v55  ;;  %2795 = vmatprep.subr.bf16.mxu0 %v4406_v48  ;;  %v2588_v55 = vcombine.low %v2580_v44, %v2580_v44  ;;  %v2597_v44 = vcombine.high %v2591_v11, %v2591_v11 }
 0x116   : > { %3040 = vmatprep.subr.bf16.mxu1 %v4402_v9 }
 0x118   : > { %2796 = vmatpush3.bf16.msra.mxu0 %v4407_v15 }
 0x119   : > { %3041 = vmatpush3.bf16.msra.mxu1 %v3988_v60  ;;  %2797 = vmatprep.subr.bf16.mxu0 %v4408_v51  ;;  %v3223_v60 = vld [vmem:[%s4324_s0 + $0x44] ss:$0 sps:$4 sm:$0xff]  }
 0x11a   : > { %3042 = vmatprep.subr.bf16.mxu1 %v4402_v9 }
 0x11c   : > { %2798 = vmatpush3.bf16.msra.mxu0 %v4409_v13 }
 0x11d   : > { %3043 = vmatpush3.bf16.msra.mxu1 %v3995_v32  ;;  %2799 = vmatprep.subr.bf16.mxu0 %v4410_v49  ;;  %v2599_v32 = vcombine.high %v2592_v17, %v2592_v17 }
 0x11e   : > { %3044 = vmatprep.subr.bf16.mxu1 %v4402_v9 }
 0x120   : > { %2800 = vmatpush3.bf16.msra.mxu0 %v3941_v19 }
 0x121   : > { %3045 = vmatpush3.bf16.msra.mxu1 %v4002_v36  ;;  %2816 = vmatprep.subr.bf16.mxu0 %v3667_v20 }
 0x122   : > { %2838 = vmatprep.subr.bf16.mxu1 %v3670_v21  ;;  %v4411_v21 = vld [vmem:[#allocation3_spill] sm:$0xff] }
 0x123   : > { %1843 = vmatmul.mubr.bf16.vlgmr.msra.gmra.mrb[16].mxu0 %v2588_v55  ;;  %v2598_v55 = vcombine.low %v2592_v17, %v2592_v17 }
 0x124   : > { %3047 = vmatmul.mubr.bf16.vlgmr.msra.gmra.mrb[16].mxu1 %v3223_v60  ;;  %2817 = vmatpush3.bf16.msra.mxu0 %v3674_v22  ;;  %v2594_v60 = vld [vmem:[%s4324_s0 + $0x60] sm:$0xff] }
 0x125   : > { %2839 = vmatpush3.bf16.msra.mxu1 %v3678_v23  ;;  %2818 = vmatprep.subr.bf16.mxu0 %v3682_v24  ;;  %v4412_v23 = vld [vmem:[#allocation4_spill] sm:$0xff] }
 0x126   : > { %2840 = vmatprep.subr.bf16.mxu1 %v3686_v25  ;;  %1961 = vmatprep.mubr.bf16.mxu0 %v2597_v44  ;;  %v4413_v25 = vld [vmem:[#allocation5_spill] sm:$0xff] }
 0x127   : > { %2001 = vmatprep.mubr.bf16.mxu1 %v2599_v32  ;;  %v4417_v32 = vld [vmem:[#allocation9_spill] sm:$0xff] }
 0x128   : > { %2819 = vmatpush3.bf16.msra.mxu0 %v3690_v26 }
 0x129   : > { %2841 = vmatpush3.bf16.msra.mxu1 %v3694_v27  ;;  %2820 = vmatprep.subr.bf16.mxu0 %v3698_v28  ;;  %v4414_v27 = vld [vmem:[#allocation6_spill] sm:$0xff] }
 0x12a   : > { %2842 = vmatprep.subr.bf16.mxu1 %v3702_v29  ;;  %v4415_v29 = vld [vmem:[#allocation7_spill] sm:$0xff] }
 0x12c   : > { %2821 = vmatpush3.bf16.msra.mxu0 %v3706_v30 }
 0x12d   : > { %2843 = vmatpush3.bf16.msra.mxu1 %v3710_v31  ;;  %2822 = vmatprep.subr.bf16.mxu0 %v4411_v21  ;;  %v4416_v31 = vld [vmem:[#allocation8_spill] sm:$0xff] }
 0x12e   : > { %2844 = vmatprep.subr.bf16.mxu1 %v3718_v33  ;;  %v2596_v33 = vcombine.low %v2591_v11, %v2591_v11  ;;  %v2603_v11 = vcombine.high %v2594_v60, %v2594_v60 }
 0x130   : > { %2823 = vmatpush3.bf16.msra.mxu0 %v3722_v34 }
 0x131   : > { %2845 = vmatpush3.bf16.msra.mxu1 %v3726_v35  ;;  %2824 = vmatprep.subr.bf16.mxu0 %v4412_v23  ;;  %v2593_v35 = vld [vmem:[%s4324_s0 + $0x58] sm:$0xff] }
 0x132   : > { %2846 = vmatprep.subr.bf16.mxu1 %v3734_v37  ;;  %v2601_v44 = vcombine.high %v2593_v35, %v2593_v35  ;;  %v2600_v17 = vcombine.low %v2593_v35, %v2593_v35  ;;  %v4420_v35 = vld [vmem:[#allocation21_spill] sm:$0xff] }
 0x134   : > { %2825 = vmatpush3.bf16.msra.mxu0 %v3738_v38 }
 0x135   : > { %2847 = vmatpush3.bf16.msra.mxu1 %v3742_v39  ;;  %2826 = vmatprep.subr.bf16.mxu0 %v4413_v25 }
 0x136   : > { %2848 = vmatprep.subr.bf16.mxu1 %v3750_v41 }
 0x138   : > { %2827 = vmatpush3.bf16.msra.mxu0 %v4414_v27 }
 0x139   : > { %2849 = vmatpush3.bf16.msra.mxu1 %v3758_v43  ;;  %2828 = vmatprep.subr.bf16.mxu0 %v4415_v29 }
 0x13a   : > { %2850 = vmatprep.subr.bf16.mxu1 %v3766_v45 }
 0x13c   : > { %2829 = vmatpush3.bf16.msra.mxu0 %v4416_v31 }
 0x13d   : > { %2851 = vmatpush3.bf16.msra.mxu1 %v3774_v47  ;;  %2830 = vmatprep.subr.bf16.mxu0 %v4417_v32 }
 0x13e   : > { %2852 = vmatprep.subr.bf16.mxu1 %v3787_v50 }
 0x140   : > { %2831 = vmatpush3.bf16.msra.mxu0 %v3796_v52 }
 0x141   : > { %2853 = vmatpush3.bf16.msra.mxu1 %v3800_v53  ;;  %2860 = vmatprep.subr.bf16.mxu0 %v3808_v56 }
 0x142   : > { %2882 = vmatprep.subr.bf16.mxu1 %v3812_v57 }
 0x143   : > { %1962 = vmatmul.mubr.bf16.vlgmr.msra.gmra.mrb[20].mxu0 %v2596_v33  ;;  %v4418_v33 = vld [vmem:[#allocation18_spill] sm:$0xff] }
 0x144   : > { %2002 = vmatmul.mubr.bf16.vlgmr.msra.gmra.mrb[20].mxu1 %v2598_v55  ;;  %2861 = vmatpush3.bf16.msra.mxu0 %v3818_v59  ;;  %v2602_v55 = vcombine.low %v2594_v60, %v2594_v60 }
 0x145   : > { %2883 = vmatpush3.bf16.msra.mxu1 %v3824_v61  ;;  %2862 = vmatprep.subr.bf16.mxu0 %v3828_v62 }
 0x146   : > { %2884 = vmatprep.subr.bf16.mxu1 %v3832_v63  ;;  %2041 = vmatprep.mubr.bf16.mxu0 %v2601_v44  ;;  %v2605_v44 = vld [vmem:[%s4324_s0 + $0x6c] sm:$0xff] }
 0x147   : > { %2081 = vmatprep.mubr.bf16.mxu1 %v2603_v11  ;;  %v2611_v11 = vcombine.high %v2605_v44, %v2605_v44 }
 0x148   : > { %2863 = vmatpush3.bf16.msra.mxu0 %v3836_v0 }
 0x149   : > { %2885 = vmatpush3.bf16.msra.mxu1 %v3840_v1  ;;  %2864 = vmatprep.subr.bf16.mxu0 %v3844_v2 }
 0x14a   : > { %2886 = vmatprep.subr.bf16.mxu1 %v3848_v3 }
 0x14c   : > { %2865 = vmatpush3.bf16.msra.mxu0 %v3852_v4 }
 0x14d   : > { %2887 = vmatpush3.bf16.msra.mxu1 %v3856_v5  ;;  %2866 = vmatprep.subr.bf16.mxu0 %v3860_v6 }
 0x14e   : > { %2888 = vmatprep.subr.bf16.mxu1 %v3864_v7 }
 0x150   : > { %2867 = vmatpush3.bf16.msra.mxu0 %v3868_v8 }
 0x151   : > { %2889 = vmatpush3.bf16.msra.mxu1 %v4403_v42  ;;  %2868 = vmatprep.subr.bf16.mxu0 %v3876_v10 }
 0x152   : > { %2890 = vmatprep.subr.bf16.mxu1 %v4404_v46 }
 0x154   : > { %2869 = vmatpush3.bf16.msra.mxu0 %v3884_v12 }
 0x155   : > { %2891 = vmatpush3.bf16.msra.mxu1 %v4405_v40  ;;  %2870 = vmatprep.subr.bf16.mxu0 %v3892_v14 }
 0x156   : > { %2892 = vmatprep.subr.bf16.mxu1 %v4406_v48 }
 0x158   : > { %2871 = vmatpush3.bf16.msra.mxu0 %v3900_v16 }
 0x159   : > { %2893 = vmatpush3.bf16.msra.mxu1 %v4407_v15  ;;  %2872 = vmatprep.subr.bf16.mxu0 %v3908_v18 }
 0x15a   : > { %2894 = vmatprep.subr.bf16.mxu1 %v4408_v51 }
 0x15c   : > { %2873 = vmatpush3.bf16.msra.mxu0 %v3916_v54 }
 0x15d   : > { %2895 = vmatpush3.bf16.msra.mxu1 %v4409_v13  ;;  %2874 = vmatprep.subr.bf16.mxu0 %v3924_v58  ;;  %v4419_v13 = vld [vmem:[#allocation20_spill] sm:$0xff] }
 0x15e   : > { %2896 = vmatprep.subr.bf16.mxu1 %v4410_v49 }
 0x160   : > { %2875 = vmatpush3.bf16.msra.mxu0 %v4418_v33 }
 0x161   : > { %2897 = vmatpush3.bf16.msra.mxu1 %v3941_v19  ;;  %3050 = vmatprep.subr.bf16.mxu0 %v4402_v9 }
 0x162   : > { %2913 = vmatprep.subr.bf16.mxu1 %v3667_v20  ;;  %v4421_v20 = vld [vmem:[#allocation22_spill] sm:$0xff] }
 0x163   : > { %2042 = vmatmul.mubr.bf16.vlgmr.msra.gmra.mrb[24].mxu0 %v2600_v17 }
 0x164   : > { %3051 = vmatpush3.bf16.msra.mxu0 %v4419_v13  ;;  %2082 = vmatmul.mubr.bf16.vlgmr.msra.gmra.mrb[24].mxu1 %v2602_v55  ;;  %v4424_v55 = vld [vmem:[#allocation25_spill] sm:$0xff] }
 0x165   : > { %2914 = vmatpush3.bf16.msra.mxu1 %v3674_v22  ;;  %3052 = vmatprep.subr.bf16.mxu0 %v4402_v9  ;;  %v4422_v22 = vld [vmem:[#allocation23_spill] sm:$0xff] }
 0x166   : > { %2915 = vmatprep.subr.bf16.mxu1 %v3682_v24  ;;  %3066 = vmatprep.mubr.msk.bf16.mxu0 %vm3291_vm0, %v4402_v9  ;;  %v4423_v24 = vld [vmem:[#allocation24_spill] sm:$0xff] }
 0x167   : > { %2200 = vmatprep.mubr.bf16.mxu1 %v2611_v11 }
 0x168   : > { %3053 = vmatpush3.bf16.msra.mxu0 %v4420_v35 }
 0x169   : > { %2916 = vmatpush3.bf16.msra.mxu1 %v3690_v26  ;;  %3054 = vmatprep.subr.bf16.mxu0 %v4402_v9 }
 0x16a   : > { %2917 = vmatprep.subr.bf16.mxu1 %v3698_v28 }
 0x16c   : > { %3055 = vmatpush3.bf16.msra.mxu0 %v4421_v20 }
 0x16d   : > { %2918 = vmatpush3.bf16.msra.mxu1 %v3706_v30  ;;  %3056 = vmatprep.subr.bf16.mxu0 %v4402_v9 }
 0x16e   : > { %2919 = vmatprep.subr.bf16.mxu1 %v4411_v21 }
 0x170   : > { %3057 = vmatpush3.bf16.msra.mxu0 %v4422_v22 }
 0x171   : > { %2920 = vmatpush3.bf16.msra.mxu1 %v3722_v34  ;;  %3058 = vmatprep.subr.bf16.mxu0 %v4402_v9 }
 0x172   : > { %2921 = vmatprep.subr.bf16.mxu1 %v4412_v23 }
 0x174   : > { %3059 = vmatpush3.bf16.msra.mxu0 %v4423_v24 }
 0x175   : > { %2922 = vmatpush3.bf16.msra.mxu1 %v3738_v38  ;;  %3060 = vmatprep.subr.bf16.mxu0 %v4402_v9 }
 0x176   : > { %v2638_v26 = vpop.f32.mrb[0].mxu0  ;;  %2923 = vmatprep.subr.bf16.mxu1 %v4413_v25  ;;  %v4425_v25 = vld [vmem:[#allocation26_spill] sm:$0xff] }
 0x177   : > { %v2660_v28 = vpop.f32.mrb[0].mxu1  ;;  %v2639_v30 = vpop.f32.mrb[1].mxu0 }
 0x178   : > { %v2640_v21 = vadd.f32 %v2639_v30, %v2638_v26  ;;  %v2661_v60 = vpop.f32.mrb[1].mxu1  ;;  %v2641_v17 = vpop.f32.mrb[2].mxu0  ;;  %3061 = vmatpush3.bf16.msra.mxu0 %v4424_v55  ;;  %v4209_v26 = vld [vmem:[%s4324_s0 + $0x74] sm:$0xff]  ;;  %v3243_v30 = vld [vmem:[%s3664_s7 + $0x80] sm:$0xff]  }
 0x179   : > { %v2662_v34 = vadd.f32 %v2661_v60, %v2660_v28  ;;  %v2642_v11 = vpop.f32.mrb[3].mxu0  ;;  %2924 = vmatpush3.bf16.msra.mxu1 %v4414_v27  ;;  %v2663_v23 = vpop.f32.mrb[2].mxu1  ;;  %3062 = vmatprep.subr.bf16.mxu0 %v4402_v9  ;;  %v3232_v27 = vld [vmem:[%s4324_s0 + $0x68] ss:$0 sps:$4 sm:$0xff]   ;;  %v2613_v28 = vcombine.high %v4209_v26, %v4209_v26  ;;  %v3247_v60 = vld [vmem:[%s3664_s7 + $0x90] sm:$0xff]   ;;  %v3249_v17 = vld [vmem:[%s3664_s7 + $0x98] sm:$0xff]  }
 0x17a   : > { %v2664_v38 = vpop.f32.mrb[3].mxu1  ;;  %2925 = vmatprep.subr.bf16.mxu1 %v4415_v29  ;;  %v2610_v29 = vcombine.low %v2605_v44, %v2605_v44 }
 0x17b   : > { %v1527_v19 = vadd.f32 %v2662_v34, %v2640_v21  ;;  %v3246_v21 = vld [vmem:[%s3664_s7 + $0xd0] sm:$0xff]  }
 0x17c   : > { %3063 = vmatpush3.bf16.msra.mxu0 %v4425_v25 }
 0x17d   : > { %2926 = vmatpush3.bf16.msra.mxu1 %v4416_v31  ;;  %3064 = vmatprep.subr.bf16.mxu0 %v4402_v9  ;;  %v4215_v31 = vld [vmem:[%s4324_s0 + $0x7c] sm:$0xff] }
 0x17e   : > { %2927 = vmatprep.subr.bf16.mxu1 %v4417_v32  ;;  %v3242_v32 = vld [vmem:[%s3664_s7 + $0xc0] sm:$0xff]   ;;  %v2615_v44 = vcombine.high %v4215_v31, %v4215_v31 }
 0x180   : > { %3065 = vmatpush3.bf16.msra.mxu0 %v4002_v36 }
 0x181   : > { %2928 = vmatpush3.bf16.msra.mxu1 %v3796_v52  ;;  %2935 = vmatprep.subr.bf16.mxu0 %v3242_v32  ;;  %v3244_v52 = vld [vmem:[%s3664_s7 + $0xc8] sm:$0xff]  }
 0x182   : > { %2957 = vmatprep.subr.bf16.mxu1 %v3808_v56  ;;  %v3245_v56 = vld [vmem:[%s3664_s7 + $0x88] sm:$0xff]  }
 0x183   : > { %3067 = vmatmul.mubr.bf16.vlgmr.msra.gmra.mrb[28].mxu0 %v3232_v27 }
 0x184   : > { %2936 = vmatpush3.bf16.msra.mxu0 %v3243_v30  ;;  %2201 = vmatmul.mubr.bf16.vlgmr.msra.gmra.mrb[28].mxu1 %v2610_v29 }
 0x185   : > { %2958 = vmatpush3.bf16.msra.mxu1 %v3818_v59  ;;  %2937 = vmatprep.subr.bf16.mxu0 %v3244_v52  ;;  %v3248_v59 = vld [vmem:[%s3664_s7 + $0xd8] sm:$0xff]  }
 0x186   : > { %2959 = vmatprep.subr.bf16.mxu1 %v3828_v62  ;;  %2240 = vmatprep.mubr.bf16.mxu0 %v2613_v28 }
 0x187   : > { %2280 = vmatprep.mubr.bf16.mxu1 %v2615_v44 }
 0x188   : > { %2938 = vmatpush3.bf16.msra.mxu0 %v3245_v56 }
 0x189   : > { %2960 = vmatpush3.bf16.msra.mxu1 %v3836_v0  ;;  %2939 = vmatprep.subr.bf16.mxu0 %v3246_v21 }
 0x18a   : > { %2961 = vmatprep.subr.bf16.mxu1 %v3844_v2 }
 0x18c   : > { %2940 = vmatpush3.bf16.msra.mxu0 %v3247_v60 }
 0x18d   : > { %2962 = vmatpush3.bf16.msra.mxu1 %v3852_v4  ;;  %2941 = vmatprep.subr.bf16.mxu0 %v3248_v59 }
 0x18e   : > { %2963 = vmatprep.subr.bf16.mxu1 %v3860_v6 }
 0x190   : > { %2942 = vmatpush3.bf16.msra.mxu0 %v3249_v17 }
 0x191   : > { %2964 = vmatpush3.bf16.msra.mxu1 %v3868_v8  ;;  %2943 = vmatprep.subr.bf16.mxu0 %v3734_v37 }
 0x192   : > { %2965 = vmatprep.subr.bf16.mxu1 %v3876_v10 }
 0x194   : > { %2944 = vmatpush3.bf16.msra.mxu0 %v3742_v39 }
 0x195   : > { %2966 = vmatpush3.bf16.msra.mxu1 %v3884_v12  ;;  %2945 = vmatprep.subr.bf16.mxu0 %v3750_v41 }
 0x196   : > { %v2682_v62 = vpop.f32.mrb[4].mxu0  ;;  %2967 = vmatprep.subr.bf16.mxu1 %v3892_v14  ;;  %v2614_v14 = vcombine.low %v4215_v31, %v4215_v31 }
 0x197   : > { %v2683_v0 = vpop.f32.mrb[5].mxu0  ;;  %v2704_v2 = vpop.f32.mrb[4].mxu1 }
 0x198   : > { %v2684_v4 = vadd.f32 %v2683_v0, %v2682_v62  ;;  %v2685_v6 = vpop.f32.mrb[6].mxu0  ;;  %2946 = vmatpush3.bf16.msra.mxu0 %v3758_v43  ;;  %v2705_v8 = vpop.f32.mrb[5].mxu1  ;;  %v2612_v43 = vcombine.low %v4209_v26, %v4209_v26 }
 0x199   : > { %v2686_v34 = vpop.f32.mrb[7].mxu0  ;;  %v2706_v37 = vadd.f32 %v2705_v8, %v2704_v2  ;;  %2968 = vmatpush3.bf16.msra.mxu1 %v3900_v16  ;;  %v2707_v10 = vpop.f32.mrb[6].mxu1  ;;  %2947 = vmatprep.subr.bf16.mxu0 %v3766_v45  ;;  %v2608_v45 = vld [vmem:[%s4324_s0 + $0x84] sm:$0xff] }
 0x19a   : > { %v1567_v39 = vadd.f32 %v2684_v4, %v1527_v19  ;;  %v2708_v12 = vpop.f32.mrb[7].mxu1  ;;  %2969 = vmatprep.subr.bf16.mxu1 %v3908_v18  ;;  %v4426_v18 = vld [vmem:[#allocation16_spill] sm:$0xff]  ;;  %v2616_v19 = vcombine.low %v2608_v45, %v2608_v45 }
 0x19c   : > { %2948 = vmatpush3.bf16.msra.mxu0 %v3774_v47  ;;  %v1607_v41 = vadd.f32 %v2706_v37, %v1567_v39  ;;  %v2617_v47 = vcombine.high %v2608_v45, %v2608_v45 }
 0x19d   : > { %2970 = vmatpush3.bf16.msra.mxu1 %v3916_v54  ;;  %2949 = vmatprep.subr.bf16.mxu0 %v3787_v50  ;;  %v4427_v54 = vld [vmem:[#allocation19_spill] sm:$0xff] }
 0x19e   : > { %2971 = vmatprep.subr.bf16.mxu1 %v3924_v58  ;;  %v3241_v58 = vld [vmem:[%s4324_s0 + $0x8c] ss:$0 sps:$4 sm:$0xff]  }
 0x1a0   : > { %2950 = vmatpush3.bf16.msra.mxu0 %v3800_v53 }
 0x1a1   : > { %2972 = vmatpush3.bf16.msra.mxu1 %v4418_v33  ;;  %2979 = vmatprep.subr.bf16.mxu0 %v3812_v57 }
 0x1a2   : > { %3070 = vmatprep.subr.bf16.mxu1 %v4402_v9 }
 0x1a3   : > { %2241 = vmatmul.mubr.bf16.vlgmr.msra.gmra.mrb[32].mxu0 %v2612_v43 }
 0x1a4   : > { %2980 = vmatpush3.bf16.msra.mxu0 %v3824_v61  ;;  %2281 = vmatmul.mubr.bf16.vlgmr.msra.gmra.mrb[32].mxu1 %v2614_v14 }
 0x1a5   : > { %3071 = vmatpush3.bf16.msra.mxu1 %v4419_v13  ;;  %2981 = vmatprep.subr.bf16.mxu0 %v3832_v63 }
 0x1a6   : > { %3072 = vmatprep.subr.bf16.mxu1 %v4402_v9  ;;  %2320 = vmatprep.mubr.bf16.mxu0 %v2617_v47 }
 0x1a7   : > { %3086 = vmatprep.mubr.msk.bf16.mxu1 %vm3291_vm0, %v4402_v9 }
 0x1a8   : > { %2982 = vmatpush3.bf16.msra.mxu0 %v3840_v1 }
 0x1a9   : > { %3073 = vmatpush3.bf16.msra.mxu1 %v4420_v35  ;;  %2983 = vmatprep.subr.bf16.mxu0 %v3848_v3 }
 0x1aa   : > { %3074 = vmatprep.subr.bf16.mxu1 %v4402_v9 }
 0x1ac   : > { %2984 = vmatpush3.bf16.msra.mxu0 %v3856_v5 }
 0x1ad   : > { %3075 = vmatpush3.bf16.msra.mxu1 %v4421_v20  ;;  %2985 = vmatprep.subr.bf16.mxu0 %v3864_v7 }
 0x1ae   : > { %3076 = vmatprep.subr.bf16.mxu1 %v4402_v9 }
 0x1b0   : > { %2986 = vmatpush3.bf16.msra.mxu0 %v4403_v42 }
 0x1b1   : > { %3077 = vmatpush3.bf16.msra.mxu1 %v4422_v22  ;;  %2987 = vmatprep.subr.bf16.mxu0 %v4404_v46 }
 0x1b2   : > { %3078 = vmatprep.subr.bf16.mxu1 %v4402_v9 }
 0x1b4   : > { %2988 = vmatpush3.bf16.msra.mxu0 %v4405_v40 }
 0x1b5   : > { %3079 = vmatpush3.bf16.msra.mxu1 %v4423_v24  ;;  %2989 = vmatprep.subr.bf16.mxu0 %v4406_v48 }
 0x1b6   : > { %v1646_v50 = vpop.f32.mrb[8].mxu0  ;;  %3080 = vmatprep.subr.bf16.mxu1 %v4402_v9 }
 0x1b7   : > { %v4285_v53 = vadd.f32 %v1646_v50, %v1607_v41  ;;  %v3028_v57 = vpop.f32.mrb[9].mxu0  ;;  %v2735_v61 = vpop.f32.mrb[8].mxu1 }
 0x1b8   : > { %v1649_v63 = vpop.f32.mrb[10].mxu0  ;;  %2990 = vmatpush3.bf16.msra.mxu0 %v4407_v15  ;;  %v2736_v1 = vpop.f32.mrb[9].mxu1 }
 0x1b9   : > { %v3029_v3 = vpop.f32.mrb[11].mxu0  ;;  %v2737_v5 = vadd.f32 %v2736_v1, %v2735_v61  ;;  %3081 = vmatpush3.bf16.msra.mxu1 %v4424_v55  ;;  %v2738_v7 = vpop.f32.mrb[10].mxu1  ;;  %2991 = vmatprep.subr.bf16.mxu0 %v4408_v51 }
 0x1ba   : > { %v2739_v16 = vpop.f32.mrb[11].mxu1  ;;  %3082 = vmatprep.subr.bf16.mxu1 %v4402_v9 }
 0x1bc   : > { %2992 = vmatpush3.bf16.msra.mxu0 %v4426_v18 }
 0x1bd   : > { %3083 = vmatpush3.bf16.msra.mxu1 %v4425_v25  ;;  %2993 = vmatprep.subr.bf16.mxu0 %v4410_v49 }
 0x1be   : > { %3084 = vmatprep.subr.bf16.mxu1 %v4402_v9 }
 0x1c0   : > { %2994 = vmatpush3.bf16.msra.mxu0 %v4427_v54 }
 0x1c1   : > { %3085 = vmatpush3.bf16.msra.mxu1 %v4002_v36 }
 0x1c3   : > { %2321 = vmatmul.mubr.bf16.vlgmr.msra.gmra.mrb[36].mxu0 %v2616_v19 }
 0x1c4   : > { %3087 = vmatmul.mubr.bf16.vlgmr.msra.gmra.mrb[36].mxu1 %v3241_v58 }
 0x1d6   : > { %v2757_v51 = vpop.f32.mrb[12].mxu0 }
 0x1d7   : > { %v2758_v13 = vpop.f32.mrb[13].mxu0  ;;  %v2779_v42 = vpop.f32.mrb[12].mxu1 }
 0x1d8   : > { %v2759_v46 = vadd.f32 %v2758_v13, %v2757_v51  ;;  %v2760_v40 = vpop.f32.mrb[14].mxu0  ;;  %v2780_v48 = vpop.f32.mrb[13].mxu1 }
 0x1d9   : > { %v2761_v49 = vpop.f32.mrb[15].mxu0  ;;  %v2781_v15 = vadd.f32 %v2780_v48, %v2779_v42  ;;  %v2782_v9 = vpop.f32.mrb[14].mxu1 }
 0x1da   : > { %v1765_v33 = vadd.f32 %v2759_v46, %v2737_v5  ;;  %v2783_v35 = vpop.f32.mrb[15].mxu1 }
 0x1dc   : > { %v1805_v20 = vadd.f32 %v2781_v15, %v1765_v33 }
 0x1f6   : > { %v2801_v22 = vpop.f32.mrb[16].mxu0 }
 0x1f7   : > { %v2802_v24 = vpop.f32.mrb[17].mxu0  ;;  %v1884_v55 = vpop.f32.mrb[16].mxu1 }
 0x1f8   : > { %v2803_v11 = vadd.f32 %v2802_v24, %v2801_v22  ;;  %v2804_v23 = vpop.f32.mrb[18].mxu0  ;;  %v3048_v36 = vpop.f32.mrb[17].mxu1 }
 0x1f9   : > { %v2805_v38 = vpop.f32.mrb[19].mxu0  ;;  %v1887_v25 = vpop.f32.mrb[18].mxu1  ;;  %v2619_v36 = vld [vmem:[%s829_s4] ss:$0 sm:$0xff] }
 0x1fa   : > { %v1845_v27 = vadd.f32 %v2803_v11, %v1805_v20  ;;  %v3049_v26 = vpop.f32.mrb[19].mxu1 }
 0x1fc   : > { %v1885_v29 = vadd.f32 %v1884_v55, %v1845_v27 }
 0x1fe   : > { %v1890_v31 = vmax.f32 %v4285_v53, %v1885_v29 }
 0x216   : > { %v2832_v32 = vpop.f32.mrb[20].mxu0 }
 0x217   : > { %v2854_v28 = vpop.f32.mrb[20].mxu1  ;;  %v2833_v44 = vpop.f32.mrb[21].mxu0 }
 0x218   : > { %v2834_v30 = vadd.f32 %v2833_v44, %v2832_v32  ;;  %v2855_v52 = vpop.f32.mrb[21].mxu1  ;;  %v2835_v56 = vpop.f32.mrb[22].mxu0 }
 0x219   : > { %v2856_v21 = vadd.f32 %v2855_v52, %v2854_v28  ;;  %v2836_v60 = vpop.f32.mrb[23].mxu0  ;;  %v2857_v59 = vpop.f32.mrb[22].mxu1 }
 0x21a   : > { %v2858_v17 = vpop.f32.mrb[23].mxu1 }
 0x21b   : > { %v2004_v62 = vadd.f32 %v2856_v21, %v2834_v30 }
 0x236   : > { %v2876_v0 = vpop.f32.mrb[24].mxu0 }
 0x237   : > { %v2877_v2 = vpop.f32.mrb[25].mxu0  ;;  %v2898_v4 = vpop.f32.mrb[24].mxu1 }
 0x238   : > { %v2878_v6 = vadd.f32 %v2877_v2, %v2876_v0  ;;  %v2879_v8 = vpop.f32.mrb[26].mxu0  ;;  %v2899_v34 = vpop.f32.mrb[25].mxu1 }
 0x239   : > { %v2880_v37 = vpop.f32.mrb[27].mxu0  ;;  %v2900_v10 = vadd.f32 %v2899_v34, %v2898_v4  ;;  %v2901_v39 = vpop.f32.mrb[26].mxu1 }
 0x23a   : > { %v2044_v12 = vadd.f32 %v2878_v6, %v2004_v62  ;;  %v2902_v41 = vpop.f32.mrb[27].mxu1 }
 0x23c   : > { %v2084_v43 = vadd.f32 %v2900_v10, %v2044_v12 }
 0x256   : > { %v2123_v45 = vpop.f32.mrb[28].mxu0 }
 0x257   : > { %v2124_v14 = vadd.f32 %v2123_v45, %v2084_v43  ;;  %v3068_v47 = vpop.f32.mrb[29].mxu0  ;;  %v2929_v50 = vpop.f32.mrb[28].mxu1 }
 0x258   : > { %v2126_v53 = vpop.f32.mrb[30].mxu0  ;;  %v2930_v57 = vpop.f32.mrb[29].mxu1 }
 0x259   : > { %v2129_v61 = vmax.f32 %v1890_v31, %v2124_v14  ;;  %v3069_v63 = vpop.f32.mrb[31].mxu0  ;;  %v2931_v1 = vadd.f32 %v2930_v57, %v2929_v50  ;;  %v2932_v3 = vpop.f32.mrb[30].mxu1 }
 0x25a   : > { %v2933_v5 = vpop.f32.mrb[31].mxu1 }
 0x276   : > { %v2951_v7 = vpop.f32.mrb[32].mxu0 }
 0x277   : > { %v2952_v16 = vpop.f32.mrb[33].mxu0  ;;  %v2973_v18 = vpop.f32.mrb[32].mxu1 }
 0x278   : > { %v2953_v19 = vadd.f32 %v2952_v16, %v2951_v7  ;;  %v2954_v54 = vpop.f32.mrb[34].mxu0  ;;  %v2974_v58 = vpop.f32.mrb[33].mxu1 }
 0x279   : > { %v2955_v51 = vpop.f32.mrb[35].mxu0  ;;  %v2975_v13 = vadd.f32 %v2974_v58, %v2973_v18  ;;  %v2976_v42 = vpop.f32.mrb[34].mxu1 }
 0x27a   : > { %v2243_v46 = vadd.f32 %v2953_v19, %v2931_v1  ;;  %v2977_v40 = vpop.f32.mrb[35].mxu1 }
 0x27c   : > { %v2283_v48 = vadd.f32 %v2975_v13, %v2243_v46 }
 0x296   : > { %v2995_v49 = vpop.f32.mrb[36].mxu0 }
 0x297   : > { %v2996_v15 = vpop.f32.mrb[37].mxu0  ;;  %v2362_v9 = vpop.f32.mrb[36].mxu1 }
 0x298   : > { %v2997_v33 = vadd.f32 %v2996_v15, %v2995_v49  ;;  %v2998_v35 = vpop.f32.mrb[38].mxu0  ;;  %v3088_v20 = vpop.f32.mrb[37].mxu1 }
 0x299   : > { %v2999_v22 = vpop.f32.mrb[39].mxu0  ;;  %v2365_v24 = vpop.f32.mrb[38].mxu1 }
 0x29a   : > { %v2323_v55 = vadd.f32 %v2997_v33, %v2283_v48  ;;  %v3089_v11 = vpop.f32.mrb[39].mxu1 }
 0x29c   : > { %v2363_v23 = vadd.f32 %v2362_v9, %v2323_v55 }
 0x29e   : > { %v2368_v38 = vmax.f32 %v2129_v61, %v2363_v23 }
 0x2a0   : > { %v2376_v25 = vadd.f32 %v2619_v36, %v2368_v38 }
 0x2a2   : > { %v2377_v27 = vmax.f32 %v2376_v25, 0.0 }
 0x2a4   : > { %v2378_v26 = vpack.c.bf16 %v2377_v27, %v2377_v27 }
 0x2a6   : > { %2379 = vst [vmem:[%s837_s9] sm:$0xf] %v2378_v26 }
 0x2a7 PF: > { %s13_s16 = sadd.s32 1, %s3288_s16   ;;  %s4428_s12 = smov %s3276_s13 }
 0x2a8   : > { %p10_p10 = scmp.ge.s32.totalorder %s13_s16, 4   ;;  %s4429_s13 = smov %s3347_s20 }
 0x2a9   : > { %s4430_s14 = smov %s3284_s15  ;;  %s4431_s15 = smov %s4433_s17 }
 0x2aa   :  { %12 = sbr.rel (!%p10_p10) target bundleno = 3 (0x3), region = 117 }

// kernel: vgg_forward.9
= control target key start
LH: loop header
LB: loop body
LE: loop exit
PB: predicated region body
PF: predicated region fallthrough
CT: control target
= control target key end

     0   :  { %vm34_vm0 = vcmask 1043456   ;;  %s779_s0 = inlined_call_operand.vmem [shape: bf16[2,4,512], index: 0, kind: input, shape index: {}]   ;;  %s780_s1 = inlined_call_operand.vmem [shape: bf16[512,128], index: 1, kind: input, shape index: {}]   ;;  %s781_s2 = inlined_call_operand.vmem [shape: f32[1,128], index: 2, kind: input, shape index: {}]   ;;  %s782_s3 = inlined_call_operand.hbm [shape: f32[2,128], index: 3, kind: output, shape index: {}]  }
   0x1   :  { %v573_v0 = vld [vmem:[%s780_s1 + $0x40] sm:$0xff]   ;;  %v577_v4 = vld [vmem:[%s780_s1 + $0x48] sm:$0xff]   ;;  %v581_v8 = vld [vmem:[%s780_s1 + $0x50] sm:$0xff]  }
   0x2   :  { %v574_v1 = vld [vmem:[%s780_s1 + $0xc0] sm:$0xff]   ;;  %528 = vmatprep.subr.bf16.mxu0 %v573_v0  ;;  %v578_v5 = vld [vmem:[%s780_s1 + $0xc8] sm:$0xff]   ;;  %v582_v9 = vld [vmem:[%s780_s1 + $0xd0] sm:$0xff]  }
   0x3   :  { %v575_v2 = vld [vmem:[%s780_s1] sm:$0xff]   ;;  %550 = vmatprep.subr.bf16.mxu1 %v574_v1  ;;  %v579_v6 = vld [vmem:[%s780_s1 + $0x8] sm:$0xff]   ;;  %v583_v10 = vld [vmem:[%s780_s1 + $0x10] sm:$0xff]  }
   0x4   :  { %v576_v3 = vld [vmem:[%s780_s1 + $0x80] sm:$0xff]   ;;  %529 = vmatpush3.bf16.msra.mxu0 %v575_v2  ;;  %v580_v7 = vld [vmem:[%s780_s1 + $0x88] sm:$0xff]   ;;  %v584_v11 = vld [vmem:[%s780_s1 + $0x90] sm:$0xff]  }
   0x5   :  { %551 = vmatpush3.bf16.msra.mxu1 %v576_v3  ;;  %530 = vmatprep.subr.bf16.mxu0 %v577_v4  ;;  %v585_v12 = vld [vmem:[%s780_s1 + $0x58] sm:$0xff]   ;;  %v589_v16 = vld [vmem:[%s780_s1 + $0x60] sm:$0xff]   ;;  %v593_v20 = vld [vmem:[%s780_s1 + $0x68] sm:$0xff]  }
   0x6   :  { %552 = vmatprep.subr.bf16.mxu1 %v578_v5  ;;  %v586_v13 = vld [vmem:[%s780_s1 + $0xd8] sm:$0xff]   ;;  %v590_v17 = vld [vmem:[%s780_s1 + $0xe0] sm:$0xff]   ;;  %v594_v21 = vld [vmem:[%s780_s1 + $0xe8] sm:$0xff]  }
   0x7   :  { %v587_v14 = vld [vmem:[%s780_s1 + $0x18] sm:$0xff]   ;;  %v591_v18 = vld [vmem:[%s780_s1 + $0x20] sm:$0xff]   ;;  %v595_v22 = vld [vmem:[%s780_s1 + $0x28] sm:$0xff]  }
   0x8   :  { %531 = vmatpush3.bf16.msra.mxu0 %v579_v6  ;;  %v588_v15 = vld [vmem:[%s780_s1 + $0x98] sm:$0xff]   ;;  %v592_v19 = vld [vmem:[%s780_s1 + $0xa0] sm:$0xff]   ;;  %v596_v23 = vld [vmem:[%s780_s1 + $0xa8] sm:$0xff]  }
   0x9   :  { %553 = vmatpush3.bf16.msra.mxu1 %v580_v7  ;;  %532 = vmatprep.subr.bf16.mxu0 %v581_v8  ;;  %v597_v24 = vld [vmem:[%s780_s1 + $0x70] sm:$0xff]   ;;  %v601_v28 = vld [vmem:[%s780_s1 + $0x78] sm:$0xff]   ;;  %v16_v32 = vld [vmem:[%s779_s0] sm:$0xff] }
   0xa   :  { %554 = vmatprep.subr.bf16.mxu1 %v582_v9  ;;  %v598_v25 = vld [vmem:[%s780_s1 + $0xf0] sm:$0xff]   ;;  %v602_v29 = vld [vmem:[%s780_s1 + $0xf8] sm:$0xff]   ;;  %v17_v33 = vld [vmem:[%s779_s0 + $0x8] sm:$0xff] }
   0xb   :  { %v599_v26 = vld [vmem:[%s780_s1 + $0x30] sm:$0xff]   ;;  %v603_v30 = vld [vmem:[%s780_s1 + $0x38] sm:$0xff]  }
   0xc   :  { %533 = vmatpush3.bf16.msra.mxu0 %v583_v10  ;;  %v600_v27 = vld [vmem:[%s780_s1 + $0xb0] sm:$0xff]   ;;  %v604_v31 = vld [vmem:[%s780_s1 + $0xb8] sm:$0xff]  }
   0xd   :  { %555 = vmatpush3.bf16.msra.mxu1 %v584_v11  ;;  %534 = vmatprep.subr.bf16.mxu0 %v585_v12 }
   0xe   :  { %556 = vmatprep.subr.bf16.mxu1 %v586_v13 }
  0x10   :  { %535 = vmatpush3.bf16.msra.mxu0 %v587_v14 }
  0x11   :  { %557 = vmatpush3.bf16.msra.mxu1 %v588_v15  ;;  %536 = vmatprep.subr.bf16.mxu0 %v589_v16 }
  0x12   :  { %558 = vmatprep.subr.bf16.mxu1 %v590_v17 }
  0x14   :  { %537 = vmatpush3.bf16.msra.mxu0 %v591_v18 }
  0x15   :  { %559 = vmatpush3.bf16.msra.mxu1 %v592_v19  ;;  %538 = vmatprep.subr.bf16.mxu0 %v593_v20 }
  0x16   :  { %560 = vmatprep.subr.bf16.mxu1 %v594_v21 }
  0x18   :  { %539 = vmatpush3.bf16.msra.mxu0 %v595_v22 }
  0x19   :  { %561 = vmatpush3.bf16.msra.mxu1 %v596_v23  ;;  %540 = vmatprep.subr.bf16.mxu0 %v597_v24 }
  0x1a   :  { %562 = vmatprep.subr.bf16.mxu1 %v598_v25 }
  0x1c   :  { %541 = vmatpush3.bf16.msra.mxu0 %v599_v26 }
  0x1d   :  { %563 = vmatpush3.bf16.msra.mxu1 %v600_v27  ;;  %542 = vmatprep.subr.bf16.mxu0 %v601_v28 }
  0x1e   :  { %564 = vmatprep.subr.bf16.mxu1 %v602_v29 }
  0x20   :  { %543 = vmatpush3.bf16.msra.mxu0 %v603_v30 }
  0x21   :  { %8 = vsyncpa [#allocation3], 0  ;;  %565 = vmatpush3.bf16.msra.mxu1 %v604_v31  ;;  %v18_v34 = vunpack.c.l.bf16 %v16_v32  ;;  %v20_v35 = vunpack.c.l.bf16 %v17_v33  ;;  %v19_v36 = vunpack.c.h.bf16 %v16_v32  ;;  %v21_v37 = vunpack.c.h.bf16 %v17_v33  ;;  %s629_s26 = smov [#allocation2]  }
  0x22   :  { %vm195_vm1 = vcmask 1041409   ;;  %s487_s27 = sshll.u32 %s629_s26, 4  ;;  %s488_s27 = int_to_ptr.vmem [resolvable:$true] %s487_s27 }
  0x23   :  { %v26_v38 = vcombine.high %v18_v34, %v18_v34  ;;  %v28_v39 = vcombine.high %v20_v35, %v20_v35  ;;  %v27_v40 = vcombine.high %v19_v36, %v19_v36  ;;  %v29_v41 = vcombine.high %v21_v37, %v21_v37  ;;  %s605_s28 = scalar_lea.vmem %s488_s27, 32  ;;  %p610_p1 = scmp.lt.s32.totalorder %s488_s27, %s488_s27 }
  0x24   :  { %v35_v42 = vsel %vm34_vm0, %v18_v34, 0.0  ;;  %v63_v43 = vsel %vm34_vm0, %v20_v35, 0.0  ;;  %v49_v44 = vsel %vm34_vm0, %v19_v36, 0.0  ;;  %v77_v45 = vsel %vm34_vm0, %v21_v37, 0.0  ;;  %p606_p0 = scmp.ne.s32.totalorder %s488_s27, %s605_s28  ;;  %p611_p2 = scmp.lt.s32.totalorder %s605_s28, %s605_s28 }
  0x25   :  { %v42_v46 = vsel %vm34_vm0, %v26_v38, 0.0  ;;  %v70_v47 = vsel %vm34_vm0, %v28_v39, 0.0  ;;  %v56_v48 = vsel %vm34_vm0, %v27_v40, 0.0  ;;  %v84_v49 = vsel %vm34_vm0, %v29_v41, 0.0 }
  0x26   :  { %v43_v50 = vrot.slane %v42_v46, 4  ;;  %v71_v51 = vrot.slane %v70_v47, 4  ;;  %v57_v52 = vrot.slane %v56_v48, 4  ;;  %v85_v53 = vrot.slane %v84_v49, 4  ;;  %p612_p3 = por %p611_p2, %p610_p1 }
  0x27   :  { %v36_v54 = vrot.slane %v35_v42, 4  ;;  %v64_v55 = vrot.slane %v63_v43, 4  ;;  %v50_v56 = vrot.slane %v49_v44, 4  ;;  %v78_v57 = vrot.slane %v77_v45, 4 }
  0x28   :  { %v44_v58 = vadd.f32 %v43_v50, %v42_v46  ;;  %v72_v59 = vadd.f32 %v71_v51, %v70_v47  ;;  %v58_v60 = vadd.f32 %v57_v52, %v56_v48  ;;  %v86_v61 = vadd.f32 %v85_v53, %v84_v49  ;;  %p613_p4 = pnand %p612_p3, %p606_p0 }
  0x29   :  { %v37_v62 = vadd.f32 %v36_v54, %v35_v42  ;;  %v65_v63 = vadd.f32 %v64_v55, %v63_v43  ;;  %v51_v0 = vadd.f32 %v50_v56, %v49_v44  ;;  %v79_v1 = vadd.f32 %v78_v57, %v77_v45 }
  0x2a   :  { %v45_v2 = vrot.slane %v44_v58, 2  ;;  %v73_v3 = vrot.slane %v72_v59, 2  ;;  %v59_v4 = vrot.slane %v58_v60, 2  ;;  %v87_v5 = vrot.slane %v86_v61, 2 }
  0x2b   :  { %v38_v6 = vrot.slane %v37_v62, 2  ;;  %v66_v7 = vrot.slane %v65_v63, 2  ;;  %v52_v8 = vrot.slane %v51_v0, 2  ;;  %v80_v9 = vrot.slane %v79_v1, 2 }
  0x2c   :  { %v46_v10 = vadd.f32 %v45_v2, %v44_v58  ;;  %v74_v11 = vadd.f32 %v73_v3, %v72_v59  ;;  %v60_v12 = vadd.f32 %v59_v4, %v58_v60  ;;  %v88_v13 = vadd.f32 %v87_v5, %v86_v61  ;;  %v495_v4 = vld [vmem:[%s781_s2] ss:$0 sm:$0xff] }
  0x2d   :  { %v39_v14 = vadd.f32 %v38_v6, %v37_v62  ;;  %v67_v15 = vadd.f32 %v66_v7, %v65_v63  ;;  %v53_v16 = vadd.f32 %v52_v8, %v51_v0  ;;  %v81_v17 = vadd.f32 %v80_v9, %v79_v1 }
  0x2e   :  { %v47_v18 = vrot.slane %v46_v10, 1  ;;  %v75_v19 = vrot.slane %v74_v11, 1  ;;  %v61_v20 = vrot.slane %v60_v12, 1  ;;  %v89_v21 = vrot.slane %v88_v13, 1 }
  0x2f   :  { %v40_v22 = vrot.slane %v39_v14, 1  ;;  %v68_v23 = vrot.slane %v67_v15, 1  ;;  %v54_v24 = vrot.slane %v53_v16, 1  ;;  %v82_v25 = vrot.slane %v81_v17, 1 }
  0x30   :  { %v48_v26 = vadd.f32 %v47_v18, %v46_v10  ;;  %v76_v27 = vadd.f32 %v75_v19, %v74_v11  ;;  %v62_v28 = vadd.f32 %v61_v20, %v60_v12  ;;  %v90_v29 = vadd.f32 %v89_v21, %v88_v13 }
  0x31   :  { %v41_v30 = vadd.f32 %v40_v22, %v39_v14  ;;  %v69_v31 = vadd.f32 %v68_v23, %v67_v15  ;;  %v55_v32 = vadd.f32 %v54_v24, %v53_v16  ;;  %v83_v33 = vadd.f32 %v82_v25, %v81_v17 }
  0x32   :  { %v93_v34 = vmul.f32 0.25, %v48_v26  ;;  %v97_v35 = vmul.f32 0.25, %v76_v27  ;;  %v95_v36 = vmul.f32 0.25, %v62_v28  ;;  %v99_v37 = vmul.f32 0.25, %v90_v29 }
  0x33   :  { %v92_v38 = vmul.f32 0.25, %v41_v30  ;;  %v96_v39 = vmul.f32 0.25, %v69_v31  ;;  %v94_v40 = vmul.f32 0.25, %v55_v32  ;;  %v98_v41 = vmul.f32 0.25, %v83_v33 }
  0x34   :  { %v101_v42 = vpack.c.bf16 %v93_v34, %v93_v34  ;;  %v105_v43 = vpack.c.bf16 %v97_v35, %v97_v35  ;;  %v103_v44 = vpack.c.bf16 %v95_v36, %v95_v36  ;;  %v107_v45 = vpack.c.bf16 %v99_v37, %v99_v37 }
  0x35   :  { %v100_v46 = vpack.c.bf16 %v92_v38, %v92_v38  ;;  %v104_v47 = vpack.c.bf16 %v96_v39, %v96_v39  ;;  %v102_v48 = vpack.c.bf16 %v94_v40, %v94_v40  ;;  %v106_v49 = vpack.c.bf16 %v98_v41, %v98_v41 }
  0x36   :  { %v188_v50 = vunpack.c.l.b16 %v101_v42  ;;  %v192_v51 = vunpack.c.l.b16 %v105_v43  ;;  %v190_v52 = vunpack.c.l.b16 %v103_v44  ;;  %v194_v53 = vunpack.c.l.b16 %v107_v45 }
  0x37   :  { %v187_v54 = vunpack.c.l.b16 %v100_v46  ;;  %v191_v55 = vunpack.c.l.b16 %v104_v47  ;;  %v189_v56 = vunpack.c.l.b16 %v102_v48  ;;  %v193_v57 = vunpack.c.l.b16 %v106_v49 }
  0x38   :  { %v197_v58 = vsel %vm195_vm1, %v192_v51, %v188_v50  ;;  %v199_v59 = vsel %vm195_vm1, %v194_v53, %v190_v52 }
  0x39   :  { %v201_v60 = vpack.c.b16 %v197_v58, %v197_v58  ;;  %v203_v61 = vpack.c.b16 %v199_v59, %v199_v59  ;;  %v196_v62 = vsel %vm195_vm1, %v191_v55, %v187_v54  ;;  %v198_v63 = vsel %vm195_vm1, %v193_v57, %v189_v56 }
  0x3a   :  { %v200_v0 = vpack.c.b16 %v196_v62, %v196_v62  ;;  %v202_v1 = vpack.c.b16 %v198_v63, %v198_v63 }
  0x3b   :  { %432 = vmatprep.mubr.bf16.mxu0 %v201_v60  ;;  %472 = vmatprep.mubr.bf16.mxu1 %v203_v61 }
  0x3c   :  { %433 = vmatmul.mubr.bf16.vlgmr.msra.gmra.mrb[0].mxu0 %v200_v0  ;;  %473 = vmatmul.mubr.bf16.vlgmr.msra.gmra.mrb[0].mxu1 %v202_v1 }
 0x10f   :  { %v544_v2 = vpop.f32.mrb[0].mxu0  ;;  %v566_v3 = vpop.f32.mrb[0].mxu1 }
 0x110   :  { %v545_v5 = vpop.f32.mrb[1].mxu0  ;;  %v567_v6 = vpop.f32.mrb[1].mxu1 }
 0x111   :  { %v546_v7 = vadd.f32 %v545_v5, %v544_v2  ;;  %v568_v8 = vadd.f32 %v567_v6, %v566_v3  ;;  %v547_v9 = vpop.f32.mrb[2].mxu0  ;;  %v569_v10 = vpop.f32.mrb[2].mxu1 }
 0x112   :  { %v548_v11 = vpop.f32.mrb[3].mxu0  ;;  %v570_v12 = vpop.f32.mrb[3].mxu1 }
 0x113   :  { %v435_v13 = vadd.f32 %v546_v7, %v495_v4 }
 0x115   :  { %v475_v14 = vadd.f32 %v568_v8, %v435_v13 }
 0x117   :  { %480 = vst [vmem:[#allocation2] sm:$0x3] %v475_v14 }
 0x118   :  { %616 = shalt.err (!%p613_p4)
}
 0x119   :  { %s617_s30 = scalar_lea.hbm %s782_s3, 32 }
 0x11a   :  { %p618_p5 = scmp.ne.s32.totalorder %s782_s3, %s617_s30  ;;  %p621_p6 = scmp.lt.u32.totalorder %s617_s30, %s782_s3 }
 0x11c   :  { %p623_p7 = pnand %p621_p6, %p618_p5 }
 0x11e   :  { %626 = shalt.err (!%p623_p7)
}
 0x11f   :  { %490 = dma.vmem_to_hbm [thread:$0]  %s488_s27, 32, %s782_s3, [#allocation3]  }
 0x120   :  { %627 = dma.done.wait [#allocation3], 32  }
 0x121   :  { %628 = vsyncadd [#allocation3], 4294967264 }
 0x122   :  { %494 = vsyncpa [#allocation3], 1 }

// kernel: vgg_forward.8
= control target key start
LH: loop header
LB: loop body
LE: loop exit
PB: predicated region body
PF: predicated region fallthrough
CT: control target
= control target key end

     0   :  { %s3752_s12 = smov 0   ;;  %s3754_s13 = smov 0   ;;  %s4620_s0 = inlined_call_operand.vmem [shape: bf16[1,8,2304], index: 0, kind: input, shape index: {}]   ;;  %s4621_s1 = inlined_call_operand.vmem [shape: bf16[2304,512], index: 1, kind: input, shape index: {}]   ;;  %s4622_s2 = inlined_call_operand.vmem [shape: f32[1,512], index: 2, kind: input, shape index: {}]   ;;  %s4623_s3 = inlined_call_operand.vmem [shape: bf16[8,512], index: 3, kind: output, shape index: {}]  }
   0x1   :  { %s3756_s14 = smov 0   ;;  %s3758_s15 = smov 0  }
   0x2   :  { %s3760_s16 = smov 0  }
   0x3 LB: > { %s25_s17 = sadd.s32 1, %s3726_s15  ;;  %p65_p1 = scmp.ne.s32.totalorder %s3718_s13, %s3714_s12  ;;  %s3730_s16 = sphi %s3760_s16, %s13_s16   ;;  %s3726_s15 = sphi %s3758_s15, %s4627_s15   ;;  %s3722_s14 = sphi %s3756_s14, %s4626_s14   ;;  %s3718_s13 = sphi %s3754_s13, %s4625_s13   ;;  %s3714_s12 = sphi %s3752_s12, %s4624_s12  }
   0x4   : > { %p27_p0 = scmp.ge.s32.totalorder %s25_s17, 4  ;;  %p66_p2 = scmp.eq.s32.totalorder %s3730_s16, 0 }
   0x5   : > { %s58_s19 = sadd.s32 1, %s3718_s13  ;;  %p3121_p5 = scmp.ge.s32.totalorder %s3730_s16, 4 }
   0x6   : > { %s4629_s17 = smov (%p27_p0, %s25_s17), 0  ;;  %p67_p3 = por %p66_p2, %p65_p1 }
   0x7   : > { %s55_s18 = ssub.s32 %s3726_s15, %s4629_s17  ;;  %153 = sbr.rel (%p3121_p5) target bundleno = 210 (0xd2), region = 20 }
   0x8   : > { %p56_p4 = scmp.eq.s32.totalorder %s55_s18, 0 }
   0xa   : > { %s3787_s20 = scalar_select %p56_p4, %s3718_s13, %s58_s19  }
   0xe   : > { %156 = sbr.rel (!%p67_p3) target bundleno = 210 (0xd2), region = 24  ;;  %s158_s21 = sand.u32 (%p67_p3), 1, %s3718_s13  }
   0xf   : > { %s3122_s22 = sshll.u32 (%p67_p3), %s3726_s15, 2  ;;  %s3488_s23 = smul.u32 (%p67_p3), 1152, %s158_s21 }
  0x10   : > { %s3795_s26 = scalar_lea.vmem (%p67_p3), %s4621_s1, %s3122_s22 }
  0x11   : > { %v178_v0 = vld [vmem:[%s3795_s26] sm:$0xf] (%p67_p3)  ;;  %v180_v1 = vld [vmem:[%s3795_s26 + $0x10] sm:$0xf] (%p67_p3)  ;;  %s3802_s27 = scalar_lea.vmem (%p67_p3), [#allocation2], %s3488_s23 }
  0x12   : > { %v182_v2 = vld [vmem:[%s3795_s26 + $0x20] sm:$0xf] (%p67_p3)  ;;  %v184_v3 = vld [vmem:[%s3795_s26 + $0x30] sm:$0xf] (%p67_p3)  ;;  %179 = vst [vmem:[%s3802_s27] sm:$0xf] (%p67_p3), %v178_v0 }
  0x13   : > { %v186_v4 = vld [vmem:[%s3795_s26 + $0x40] sm:$0xf] (%p67_p3)  ;;  %181 = vst [vmem:[%s3802_s27 + $0x4] sm:$0xf] (%p67_p3), %v180_v1  ;;  %183 = vst [vmem:[%s3802_s27 + $0x8] sm:$0xf] (%p67_p3), %v182_v2 }
  0x14   : > { %185 = vst [vmem:[%s3802_s27 + $0xc] sm:$0xf] (%p67_p3), %v184_v3  ;;  %187 = vst [vmem:[%s3802_s27 + $0x10] sm:$0xf] (%p67_p3), %v186_v4  ;;  %v188_v5 = vld [vmem:[%s3795_s26 + $0x50] sm:$0xf] (%p67_p3) }
  0x15   : > { %v190_v6 = vld [vmem:[%s3795_s26 + $0x60] sm:$0xf]  ;;  %v192_v7 = vld [vmem:[%s3795_s26 + $0x70] sm:$0xf]  ;;  %189 = vst [vmem:[%s3802_s27 + $0x14] sm:$0xf] %v188_v5 }
  0x16   : > { %191 = vst [vmem:[%s3802_s27 + $0x18] sm:$0xf] %v190_v6  ;;  %193 = vst [vmem:[%s3802_s27 + $0x1c] sm:$0xf] %v192_v7  ;;  %v194_v8 = vld [vmem:[%s3795_s26 + $0x80] sm:$0xf] }
  0x17   : > { %v196_v9 = vld [vmem:[%s3795_s26 + $0x90] sm:$0xf]  ;;  %v198_v10 = vld [vmem:[%s3795_s26 + $0xa0] sm:$0xf]  ;;  %195 = vst [vmem:[%s3802_s27 + $0x20] sm:$0xf] %v194_v8 }
  0x18   : > { %197 = vst [vmem:[%s3802_s27 + $0x24] sm:$0xf] %v196_v9  ;;  %199 = vst [vmem:[%s3802_s27 + $0x28] sm:$0xf] %v198_v10  ;;  %v200_v11 = vld [vmem:[%s3795_s26 + $0xb0] sm:$0xf] }
  0x19   : > { %v202_v12 = vld [vmem:[%s3795_s26 + $0xc0] sm:$0xf]  ;;  %v204_v13 = vld [vmem:[%s3795_s26 + $0xd0] sm:$0xf]  ;;  %201 = vst [vmem:[%s3802_s27 + $0x2c] sm:$0xf] %v200_v11 }
  0x1a   : > { %203 = vst [vmem:[%s3802_s27 + $0x30] sm:$0xf] %v202_v12  ;;  %205 = vst [vmem:[%s3802_s27 + $0x34] sm:$0xf] %v204_v13  ;;  %v206_v14 = vld [vmem:[%s3795_s26 + $0xe0] sm:$0xf] }
  0x1b   : > { %v208_v15 = vld [vmem:[%s3795_s26 + $0xf0] sm:$0xf]  ;;  %v210_v16 = vld [vmem:[%s3795_s26 + $0x100] sm:$0xf]  ;;  %207 = vst [vmem:[%s3802_s27 + $0x38] sm:$0xf] %v206_v14 }
  0x1c   : > { %209 = vst [vmem:[%s3802_s27 + $0x3c] sm:$0xf] %v208_v15  ;;  %211 = vst [vmem:[%s3802_s27 + $0x40] sm:$0xf] %v210_v16  ;;  %v212_v17 = vld [vmem:[%s3795_s26 + $0x110] sm:$0xf] }
  0x1d   : > { %v214_v18 = vld [vmem:[%s3795_s26 + $0x120] sm:$0xf]  ;;  %v216_v19 = vld [vmem:[%s3795_s26 + $0x130] sm:$0xf]  ;;  %213 = vst [vmem:[%s3802_s27 + $0x44] sm:$0xf] %v212_v17 }
  0x1e   : > { %215 = vst [vmem:[%s3802_s27 + $0x48] sm:$0xf] %v214_v18  ;;  %217 = vst [vmem:[%s3802_s27 + $0x4c] sm:$0xf] %v216_v19  ;;  %v218_v20 = vld [vmem:[%s3795_s26 + $0x140] sm:$0xf] }
  0x1f   : > { %v220_v21 = vld [vmem:[%s3795_s26 + $0x150] sm:$0xf]  ;;  %v222_v22 = vld [vmem:[%s3795_s26 + $0x160] sm:$0xf]  ;;  %219 = vst [vmem:[%s3802_s27 + $0x50] sm:$0xf] %v218_v20 }
  0x20   : > { %221 = vst [vmem:[%s3802_s27 + $0x54] sm:$0xf] %v220_v21  ;;  %223 = vst [vmem:[%s3802_s27 + $0x58] sm:$0xf] %v222_v22  ;;  %v224_v23 = vld [vmem:[%s3795_s26 + $0x170] sm:$0xf] }
  0x21   : > { %v226_v24 = vld [vmem:[%s3795_s26 + $0x180] sm:$0xf]  ;;  %v228_v25 = vld [vmem:[%s3795_s26 + $0x190] sm:$0xf]  ;;  %225 = vst [vmem:[%s3802_s27 + $0x5c] sm:$0xf] %v224_v23 }
  0x22   : > { %227 = vst [vmem:[%s3802_s27 + $0x60] sm:$0xf] %v226_v24  ;;  %229 = vst [vmem:[%s3802_s27 + $0x64] sm:$0xf] %v228_v25  ;;  %v230_v26 = vld [vmem:[%s3795_s26 + $0x1a0] sm:$0xf] }
  0x23   : > { %v232_v27 = vld [vmem:[%s3795_s26 + $0x1b0] sm:$0xf]  ;;  %v234_v28 = vld [vmem:[%s3795_s26 + $0x1c0] sm:$0xf]  ;;  %231 = vst [vmem:[%s3802_s27 + $0x68] sm:$0xf] %v230_v26 }
  0x24   : > { %233 = vst [vmem:[%s3802_s27 + $0x6c] sm:$0xf] %v232_v27  ;;  %235 = vst [vmem:[%s3802_s27 + $0x70] sm:$0xf] %v234_v28  ;;  %v236_v29 = vld [vmem:[%s3795_s26 + $0x1d0] sm:$0xf] }
  0x25   : > { %v238_v30 = vld [vmem:[%s3795_s26 + $0x1e0] sm:$0xf]  ;;  %v240_v31 = vld [vmem:[%s3795_s26 + $0x1f0] sm:$0xf]  ;;  %237 = vst [vmem:[%s3802_s27 + $0x74] sm:$0xf] %v236_v29 }
  0x26   : > { %239 = vst [vmem:[%s3802_s27 + $0x78] sm:$0xf] %v238_v30  ;;  %241 = vst [vmem:[%s3802_s27 + $0x7c] sm:$0xf] %v240_v31  ;;  %v242_v32 = vld [vmem:[%s3795_s26 + $0x200] sm:$0xf] }
  0x27   : > { %v244_v33 = vld [vmem:[%s3795_s26 + $0x210] sm:$0xf]  ;;  %v246_v34 = vld [vmem:[%s3795_s26 + $0x220] sm:$0xf]  ;;  %243 = vst [vmem:[%s3802_s27 + $0x80] sm:$0xf] %v242_v32 }
  0x28   : > { %245 = vst [vmem:[%s3802_s27 + $0x84] sm:$0xf] %v244_v33  ;;  %247 = vst [vmem:[%s3802_s27 + $0x88] sm:$0xf] %v246_v34  ;;  %v248_v35 = vld [vmem:[%s3795_s26 + $0x230] sm:$0xf] }
  0x29   : > { %v250_v36 = vld [vmem:[%s3795_s26 + $0x240] sm:$0xf]  ;;  %v252_v37 = vld [vmem:[%s3795_s26 + $0x250] sm:$0xf]  ;;  %249 = vst [vmem:[%s3802_s27 + $0x8c] sm:$0xf] %v248_v35 }
  0x2a   : > { %251 = vst [vmem:[%s3802_s27 + $0x90] sm:$0xf] %v250_v36  ;;  %253 = vst [vmem:[%s3802_s27 + $0x94] sm:$0xf] %v252_v37  ;;  %v254_v38 = vld [vmem:[%s3795_s26 + $0x260] sm:$0xf] }
  0x2b   : > { %v256_v39 = vld [vmem:[%s3795_s26 + $0x270] sm:$0xf]  ;;  %v258_v40 = vld [vmem:[%s3795_s26 + $0x280] sm:$0xf]  ;;  %255 = vst [vmem:[%s3802_s27 + $0x98] sm:$0xf] %v254_v38 }
  0x2c   : > { %257 = vst [vmem:[%s3802_s27 + $0x9c] sm:$0xf] %v256_v39  ;;  %259 = vst [vmem:[%s3802_s27 + $0xa0] sm:$0xf] %v258_v40  ;;  %v260_v41 = vld [vmem:[%s3795_s26 + $0x290] sm:$0xf] }
  0x2d   : > { %v262_v42 = vld [vmem:[%s3795_s26 + $0x2a0] sm:$0xf]  ;;  %v264_v43 = vld [vmem:[%s3795_s26 + $0x2b0] sm:$0xf]  ;;  %261 = vst [vmem:[%s3802_s27 + $0xa4] sm:$0xf] %v260_v41 }
  0x2e   : > { %263 = vst [vmem:[%s3802_s27 + $0xa8] sm:$0xf] %v262_v42  ;;  %265 = vst [vmem:[%s3802_s27 + $0xac] sm:$0xf] %v264_v43  ;;  %v266_v44 = vld [vmem:[%s3795_s26 + $0x2c0] sm:$0xf] }
  0x2f   : > { %v268_v45 = vld [vmem:[%s3795_s26 + $0x2d0] sm:$0xf]  ;;  %v270_v46 = vld [vmem:[%s3795_s26 + $0x2e0] sm:$0xf]  ;;  %267 = vst [vmem:[%s3802_s27 + $0xb0] sm:$0xf] %v266_v44 }
  0x30   : > { %269 = vst [vmem:[%s3802_s27 + $0xb4] sm:$0xf] %v268_v45  ;;  %271 = vst [vmem:[%s3802_s27 + $0xb8] sm:$0xf] %v270_v46  ;;  %v272_v47 = vld [vmem:[%s3795_s26 + $0x2f0] sm:$0xf] }
  0x31   : > { %v274_v48 = vld [vmem:[%s3795_s26 + $0x300] sm:$0xf]  ;;  %v276_v49 = vld [vmem:[%s3795_s26 + $0x310] sm:$0xf]  ;;  %273 = vst [vmem:[%s3802_s27 + $0xbc] sm:$0xf] %v272_v47 }
  0x32   : > { %275 = vst [vmem:[%s3802_s27 + $0xc0] sm:$0xf] %v274_v48  ;;  %277 = vst [vmem:[%s3802_s27 + $0xc4] sm:$0xf] %v276_v49  ;;  %v278_v50 = vld [vmem:[%s3795_s26 + $0x320] sm:$0xf] }
  0x33   : > { %v280_v51 = vld [vmem:[%s3795_s26 + $0x330] sm:$0xf]  ;;  %v282_v52 = vld [vmem:[%s3795_s26 + $0x340] sm:$0xf]  ;;  %279 = vst [vmem:[%s3802_s27 + $0xc8] sm:$0xf] %v278_v50 }
  0x34   : > { %281 = vst [vmem:[%s3802_s27 + $0xcc] sm:$0xf] %v280_v51  ;;  %283 = vst [vmem:[%s3802_s27 + $0xd0] sm:$0xf] %v282_v52  ;;  %v284_v53 = vld [vmem:[%s3795_s26 + $0x350] sm:$0xf] }
  0x35   : > { %v286_v54 = vld [vmem:[%s3795_s26 + $0x360] sm:$0xf]  ;;  %v288_v55 = vld [vmem:[%s3795_s26 + $0x370] sm:$0xf]  ;;  %285 = vst [vmem:[%s3802_s27 + $0xd4] sm:$0xf] %v284_v53 }
  0x36   : > { %287 = vst [vmem:[%s3802_s27 + $0xd8] sm:$0xf] %v286_v54  ;;  %289 = vst [vmem:[%s3802_s27 + $0xdc] sm:$0xf] %v288_v55  ;;  %v290_v56 = vld [vmem:[%s3795_s26 + $0x380] sm:$0xf] }
  0x37   : > { %v292_v57 = vld [vmem:[%s3795_s26 + $0x390] sm:$0xf]  ;;  %v294_v58 = vld [vmem:[%s3795_s26 + $0x3a0] sm:$0xf]  ;;  %291 = vst [vmem:[%s3802_s27 + $0xe0] sm:$0xf] %v290_v56 }
  0x38   : > { %293 = vst [vmem:[%s3802_s27 + $0xe4] sm:$0xf] %v292_v57  ;;  %295 = vst [vmem:[%s3802_s27 + $0xe8] sm:$0xf] %v294_v58  ;;  %v296_v59 = vld [vmem:[%s3795_s26 + $0x3b0] sm:$0xf] }
  0x39   : > { %v298_v60 = vld [vmem:[%s3795_s26 + $0x3c0] sm:$0xf]  ;;  %v300_v61 = vld [vmem:[%s3795_s26 + $0x3d0] sm:$0xf]  ;;  %297 = vst [vmem:[%s3802_s27 + $0xec] sm:$0xf] %v296_v59 }
  0x3a   : > { %299 = vst [vmem:[%s3802_s27 + $0xf0] sm:$0xf] %v298_v60  ;;  %301 = vst [vmem:[%s3802_s27 + $0xf4] sm:$0xf] %v300_v61  ;;  %v302_v62 = vld [vmem:[%s3795_s26 + $0x3e0] sm:$0xf] }
  0x3b   : > { %v304_v63 = vld [vmem:[%s3795_s26 + $0x3f0] sm:$0xf]  ;;  %v306_v0 = vld [vmem:[%s3795_s26 + $0x400] sm:$0xf]  ;;  %303 = vst [vmem:[%s3802_s27 + $0xf8] sm:$0xf] %v302_v62 }
  0x3c   : > { %305 = vst [vmem:[%s3802_s27 + $0xfc] sm:$0xf] %v304_v63  ;;  %307 = vst [vmem:[%s3802_s27 + $0x100] sm:$0xf] %v306_v0  ;;  %v308_v1 = vld [vmem:[%s3795_s26 + $0x410] sm:$0xf] }
  0x3d   : > { %v310_v2 = vld [vmem:[%s3795_s26 + $0x420] sm:$0xf]  ;;  %v312_v3 = vld [vmem:[%s3795_s26 + $0x430] sm:$0xf]  ;;  %309 = vst [vmem:[%s3802_s27 + $0x104] sm:$0xf] %v308_v1 }
  0x3e   : > { %311 = vst [vmem:[%s3802_s27 + $0x108] sm:$0xf] %v310_v2  ;;  %313 = vst [vmem:[%s3802_s27 + $0x10c] sm:$0xf] %v312_v3  ;;  %v314_v4 = vld [vmem:[%s3795_s26 + $0x440] sm:$0xf] }
  0x3f   : > { %v316_v5 = vld [vmem:[%s3795_s26 + $0x450] sm:$0xf]  ;;  %v318_v6 = vld [vmem:[%s3795_s26 + $0x460] sm:$0xf]  ;;  %315 = vst [vmem:[%s3802_s27 + $0x110] sm:$0xf] %v314_v4 }
  0x40   : > { %317 = vst [vmem:[%s3802_s27 + $0x114] sm:$0xf] %v316_v5  ;;  %319 = vst [vmem:[%s3802_s27 + $0x118] sm:$0xf] %v318_v6  ;;  %v320_v7 = vld [vmem:[%s3795_s26 + $0x470] sm:$0xf] }
  0x41   : > { %v322_v8 = vld [vmem:[%s3795_s26 + $0x480] sm:$0xf]  ;;  %v324_v9 = vld [vmem:[%s3795_s26 + $0x490] sm:$0xf]  ;;  %321 = vst [vmem:[%s3802_s27 + $0x11c] sm:$0xf] %v320_v7 }
  0x42   : > { %323 = vst [vmem:[%s3802_s27 + $0x120] sm:$0xf] %v322_v8  ;;  %325 = vst [vmem:[%s3802_s27 + $0x124] sm:$0xf] %v324_v9  ;;  %v326_v10 = vld [vmem:[%s3795_s26 + $0x4a0] sm:$0xf] }
  0x43   : > { %v328_v11 = vld [vmem:[%s3795_s26 + $0x4b0] sm:$0xf]  ;;  %v330_v12 = vld [vmem:[%s3795_s26 + $0x4c0] sm:$0xf]  ;;  %327 = vst [vmem:[%s3802_s27 + $0x128] sm:$0xf] %v326_v10 }
  0x44   : > { %329 = vst [vmem:[%s3802_s27 + $0x12c] sm:$0xf] %v328_v11  ;;  %331 = vst [vmem:[%s3802_s27 + $0x130] sm:$0xf] %v330_v12  ;;  %v332_v13 = vld [vmem:[%s3795_s26 + $0x4d0] sm:$0xf] }
  0x45   : > { %v334_v14 = vld [vmem:[%s3795_s26 + $0x4e0] sm:$0xf]  ;;  %v336_v15 = vld [vmem:[%s3795_s26 + $0x4f0] sm:$0xf]  ;;  %333 = vst [vmem:[%s3802_s27 + $0x134] sm:$0xf] %v332_v13 }
  0x46   : > { %335 = vst [vmem:[%s3802_s27 + $0x138] sm:$0xf] %v334_v14  ;;  %337 = vst [vmem:[%s3802_s27 + $0x13c] sm:$0xf] %v336_v15  ;;  %v338_v16 = vld [vmem:[%s3795_s26 + $0x500] sm:$0xf] }
  0x47   : > { %v340_v17 = vld [vmem:[%s3795_s26 + $0x510] sm:$0xf]  ;;  %v342_v18 = vld [vmem:[%s3795_s26 + $0x520] sm:$0xf]  ;;  %339 = vst [vmem:[%s3802_s27 + $0x140] sm:$0xf] %v338_v16 }
  0x48   : > { %341 = vst [vmem:[%s3802_s27 + $0x144] sm:$0xf] %v340_v17  ;;  %343 = vst [vmem:[%s3802_s27 + $0x148] sm:$0xf] %v342_v18  ;;  %v344_v19 = vld [vmem:[%s3795_s26 + $0x530] sm:$0xf] }
  0x49   : > { %v346_v20 = vld [vmem:[%s3795_s26 + $0x540] sm:$0xf]  ;;  %v348_v21 = vld [vmem:[%s3795_s26 + $0x550] sm:$0xf]  ;;  %345 = vst [vmem:[%s3802_s27 + $0x14c] sm:$0xf] %v344_v19 }
  0x4a   : > { %347 = vst [vmem:[%s3802_s27 + $0x150] sm:$0xf] %v346_v20  ;;  %349 = vst [vmem:[%s3802_s27 + $0x154] sm:$0xf] %v348_v21  ;;  %v350_v22 = vld [vmem:[%s3795_s26 + $0x560] sm:$0xf] }
  0x4b   : > { %v352_v23 = vld [vmem:[%s3795_s26 + $0x570] sm:$0xf]  ;;  %v354_v24 = vld [vmem:[%s3795_s26 + $0x580] sm:$0xf]  ;;  %351 = vst [vmem:[%s3802_s27 + $0x158] sm:$0xf] %v350_v22 }
  0x4c   : > { %353 = vst [vmem:[%s3802_s27 + $0x15c] sm:$0xf] %v352_v23  ;;  %355 = vst [vmem:[%s3802_s27 + $0x160] sm:$0xf] %v354_v24  ;;  %v356_v25 = vld [vmem:[%s3795_s26 + $0x590] sm:$0xf] }
  0x4d   : > { %v358_v26 = vld [vmem:[%s3795_s26 + $0x5a0] sm:$0xf]  ;;  %v360_v27 = vld [vmem:[%s3795_s26 + $0x5b0] sm:$0xf]  ;;  %357 = vst [vmem:[%s3802_s27 + $0x164] sm:$0xf] %v356_v25 }
  0x4e   : > { %359 = vst [vmem:[%s3802_s27 + $0x168] sm:$0xf] %v358_v26  ;;  %361 = vst [vmem:[%s3802_s27 + $0x16c] sm:$0xf] %v360_v27  ;;  %v362_v28 = vld [vmem:[%s3795_s26 + $0x5c0] sm:$0xf] }
  0x4f   : > { %v364_v29 = vld [vmem:[%s3795_s26 + $0x5d0] sm:$0xf]  ;;  %v366_v30 = vld [vmem:[%s3795_s26 + $0x5e0] sm:$0xf]  ;;  %363 = vst [vmem:[%s3802_s27 + $0x170] sm:$0xf] %v362_v28 }
  0x50   : > { %365 = vst [vmem:[%s3802_s27 + $0x174] sm:$0xf] %v364_v29  ;;  %367 = vst [vmem:[%s3802_s27 + $0x178] sm:$0xf] %v366_v30  ;;  %v368_v31 = vld [vmem:[%s3795_s26 + $0x5f0] sm:$0xf] }
  0x51   : > { %v370_v32 = vld [vmem:[%s3795_s26 + $0x600] sm:$0xf]  ;;  %v372_v33 = vld [vmem:[%s3795_s26 + $0x610] sm:$0xf]  ;;  %369 = vst [vmem:[%s3802_s27 + $0x17c] sm:$0xf] %v368_v31 }
  0x52   : > { %371 = vst [vmem:[%s3802_s27 + $0x180] sm:$0xf] %v370_v32  ;;  %373 = vst [vmem:[%s3802_s27 + $0x184] sm:$0xf] %v372_v33  ;;  %v374_v34 = vld [vmem:[%s3795_s26 + $0x620] sm:$0xf] }
  0x53   : > { %v376_v35 = vld [vmem:[%s3795_s26 + $0x630] sm:$0xf]  ;;  %v378_v36 = vld [vmem:[%s3795_s26 + $0x640] sm:$0xf]  ;;  %375 = vst [vmem:[%s3802_s27 + $0x188] sm:$0xf] %v374_v34 }
  0x54   : > { %377 = vst [vmem:[%s3802_s27 + $0x18c] sm:$0xf] %v376_v35  ;;  %379 = vst [vmem:[%s3802_s27 + $0x190] sm:$0xf] %v378_v36  ;;  %v380_v37 = vld [vmem:[%s3795_s26 + $0x650] sm:$0xf] }
  0x55   : > { %v382_v38 = vld [vmem:[%s3795_s26 + $0x660] sm:$0xf]  ;;  %v384_v39 = vld [vmem:[%s3795_s26 + $0x670] sm:$0xf]  ;;  %381 = vst [vmem:[%s3802_s27 + $0x194] sm:$0xf] %v380_v37 }
  0x56   : > { %383 = vst [vmem:[%s3802_s27 + $0x198] sm:$0xf] %v382_v38  ;;  %385 = vst [vmem:[%s3802_s27 + $0x19c] sm:$0xf] %v384_v39  ;;  %v386_v40 = vld [vmem:[%s3795_s26 + $0x680] sm:$0xf] }
  0x57   : > { %v388_v41 = vld [vmem:[%s3795_s26 + $0x690] sm:$0xf]  ;;  %v390_v42 = vld [vmem:[%s3795_s26 + $0x6a0] sm:$0xf]  ;;  %387 = vst [vmem:[%s3802_s27 + $0x1a0] sm:$0xf] %v386_v40 }
  0x58   : > { %389 = vst [vmem:[%s3802_s27 + $0x1a4] sm:$0xf] %v388_v41  ;;  %391 = vst [vmem:[%s3802_s27 + $0x1a8] sm:$0xf] %v390_v42  ;;  %v392_v43 = vld [vmem:[%s3795_s26 + $0x6b0] sm:$0xf] }
  0x59   : > { %v394_v44 = vld [vmem:[%s3795_s26 + $0x6c0] sm:$0xf]  ;;  %v396_v45 = vld [vmem:[%s3795_s26 + $0x6d0] sm:$0xf]  ;;  %393 = vst [vmem:[%s3802_s27 + $0x1ac] sm:$0xf] %v392_v43 }
  0x5a   : > { %395 = vst [vmem:[%s3802_s27 + $0x1b0] sm:$0xf] %v394_v44  ;;  %397 = vst [vmem:[%s3802_s27 + $0x1b4] sm:$0xf] %v396_v45  ;;  %v398_v46 = vld [vmem:[%s3795_s26 + $0x6e0] sm:$0xf] }
  0x5b   : > { %v400_v47 = vld [vmem:[%s3795_s26 + $0x6f0] sm:$0xf]  ;;  %v402_v48 = vld [vmem:[%s3795_s26 + $0x700] sm:$0xf]  ;;  %399 = vst [vmem:[%s3802_s27 + $0x1b8] sm:$0xf] %v398_v46 }
  0x5c   : > { %401 = vst [vmem:[%s3802_s27 + $0x1bc] sm:$0xf] %v400_v47  ;;  %403 = vst [vmem:[%s3802_s27 + $0x1c0] sm:$0xf] %v402_v48  ;;  %v404_v49 = vld [vmem:[%s3795_s26 + $0x710] sm:$0xf] }
  0x5d   : > { %v406_v50 = vld [vmem:[%s3795_s26 + $0x720] sm:$0xf]  ;;  %v408_v51 = vld [vmem:[%s3795_s26 + $0x730] sm:$0xf]  ;;  %405 = vst [vmem:[%s3802_s27 + $0x1c4] sm:$0xf] %v404_v49 }
  0x5e   : > { %407 = vst [vmem:[%s3802_s27 + $0x1c8] sm:$0xf] %v406_v50  ;;  %409 = vst [vmem:[%s3802_s27 + $0x1cc] sm:$0xf] %v408_v51  ;;  %v410_v52 = vld [vmem:[%s3795_s26 + $0x740] sm:$0xf] }
  0x5f   : > { %v412_v53 = vld [vmem:[%s3795_s26 + $0x750] sm:$0xf]  ;;  %v414_v54 = vld [vmem:[%s3795_s26 + $0x760] sm:$0xf]  ;;  %411 = vst [vmem:[%s3802_s27 + $0x1d0] sm:$0xf] %v410_v52 }
  0x60   : > { %413 = vst [vmem:[%s3802_s27 + $0x1d4] sm:$0xf] %v412_v53  ;;  %415 = vst [vmem:[%s3802_s27 + $0x1d8] sm:$0xf] %v414_v54  ;;  %v416_v55 = vld [vmem:[%s3795_s26 + $0x770] sm:$0xf] }
  0x61   : > { %v418_v56 = vld [vmem:[%s3795_s26 + $0x780] sm:$0xf]  ;;  %v420_v57 = vld [vmem:[%s3795_s26 + $0x790] sm:$0xf]  ;;  %417 = vst [vmem:[%s3802_s27 + $0x1dc] sm:$0xf] %v416_v55 }
  0x62   : > { %419 = vst [vmem:[%s3802_s27 + $0x1e0] sm:$0xf] %v418_v56  ;;  %421 = vst [vmem:[%s3802_s27 + $0x1e4] sm:$0xf] %v420_v57  ;;  %v422_v58 = vld [vmem:[%s3795_s26 + $0x7a0] sm:$0xf] }
  0x63   : > { %v424_v59 = vld [vmem:[%s3795_s26 + $0x7b0] sm:$0xf]  ;;  %v426_v60 = vld [vmem:[%s3795_s26 + $0x7c0] sm:$0xf]  ;;  %423 = vst [vmem:[%s3802_s27 + $0x1e8] sm:$0xf] %v422_v58 }
  0x64   : > { %425 = vst [vmem:[%s3802_s27 + $0x1ec] sm:$0xf] %v424_v59  ;;  %427 = vst [vmem:[%s3802_s27 + $0x1f0] sm:$0xf] %v426_v60  ;;  %v428_v61 = vld [vmem:[%s3795_s26 + $0x7d0] sm:$0xf] }
  0x65   : > { %v430_v62 = vld [vmem:[%s3795_s26 + $0x7e0] sm:$0xf]  ;;  %v432_v63 = vld [vmem:[%s3795_s26 + $0x7f0] sm:$0xf]  ;;  %429 = vst [vmem:[%s3802_s27 + $0x1f4] sm:$0xf] %v428_v61 }
  0x66   : > { %431 = vst [vmem:[%s3802_s27 + $0x1f8] sm:$0xf] %v430_v62  ;;  %433 = vst [vmem:[%s3802_s27 + $0x1fc] sm:$0xf] %v432_v63  ;;  %v434_v0 = vld [vmem:[%s3795_s26 + $0x800] sm:$0xf] }
  0x67   : > { %v436_v1 = vld [vmem:[%s3795_s26 + $0x810] sm:$0xf]  ;;  %v438_v2 = vld [vmem:[%s3795_s26 + $0x820] sm:$0xf]  ;;  %435 = vst [vmem:[%s3802_s27 + $0x200] sm:$0xf] %v434_v0 }
  0x68   : > { %437 = vst [vmem:[%s3802_s27 + $0x204] sm:$0xf] %v436_v1  ;;  %439 = vst [vmem:[%s3802_s27 + $0x208] sm:$0xf] %v438_v2  ;;  %v440_v3 = vld [vmem:[%s3795_s26 + $0x830] sm:$0xf] }
  0x69   : > { %v442_v4 = vld [vmem:[%s3795_s26 + $0x840] sm:$0xf]  ;;  %v444_v5 = vld [vmem:[%s3795_s26 + $0x850] sm:$0xf]  ;;  %441 = vst [vmem:[%s3802_s27 + $0x20c] sm:$0xf] %v440_v3 }
  0x6a   : > { %443 = vst [vmem:[%s3802_s27 + $0x210] sm:$0xf] %v442_v4  ;;  %445 = vst [vmem:[%s3802_s27 + $0x214] sm:$0xf] %v444_v5  ;;  %v446_v6 = vld [vmem:[%s3795_s26 + $0x860] sm:$0xf] }
  0x6b   : > { %v448_v7 = vld [vmem:[%s3795_s26 + $0x870] sm:$0xf]  ;;  %v450_v8 = vld [vmem:[%s3795_s26 + $0x880] sm:$0xf]  ;;  %447 = vst [vmem:[%s3802_s27 + $0x218] sm:$0xf] %v446_v6 }
  0x6c   : > { %449 = vst [vmem:[%s3802_s27 + $0x21c] sm:$0xf] %v448_v7  ;;  %451 = vst [vmem:[%s3802_s27 + $0x220] sm:$0xf] %v450_v8  ;;  %v452_v9 = vld [vmem:[%s3795_s26 + $0x890] sm:$0xf] }
  0x6d   : > { %v454_v10 = vld [vmem:[%s3795_s26 + $0x8a0] sm:$0xf]  ;;  %v456_v11 = vld [vmem:[%s3795_s26 + $0x8b0] sm:$0xf]  ;;  %453 = vst [vmem:[%s3802_s27 + $0x224] sm:$0xf] %v452_v9 }
  0x6e   : > { %455 = vst [vmem:[%s3802_s27 + $0x228] sm:$0xf] %v454_v10  ;;  %457 = vst [vmem:[%s3802_s27 + $0x22c] sm:$0xf] %v456_v11  ;;  %v458_v12 = vld [vmem:[%s3795_s26 + $0x8c0] sm:$0xf] }
  0x6f   : > { %v460_v13 = vld [vmem:[%s3795_s26 + $0x8d0] sm:$0xf]  ;;  %v462_v14 = vld [vmem:[%s3795_s26 + $0x8e0] sm:$0xf]  ;;  %459 = vst [vmem:[%s3802_s27 + $0x230] sm:$0xf] %v458_v12 }
  0x70   : > { %461 = vst [vmem:[%s3802_s27 + $0x234] sm:$0xf] %v460_v13  ;;  %463 = vst [vmem:[%s3802_s27 + $0x238] sm:$0xf] %v462_v14  ;;  %v464_v15 = vld [vmem:[%s3795_s26 + $0x8f0] sm:$0xf] }
  0x71   : > { %v466_v16 = vld [vmem:[%s3795_s26 + $0x900] sm:$0xf]  ;;  %v468_v17 = vld [vmem:[%s3795_s26 + $0x910] sm:$0xf]  ;;  %465 = vst [vmem:[%s3802_s27 + $0x23c] sm:$0xf] %v464_v15 }
  0x72   : > { %467 = vst [vmem:[%s3802_s27 + $0x240] sm:$0xf] %v466_v16  ;;  %469 = vst [vmem:[%s3802_s27 + $0x244] sm:$0xf] %v468_v17  ;;  %v470_v18 = vld [vmem:[%s3795_s26 + $0x920] sm:$0xf] }
  0x73   : > { %v472_v19 = vld [vmem:[%s3795_s26 + $0x930] sm:$0xf]  ;;  %v474_v20 = vld [vmem:[%s3795_s26 + $0x940] sm:$0xf]  ;;  %471 = vst [vmem:[%s3802_s27 + $0x248] sm:$0xf] %v470_v18 }
  0x74   : > { %473 = vst [vmem:[%s3802_s27 + $0x24c] sm:$0xf] %v472_v19  ;;  %475 = vst [vmem:[%s3802_s27 + $0x250] sm:$0xf] %v474_v20  ;;  %v476_v21 = vld [vmem:[%s3795_s26 + $0x950] sm:$0xf] }
  0x75   : > { %v478_v22 = vld [vmem:[%s3795_s26 + $0x960] sm:$0xf]  ;;  %v480_v23 = vld [vmem:[%s3795_s26 + $0x970] sm:$0xf]  ;;  %477 = vst [vmem:[%s3802_s27 + $0x254] sm:$0xf] %v476_v21 }
  0x76   : > { %479 = vst [vmem:[%s3802_s27 + $0x258] sm:$0xf] %v478_v22  ;;  %481 = vst [vmem:[%s3802_s27 + $0x25c] sm:$0xf] %v480_v23  ;;  %v482_v24 = vld [vmem:[%s3795_s26 + $0x980] sm:$0xf] }
  0x77   : > { %v484_v25 = vld [vmem:[%s3795_s26 + $0x990] sm:$0xf]  ;;  %v486_v26 = vld [vmem:[%s3795_s26 + $0x9a0] sm:$0xf]  ;;  %483 = vst [vmem:[%s3802_s27 + $0x260] sm:$0xf] %v482_v24 }
  0x78   : > { %485 = vst [vmem:[%s3802_s27 + $0x264] sm:$0xf] %v484_v25  ;;  %487 = vst [vmem:[%s3802_s27 + $0x268] sm:$0xf] %v486_v26  ;;  %v488_v27 = vld [vmem:[%s3795_s26 + $0x9b0] sm:$0xf] }
  0x79   : > { %v490_v28 = vld [vmem:[%s3795_s26 + $0x9c0] sm:$0xf]  ;;  %v492_v29 = vld [vmem:[%s3795_s26 + $0x9d0] sm:$0xf]  ;;  %489 = vst [vmem:[%s3802_s27 + $0x26c] sm:$0xf] %v488_v27 }
  0x7a   : > { %491 = vst [vmem:[%s3802_s27 + $0x270] sm:$0xf] %v490_v28  ;;  %493 = vst [vmem:[%s3802_s27 + $0x274] sm:$0xf] %v492_v29  ;;  %v494_v30 = vld [vmem:[%s3795_s26 + $0x9e0] sm:$0xf] }
  0x7b   : > { %v496_v31 = vld [vmem:[%s3795_s26 + $0x9f0] sm:$0xf]  ;;  %v498_v32 = vld [vmem:[%s3795_s26 + $0xa00] sm:$0xf]  ;;  %495 = vst [vmem:[%s3802_s27 + $0x278] sm:$0xf] %v494_v30 }
  0x7c   : > { %497 = vst [vmem:[%s3802_s27 + $0x27c] sm:$0xf] %v496_v31  ;;  %499 = vst [vmem:[%s3802_s27 + $0x280] sm:$0xf] %v498_v32  ;;  %v500_v33 = vld [vmem:[%s3795_s26 + $0xa10] sm:$0xf] }
  0x7d   : > { %v502_v34 = vld [vmem:[%s3795_s26 + $0xa20] sm:$0xf]  ;;  %v504_v35 = vld [vmem:[%s3795_s26 + $0xa30] sm:$0xf]  ;;  %501 = vst [vmem:[%s3802_s27 + $0x284] sm:$0xf] %v500_v33 }
  0x7e   : > { %503 = vst [vmem:[%s3802_s27 + $0x288] sm:$0xf] %v502_v34  ;;  %505 = vst [vmem:[%s3802_s27 + $0x28c] sm:$0xf] %v504_v35  ;;  %v506_v36 = vld [vmem:[%s3795_s26 + $0xa40] sm:$0xf] }
  0x7f   : > { %v508_v37 = vld [vmem:[%s3795_s26 + $0xa50] sm:$0xf]  ;;  %v510_v38 = vld [vmem:[%s3795_s26 + $0xa60] sm:$0xf]  ;;  %507 = vst [vmem:[%s3802_s27 + $0x290] sm:$0xf] %v506_v36 }
  0x80   : > { %509 = vst [vmem:[%s3802_s27 + $0x294] sm:$0xf] %v508_v37  ;;  %511 = vst [vmem:[%s3802_s27 + $0x298] sm:$0xf] %v510_v38  ;;  %v512_v39 = vld [vmem:[%s3795_s26 + $0xa70] sm:$0xf] }
  0x81   : > { %v514_v40 = vld [vmem:[%s3795_s26 + $0xa80] sm:$0xf]  ;;  %v516_v41 = vld [vmem:[%s3795_s26 + $0xa90] sm:$0xf]  ;;  %513 = vst [vmem:[%s3802_s27 + $0x29c] sm:$0xf] %v512_v39 }
  0x82   : > { %515 = vst [vmem:[%s3802_s27 + $0x2a0] sm:$0xf] %v514_v40  ;;  %517 = vst [vmem:[%s3802_s27 + $0x2a4] sm:$0xf] %v516_v41  ;;  %v518_v42 = vld [vmem:[%s3795_s26 + $0xaa0] sm:$0xf] }
  0x83   : > { %v520_v43 = vld [vmem:[%s3795_s26 + $0xab0] sm:$0xf]  ;;  %v522_v44 = vld [vmem:[%s3795_s26 + $0xac0] sm:$0xf]  ;;  %519 = vst [vmem:[%s3802_s27 + $0x2a8] sm:$0xf] %v518_v42 }
  0x84   : > { %521 = vst [vmem:[%s3802_s27 + $0x2ac] sm:$0xf] %v520_v43  ;;  %523 = vst [vmem:[%s3802_s27 + $0x2b0] sm:$0xf] %v522_v44  ;;  %v524_v45 = vld [vmem:[%s3795_s26 + $0xad0] sm:$0xf] }
  0x85   : > { %v526_v46 = vld [vmem:[%s3795_s26 + $0xae0] sm:$0xf]  ;;  %v528_v47 = vld [vmem:[%s3795_s26 + $0xaf0] sm:$0xf]  ;;  %525 = vst [vmem:[%s3802_s27 + $0x2b4] sm:$0xf] %v524_v45 }
  0x86   : > { %527 = vst [vmem:[%s3802_s27 + $0x2b8] sm:$0xf] %v526_v46  ;;  %529 = vst [vmem:[%s3802_s27 + $0x2bc] sm:$0xf] %v528_v47  ;;  %v530_v48 = vld [vmem:[%s3795_s26 + $0xb00] sm:$0xf] }
  0x87   : > { %v532_v49 = vld [vmem:[%s3795_s26 + $0xb10] sm:$0xf]  ;;  %v534_v50 = vld [vmem:[%s3795_s26 + $0xb20] sm:$0xf]  ;;  %531 = vst [vmem:[%s3802_s27 + $0x2c0] sm:$0xf] %v530_v48 }
  0x88   : > { %533 = vst [vmem:[%s3802_s27 + $0x2c4] sm:$0xf] %v532_v49  ;;  %535 = vst [vmem:[%s3802_s27 + $0x2c8] sm:$0xf] %v534_v50  ;;  %v536_v51 = vld [vmem:[%s3795_s26 + $0xb30] sm:$0xf] }
  0x89   : > { %v538_v52 = vld [vmem:[%s3795_s26 + $0xb40] sm:$0xf]  ;;  %v540_v53 = vld [vmem:[%s3795_s26 + $0xb50] sm:$0xf]  ;;  %537 = vst [vmem:[%s3802_s27 + $0x2cc] sm:$0xf] %v536_v51 }
  0x8a   : > { %539 = vst [vmem:[%s3802_s27 + $0x2d0] sm:$0xf] %v538_v52  ;;  %541 = vst [vmem:[%s3802_s27 + $0x2d4] sm:$0xf] %v540_v53  ;;  %v542_v54 = vld [vmem:[%s3795_s26 + $0xb60] sm:$0xf] }
  0x8b   : > { %v544_v55 = vld [vmem:[%s3795_s26 + $0xb70] sm:$0xf]  ;;  %v546_v56 = vld [vmem:[%s3795_s26 + $0xb80] sm:$0xf]  ;;  %543 = vst [vmem:[%s3802_s27 + $0x2d8] sm:$0xf] %v542_v54 }
  0x8c   : > { %545 = vst [vmem:[%s3802_s27 + $0x2dc] sm:$0xf] %v544_v55  ;;  %547 = vst [vmem:[%s3802_s27 + $0x2e0] sm:$0xf] %v546_v56  ;;  %v548_v57 = vld [vmem:[%s3795_s26 + $0xb90] sm:$0xf] }
  0x8d   : > { %v550_v58 = vld [vmem:[%s3795_s26 + $0xba0] sm:$0xf]  ;;  %v552_v59 = vld [vmem:[%s3795_s26 + $0xbb0] sm:$0xf]  ;;  %549 = vst [vmem:[%s3802_s27 + $0x2e4] sm:$0xf] %v548_v57 }
  0x8e   : > { %551 = vst [vmem:[%s3802_s27 + $0x2e8] sm:$0xf] %v550_v58  ;;  %553 = vst [vmem:[%s3802_s27 + $0x2ec] sm:$0xf] %v552_v59  ;;  %v554_v60 = vld [vmem:[%s3795_s26 + $0xbc0] sm:$0xf] }
  0x8f   : > { %v556_v61 = vld [vmem:[%s3795_s26 + $0xbd0] sm:$0xf]  ;;  %v558_v62 = vld [vmem:[%s3795_s26 + $0xbe0] sm:$0xf]  ;;  %555 = vst [vmem:[%s3802_s27 + $0x2f0] sm:$0xf] %v554_v60 }
  0x90   : > { %557 = vst [vmem:[%s3802_s27 + $0x2f4] sm:$0xf] %v556_v61  ;;  %559 = vst [vmem:[%s3802_s27 + $0x2f8] sm:$0xf] %v558_v62  ;;  %v560_v63 = vld [vmem:[%s3795_s26 + $0xbf0] sm:$0xf] }
  0x91   : > { %v562_v0 = vld [vmem:[%s3795_s26 + $0xc00] sm:$0xf]  ;;  %v564_v1 = vld [vmem:[%s3795_s26 + $0xc10] sm:$0xf]  ;;  %561 = vst [vmem:[%s3802_s27 + $0x2fc] sm:$0xf] %v560_v63 }
  0x92   : > { %563 = vst [vmem:[%s3802_s27 + $0x300] sm:$0xf] %v562_v0  ;;  %565 = vst [vmem:[%s3802_s27 + $0x304] sm:$0xf] %v564_v1  ;;  %v566_v2 = vld [vmem:[%s3795_s26 + $0xc20] sm:$0xf] }
  0x93   : > { %v568_v3 = vld [vmem:[%s3795_s26 + $0xc30] sm:$0xf]  ;;  %v570_v4 = vld [vmem:[%s3795_s26 + $0xc40] sm:$0xf]  ;;  %567 = vst [vmem:[%s3802_s27 + $0x308] sm:$0xf] %v566_v2 }
  0x94   : > { %569 = vst [vmem:[%s3802_s27 + $0x30c] sm:$0xf] %v568_v3  ;;  %571 = vst [vmem:[%s3802_s27 + $0x310] sm:$0xf] %v570_v4  ;;  %v572_v5 = vld [vmem:[%s3795_s26 + $0xc50] sm:$0xf] }
  0x95   : > { %v574_v6 = vld [vmem:[%s3795_s26 + $0xc60] sm:$0xf]  ;;  %v576_v7 = vld [vmem:[%s3795_s26 + $0xc70] sm:$0xf]  ;;  %573 = vst [vmem:[%s3802_s27 + $0x314] sm:$0xf] %v572_v5 }
  0x96   : > { %575 = vst [vmem:[%s3802_s27 + $0x318] sm:$0xf] %v574_v6  ;;  %577 = vst [vmem:[%s3802_s27 + $0x31c] sm:$0xf] %v576_v7  ;;  %v578_v8 = vld [vmem:[%s3795_s26 + $0xc80] sm:$0xf] }
  0x97   : > { %v580_v9 = vld [vmem:[%s3795_s26 + $0xc90] sm:$0xf]  ;;  %v582_v10 = vld [vmem:[%s3795_s26 + $0xca0] sm:$0xf]  ;;  %579 = vst [vmem:[%s3802_s27 + $0x320] sm:$0xf] %v578_v8 }
  0x98   : > { %581 = vst [vmem:[%s3802_s27 + $0x324] sm:$0xf] %v580_v9  ;;  %583 = vst [vmem:[%s3802_s27 + $0x328] sm:$0xf] %v582_v10  ;;  %v584_v11 = vld [vmem:[%s3795_s26 + $0xcb0] sm:$0xf] }
  0x99   : > { %v586_v12 = vld [vmem:[%s3795_s26 + $0xcc0] sm:$0xf]  ;;  %v588_v13 = vld [vmem:[%s3795_s26 + $0xcd0] sm:$0xf]  ;;  %585 = vst [vmem:[%s3802_s27 + $0x32c] sm:$0xf] %v584_v11 }
  0x9a   : > { %587 = vst [vmem:[%s3802_s27 + $0x330] sm:$0xf] %v586_v12  ;;  %589 = vst [vmem:[%s3802_s27 + $0x334] sm:$0xf] %v588_v13  ;;  %v590_v14 = vld [vmem:[%s3795_s26 + $0xce0] sm:$0xf] }
  0x9b   : > { %v592_v15 = vld [vmem:[%s3795_s26 + $0xcf0] sm:$0xf]  ;;  %v594_v16 = vld [vmem:[%s3795_s26 + $0xd00] sm:$0xf]  ;;  %591 = vst [vmem:[%s3802_s27 + $0x338] sm:$0xf] %v590_v14 }
  0x9c   : > { %593 = vst [vmem:[%s3802_s27 + $0x33c] sm:$0xf] %v592_v15  ;;  %595 = vst [vmem:[%s3802_s27 + $0x340] sm:$0xf] %v594_v16  ;;  %v596_v17 = vld [vmem:[%s3795_s26 + $0xd10] sm:$0xf] }
  0x9d   : > { %v598_v18 = vld [vmem:[%s3795_s26 + $0xd20] sm:$0xf]  ;;  %v600_v19 = vld [vmem:[%s3795_s26 + $0xd30] sm:$0xf]  ;;  %597 = vst [vmem:[%s3802_s27 + $0x344] sm:$0xf] %v596_v17 }
  0x9e   : > { %599 = vst [vmem:[%s3802_s27 + $0x348] sm:$0xf] %v598_v18  ;;  %601 = vst [vmem:[%s3802_s27 + $0x34c] sm:$0xf] %v600_v19  ;;  %v602_v20 = vld [vmem:[%s3795_s26 + $0xd40] sm:$0xf] }
  0x9f   : > { %v604_v21 = vld [vmem:[%s3795_s26 + $0xd50] sm:$0xf]  ;;  %v606_v22 = vld [vmem:[%s3795_s26 + $0xd60] sm:$0xf]  ;;  %603 = vst [vmem:[%s3802_s27 + $0x350] sm:$0xf] %v602_v20 }
  0xa0   : > { %605 = vst [vmem:[%s3802_s27 + $0x354] sm:$0xf] %v604_v21  ;;  %607 = vst [vmem:[%s3802_s27 + $0x358] sm:$0xf] %v606_v22  ;;  %v608_v23 = vld [vmem:[%s3795_s26 + $0xd70] sm:$0xf] }
  0xa1   : > { %v610_v24 = vld [vmem:[%s3795_s26 + $0xd80] sm:$0xf]  ;;  %v612_v25 = vld [vmem:[%s3795_s26 + $0xd90] sm:$0xf]  ;;  %609 = vst [vmem:[%s3802_s27 + $0x35c] sm:$0xf] %v608_v23 }
  0xa2   : > { %611 = vst [vmem:[%s3802_s27 + $0x360] sm:$0xf] %v610_v24  ;;  %613 = vst [vmem:[%s3802_s27 + $0x364] sm:$0xf] %v612_v25  ;;  %v614_v26 = vld [vmem:[%s3795_s26 + $0xda0] sm:$0xf] }
  0xa3   : > { %v616_v27 = vld [vmem:[%s3795_s26 + $0xdb0] sm:$0xf]  ;;  %v618_v28 = vld [vmem:[%s3795_s26 + $0xdc0] sm:$0xf]  ;;  %615 = vst [vmem:[%s3802_s27 + $0x368] sm:$0xf] %v614_v26 }
  0xa4   : > { %617 = vst [vmem:[%s3802_s27 + $0x36c] sm:$0xf] %v616_v27  ;;  %619 = vst [vmem:[%s3802_s27 + $0x370] sm:$0xf] %v618_v28  ;;  %v620_v29 = vld [vmem:[%s3795_s26 + $0xdd0] sm:$0xf] }
  0xa5   : > { %v622_v30 = vld [vmem:[%s3795_s26 + $0xde0] sm:$0xf]  ;;  %v624_v31 = vld [vmem:[%s3795_s26 + $0xdf0] sm:$0xf]  ;;  %621 = vst [vmem:[%s3802_s27 + $0x374] sm:$0xf] %v620_v29 }
  0xa6   : > { %623 = vst [vmem:[%s3802_s27 + $0x378] sm:$0xf] %v622_v30  ;;  %625 = vst [vmem:[%s3802_s27 + $0x37c] sm:$0xf] %v624_v31  ;;  %v626_v32 = vld [vmem:[%s3795_s26 + $0xe00] sm:$0xf] }
  0xa7   : > { %v628_v33 = vld [vmem:[%s3795_s26 + $0xe10] sm:$0xf]  ;;  %v630_v34 = vld [vmem:[%s3795_s26 + $0xe20] sm:$0xf]  ;;  %627 = vst [vmem:[%s3802_s27 + $0x380] sm:$0xf] %v626_v32 }
  0xa8   : > { %629 = vst [vmem:[%s3802_s27 + $0x384] sm:$0xf] %v628_v33  ;;  %631 = vst [vmem:[%s3802_s27 + $0x388] sm:$0xf] %v630_v34  ;;  %v632_v35 = vld [vmem:[%s3795_s26 + $0xe30] sm:$0xf] }
  0xa9   : > { %v634_v36 = vld [vmem:[%s3795_s26 + $0xe40] sm:$0xf]  ;;  %v636_v37 = vld [vmem:[%s3795_s26 + $0xe50] sm:$0xf]  ;;  %633 = vst [vmem:[%s3802_s27 + $0x38c] sm:$0xf] %v632_v35 }
  0xaa   : > { %635 = vst [vmem:[%s3802_s27 + $0x390] sm:$0xf] %v634_v36  ;;  %637 = vst [vmem:[%s3802_s27 + $0x394] sm:$0xf] %v636_v37  ;;  %v638_v38 = vld [vmem:[%s3795_s26 + $0xe60] sm:$0xf] }
  0xab   : > { %v640_v39 = vld [vmem:[%s3795_s26 + $0xe70] sm:$0xf]  ;;  %v642_v40 = vld [vmem:[%s3795_s26 + $0xe80] sm:$0xf]  ;;  %639 = vst [vmem:[%s3802_s27 + $0x398] sm:$0xf] %v638_v38 }
  0xac   : > { %641 = vst [vmem:[%s3802_s27 + $0x39c] sm:$0xf] %v640_v39  ;;  %643 = vst [vmem:[%s3802_s27 + $0x3a0] sm:$0xf] %v642_v40  ;;  %v644_v41 = vld [vmem:[%s3795_s26 + $0xe90] sm:$0xf] }
  0xad   : > { %v646_v42 = vld [vmem:[%s3795_s26 + $0xea0] sm:$0xf]  ;;  %v648_v43 = vld [vmem:[%s3795_s26 + $0xeb0] sm:$0xf]  ;;  %645 = vst [vmem:[%s3802_s27 + $0x3a4] sm:$0xf] %v644_v41 }
  0xae   : > { %647 = vst [vmem:[%s3802_s27 + $0x3a8] sm:$0xf] %v646_v42  ;;  %649 = vst [vmem:[%s3802_s27 + $0x3ac] sm:$0xf] %v648_v43  ;;  %v650_v44 = vld [vmem:[%s3795_s26 + $0xec0] sm:$0xf] }
  0xaf   : > { %v652_v45 = vld [vmem:[%s3795_s26 + $0xed0] sm:$0xf]  ;;  %v654_v46 = vld [vmem:[%s3795_s26 + $0xee0] sm:$0xf]  ;;  %651 = vst [vmem:[%s3802_s27 + $0x3b0] sm:$0xf] %v650_v44 }
  0xb0   : > { %653 = vst [vmem:[%s3802_s27 + $0x3b4] sm:$0xf] %v652_v45  ;;  %655 = vst [vmem:[%s3802_s27 + $0x3b8] sm:$0xf] %v654_v46  ;;  %v656_v47 = vld [vmem:[%s3795_s26 + $0xef0] sm:$0xf] }
  0xb1   : > { %v658_v48 = vld [vmem:[%s3795_s26 + $0xf00] sm:$0xf]  ;;  %v660_v49 = vld [vmem:[%s3795_s26 + $0xf10] sm:$0xf]  ;;  %657 = vst [vmem:[%s3802_s27 + $0x3bc] sm:$0xf] %v656_v47 }
  0xb2   : > { %659 = vst [vmem:[%s3802_s27 + $0x3c0] sm:$0xf] %v658_v48  ;;  %661 = vst [vmem:[%s3802_s27 + $0x3c4] sm:$0xf] %v660_v49  ;;  %v662_v50 = vld [vmem:[%s3795_s26 + $0xf20] sm:$0xf] }
  0xb3   : > { %v664_v51 = vld [vmem:[%s3795_s26 + $0xf30] sm:$0xf]  ;;  %v666_v52 = vld [vmem:[%s3795_s26 + $0xf40] sm:$0xf]  ;;  %663 = vst [vmem:[%s3802_s27 + $0x3c8] sm:$0xf] %v662_v50 }
  0xb4   : > { %665 = vst [vmem:[%s3802_s27 + $0x3cc] sm:$0xf] %v664_v51  ;;  %667 = vst [vmem:[%s3802_s27 + $0x3d0] sm:$0xf] %v666_v52  ;;  %v668_v53 = vld [vmem:[%s3795_s26 + $0xf50] sm:$0xf] }
  0xb5   : > { %v670_v54 = vld [vmem:[%s3795_s26 + $0xf60] sm:$0xf]  ;;  %v672_v55 = vld [vmem:[%s3795_s26 + $0xf70] sm:$0xf]  ;;  %669 = vst [vmem:[%s3802_s27 + $0x3d4] sm:$0xf] %v668_v53 }
  0xb6   : > { %671 = vst [vmem:[%s3802_s27 + $0x3d8] sm:$0xf] %v670_v54  ;;  %673 = vst [vmem:[%s3802_s27 + $0x3dc] sm:$0xf] %v672_v55  ;;  %v674_v56 = vld [vmem:[%s3795_s26 + $0xf80] sm:$0xf] }
  0xb7   : > { %v676_v57 = vld [vmem:[%s3795_s26 + $0xf90] sm:$0xf]  ;;  %v678_v58 = vld [vmem:[%s3795_s26 + $0xfa0] sm:$0xf]  ;;  %675 = vst [vmem:[%s3802_s27 + $0x3e0] sm:$0xf] %v674_v56 }
  0xb8   : > { %677 = vst [vmem:[%s3802_s27 + $0x3e4] sm:$0xf] %v676_v57  ;;  %679 = vst [vmem:[%s3802_s27 + $0x3e8] sm:$0xf] %v678_v58  ;;  %v680_v59 = vld [vmem:[%s3795_s26 + $0xfb0] sm:$0xf] }
  0xb9   : > { %v682_v60 = vld [vmem:[%s3795_s26 + $0xfc0] sm:$0xf]  ;;  %v684_v61 = vld [vmem:[%s3795_s26 + $0xfd0] sm:$0xf]  ;;  %681 = vst [vmem:[%s3802_s27 + $0x3ec] sm:$0xf] %v680_v59 }
  0xba   : > { %683 = vst [vmem:[%s3802_s27 + $0x3f0] sm:$0xf] %v682_v60  ;;  %685 = vst [vmem:[%s3802_s27 + $0x3f4] sm:$0xf] %v684_v61  ;;  %v686_v62 = vld [vmem:[%s3795_s26 + $0xfe0] sm:$0xf] }
  0xbb   : > { %v688_v63 = vld [vmem:[%s3795_s26 + $0xff0] sm:$0xf]  ;;  %v690_v0 = vld [vmem:[%s3795_s26 + $0x1000] sm:$0xf]  ;;  %687 = vst [vmem:[%s3802_s27 + $0x3f8] sm:$0xf] %v686_v62 }
  0xbc   : > { %689 = vst [vmem:[%s3802_s27 + $0x3fc] sm:$0xf] %v688_v63  ;;  %691 = vst [vmem:[%s3802_s27 + $0x400] sm:$0xf] %v690_v0  ;;  %v692_v1 = vld [vmem:[%s3795_s26 + $0x1010] sm:$0xf] }
  0xbd   : > { %v694_v2 = vld [vmem:[%s3795_s26 + $0x1020] sm:$0xf]  ;;  %v696_v3 = vld [vmem:[%s3795_s26 + $0x1030] sm:$0xf]  ;;  %693 = vst [vmem:[%s3802_s27 + $0x404] sm:$0xf] %v692_v1 }
  0xbe   : > { %695 = vst [vmem:[%s3802_s27 + $0x408] sm:$0xf] %v694_v2  ;;  %697 = vst [vmem:[%s3802_s27 + $0x40c] sm:$0xf] %v696_v3  ;;  %v698_v4 = vld [vmem:[%s3795_s26 + $0x1040] sm:$0xf] }
  0xbf   : > { %v700_v5 = vld [vmem:[%s3795_s26 + $0x1050] sm:$0xf]  ;;  %v702_v6 = vld [vmem:[%s3795_s26 + $0x1060] sm:$0xf]  ;;  %699 = vst [vmem:[%s3802_s27 + $0x410] sm:$0xf] %v698_v4 }
  0xc0   : > { %701 = vst [vmem:[%s3802_s27 + $0x414] sm:$0xf] %v700_v5  ;;  %703 = vst [vmem:[%s3802_s27 + $0x418] sm:$0xf] %v702_v6  ;;  %v704_v7 = vld [vmem:[%s3795_s26 + $0x1070] sm:$0xf] }
  0xc1   : > { %v706_v8 = vld [vmem:[%s3795_s26 + $0x1080] sm:$0xf]  ;;  %v708_v9 = vld [vmem:[%s3795_s26 + $0x1090] sm:$0xf]  ;;  %705 = vst [vmem:[%s3802_s27 + $0x41c] sm:$0xf] %v704_v7 }
  0xc2   : > { %707 = vst [vmem:[%s3802_s27 + $0x420] sm:$0xf] %v706_v8  ;;  %709 = vst [vmem:[%s3802_s27 + $0x424] sm:$0xf] %v708_v9  ;;  %v710_v10 = vld [vmem:[%s3795_s26 + $0x10a0] sm:$0xf] }
  0xc3   : > { %v712_v11 = vld [vmem:[%s3795_s26 + $0x10b0] sm:$0xf]  ;;  %v714_v12 = vld [vmem:[%s3795_s26 + $0x10c0] sm:$0xf]  ;;  %711 = vst [vmem:[%s3802_s27 + $0x428] sm:$0xf] %v710_v10 }
  0xc4   : > { %713 = vst [vmem:[%s3802_s27 + $0x42c] sm:$0xf] %v712_v11  ;;  %715 = vst [vmem:[%s3802_s27 + $0x430] sm:$0xf] %v714_v12  ;;  %v716_v13 = vld [vmem:[%s3795_s26 + $0x10d0] sm:$0xf] }
  0xc5   : > { %v718_v14 = vld [vmem:[%s3795_s26 + $0x10e0] sm:$0xf]  ;;  %v720_v15 = vld [vmem:[%s3795_s26 + $0x10f0] sm:$0xf]  ;;  %717 = vst [vmem:[%s3802_s27 + $0x434] sm:$0xf] %v716_v13 }
  0xc6   : > { %719 = vst [vmem:[%s3802_s27 + $0x438] sm:$0xf] %v718_v14  ;;  %721 = vst [vmem:[%s3802_s27 + $0x43c] sm:$0xf] %v720_v15  ;;  %v722_v16 = vld [vmem:[%s3795_s26 + $0x1100] sm:$0xf] }
  0xc7   : > { %v724_v17 = vld [vmem:[%s3795_s26 + $0x1110] sm:$0xf]  ;;  %v726_v18 = vld [vmem:[%s3795_s26 + $0x1120] sm:$0xf]  ;;  %723 = vst [vmem:[%s3802_s27 + $0x440] sm:$0xf] %v722_v16 }
  0xc8   : > { %725 = vst [vmem:[%s3802_s27 + $0x444] sm:$0xf] %v724_v17  ;;  %727 = vst [vmem:[%s3802_s27 + $0x448] sm:$0xf] %v726_v18  ;;  %v728_v19 = vld [vmem:[%s3795_s26 + $0x1130] sm:$0xf] }
  0xc9   : > { %v730_v20 = vld [vmem:[%s3795_s26 + $0x1140] sm:$0xf]  ;;  %v732_v21 = vld [vmem:[%s3795_s26 + $0x1150] sm:$0xf]  ;;  %729 = vst [vmem:[%s3802_s27 + $0x44c] sm:$0xf] %v728_v19 }
  0xca   : > { %731 = vst [vmem:[%s3802_s27 + $0x450] sm:$0xf] %v730_v20  ;;  %733 = vst [vmem:[%s3802_s27 + $0x454] sm:$0xf] %v732_v21  ;;  %v734_v22 = vld [vmem:[%s3795_s26 + $0x1160] sm:$0xf] }
  0xcb   : > { %v736_v23 = vld [vmem:[%s3795_s26 + $0x1170] sm:$0xf]  ;;  %v738_v24 = vld [vmem:[%s3795_s26 + $0x1180] sm:$0xf]  ;;  %735 = vst [vmem:[%s3802_s27 + $0x458] sm:$0xf] %v734_v22 }
  0xcc   : > { %737 = vst [vmem:[%s3802_s27 + $0x45c] sm:$0xf] %v736_v23  ;;  %739 = vst [vmem:[%s3802_s27 + $0x460] sm:$0xf] %v738_v24  ;;  %v740_v25 = vld [vmem:[%s3795_s26 + $0x1190] sm:$0xf] }
  0xcd   : > { %v742_v26 = vld [vmem:[%s3795_s26 + $0x11a0] sm:$0xf]  ;;  %v744_v27 = vld [vmem:[%s3795_s26 + $0x11b0] sm:$0xf]  ;;  %741 = vst [vmem:[%s3802_s27 + $0x464] sm:$0xf] %v740_v25 }
  0xce   : > { %743 = vst [vmem:[%s3802_s27 + $0x468] sm:$0xf] %v742_v26  ;;  %745 = vst [vmem:[%s3802_s27 + $0x46c] sm:$0xf] %v744_v27  ;;  %v746_v28 = vld [vmem:[%s3795_s26 + $0x11c0] sm:$0xf] }
  0xcf   : > { %v748_v29 = vld [vmem:[%s3795_s26 + $0x11d0] sm:$0xf]  ;;  %v750_v30 = vld [vmem:[%s3795_s26 + $0x11e0] sm:$0xf]  ;;  %747 = vst [vmem:[%s3802_s27 + $0x470] sm:$0xf] %v746_v28 }
  0xd0   : > { %749 = vst [vmem:[%s3802_s27 + $0x474] sm:$0xf] %v748_v29  ;;  %751 = vst [vmem:[%s3802_s27 + $0x478] sm:$0xf] %v750_v30  ;;  %v752_v31 = vld [vmem:[%s3795_s26 + $0x11f0] sm:$0xf] }
  0xd1   : > { %753 = vst [vmem:[%s3802_s27 + $0x47c] sm:$0xf] %v752_v31 }
  0xd2 PF: > { %p3123_p6 = scmp.ge.s32.totalorder %s3730_s16, 1  ;;  %p1357_p7 = scmp.lt.s32.totalorder %s3730_s16, 5 }
  0xd4   : > { %p1358_p8 = pnand %p3123_p6, %p1357_p7 }
  0xd5   : > { %s1364_s28 = sand.u32 (!%p1358_p8), 1, %s3714_s12   ;;  %v4381_v32 = vld [vmem:[%s4620_s0] sm:$0xff] (!%p1358_p8)  ;;  %v4386_v33 = vld [vmem:[%s4620_s0 + $0x8] sm:$0xff] (!%p1358_p8)  ;;  %v4424_v63 = vld [vmem:[%s4620_s0 + $0x10] sm:$0xff] (!%p1358_p8)  ;;  %p1403_p9 = scmp.lt.s32.totalorder (!%p1358_p8), %s3722_s14, 3 }
  0xd6   : > { %1361 = sbr.rel (%p1358_p8) target bundleno = 601 (0x259), region = 69  ;;  %v3127_v34 = vcombine.high (!%p1358_p8), %v4381_v32, %v4381_v32  ;;  %v3129_v35 = vcombine.high (!%p1358_p8), %v4386_v33, %v4386_v33  ;;  %v4431_v2 = vld [vmem:[%s4620_s0 + $0x18] sm:$0xff] (!%p1358_p8)  ;;  %v3126_v5 = vcombine.low (!%p1358_p8), %v4381_v32, %v4381_v32  ;;  %v3131_v7 = vcombine.high (!%p1358_p8), %v4424_v63, %v4424_v63 }
  0xd7   : > { %s3489_s6 = smul.u32 (!%p1358_p8), 1152, %s1364_s28  ;;  %v3128_v9 = vcombine.low (!%p1358_p8), %v4386_v33, %v4386_v33  ;;  %v3133_v11 = vcombine.high (!%p1358_p8), %v4431_v2, %v4431_v2 }
  0xd8   : > { %2678 = vmatprep.mubr.bf16.mxu0 (!%p1358_p8), %v3127_v34  ;;  %2718 = vmatprep.mubr.bf16.mxu1 (!%p1358_p8), %v3129_v35 }
  0xd9   : > { %s4392_s7 = scalar_lea.vmem (!%p1358_p8), [#allocation2], %s3489_s6 }
  0xda   : > { %v3530_v36 = vld [vmem:[%s4392_s7 + $0x40] sm:$0xff] (!%p1358_p8)   ;;  %v3534_v40 = vld [vmem:[%s4392_s7 + $0x48] sm:$0xff] (!%p1358_p8)   ;;  %v3538_v44 = vld [vmem:[%s4392_s7 + $0x50] sm:$0xff] (!%p1358_p8)  }
  0xdb   : > { %v3531_v37 = vld [vmem:[%s4392_s7] sm:$0xff] (!%p1358_p8)   ;;  %3290 = vmatprep.subr.bf16.mxu0 (!%p1358_p8), %v3530_v36  ;;  %v3535_v41 = vld [vmem:[%s4392_s7 + $0x8] sm:$0xff] (!%p1358_p8)   ;;  %v3539_v45 = vld [vmem:[%s4392_s7 + $0x10] sm:$0xff] (!%p1358_p8)  }
  0xdc   : > { %v3532_v38 = vld [vmem:[%s4392_s7 + $0xc0] sm:$0xff] (!%p1358_p8)   ;;  %3291 = vmatpush3.bf16.msra.mxu0 (!%p1358_p8), %v3531_v37  ;;  %v3536_v42 = vld [vmem:[%s4392_s7 + $0xc8] sm:$0xff] (!%p1358_p8)   ;;  %v3540_v46 = vld [vmem:[%s4392_s7 + $0xd0] sm:$0xff] (!%p1358_p8)  }
  0xdd   : > { %v3533_v39 = vld [vmem:[%s4392_s7 + $0x80] sm:$0xff]   ;;  %3312 = vmatprep.subr.bf16.mxu1 %v3532_v38  ;;  %3292 = vmatprep.subr.bf16.mxu0 %v3534_v40  ;;  %v3537_v43 = vld [vmem:[%s4392_s7 + $0x88] sm:$0xff]   ;;  %v3541_v47 = vld [vmem:[%s4392_s7 + $0x90] sm:$0xff]   ;;  %s4631_s14 = smov (!%p1403_p9, %s3722_s14), 3 }
  0xde   : > { %3313 = vmatpush3.bf16.msra.mxu1 %v3533_v39  ;;  %v3542_v48 = vld [vmem:[%s4392_s7 + $0x58] sm:$0xff]   ;;  %v3546_v52 = vld [vmem:[%s4392_s7 + $0x60] sm:$0xff]   ;;  %v3550_v56 = vld [vmem:[%s4392_s7 + $0x68] sm:$0xff]   ;;  %s1405_s30 = scalar_lea.vmem %s4622_s2, %s4631_s14  ;;  %s3124_s4 = sshll.u32 %s4631_s14, 2 }
  0xdf   : > { %3314 = vmatprep.subr.bf16.mxu1 %v3536_v42  ;;  %v3543_v49 = vld [vmem:[%s4392_s7 + $0x18] sm:$0xff]   ;;  %v3547_v53 = vld [vmem:[%s4392_s7 + $0x20] sm:$0xff]   ;;  %v3551_v57 = vld [vmem:[%s4392_s7 + $0x28] sm:$0xff]  }
  0xe0   : > { %3293 = vmatpush3.bf16.msra.mxu0 %v3535_v41  ;;  %v3544_v50 = vld [vmem:[%s4392_s7 + $0xd8] sm:$0xff]   ;;  %v3548_v54 = vld [vmem:[%s4392_s7 + $0xe0] sm:$0xff]   ;;  %v3552_v58 = vld [vmem:[%s4392_s7 + $0xe8] sm:$0xff]  }
  0xe1   : > { %3294 = vmatprep.subr.bf16.mxu0 %v3538_v44  ;;  %v3545_v51 = vld [vmem:[%s4392_s7 + $0x98] sm:$0xff]   ;;  %v3549_v55 = vld [vmem:[%s4392_s7 + $0xa0] sm:$0xff]   ;;  %v3553_v59 = vld [vmem:[%s4392_s7 + $0xa8] sm:$0xff]  }
  0xe2   : > { %3315 = vmatpush3.bf16.msra.mxu1 %v3537_v43  ;;  %v3554_v60 = vld [vmem:[%s4392_s7 + $0x70] sm:$0xff]   ;;  %v3558_v1 = vld [vmem:[%s4392_s7 + $0x78] sm:$0xff]   ;;  %v3564_v8 = vld [vmem:[%s4392_s7 + $0x140] sm:$0xff]   ;;  %v3130_v43 = vcombine.low %v4424_v63, %v4424_v63 }
  0xe3   : > { %3316 = vmatprep.subr.bf16.mxu1 %v3540_v46  ;;  %v3555_v61 = vld [vmem:[%s4392_s7 + $0x30] sm:$0xff]   ;;  %v3559_v3 = vld [vmem:[%s4392_s7 + $0x38] sm:$0xff]   ;;  %v3567_v10 = vld [vmem:[%s4392_s7 + $0x100] sm:$0xff]  }
  0xe4   : > { %3295 = vmatpush3.bf16.msra.mxu0 %v3539_v45  ;;  %v3556_v62 = vld [vmem:[%s4392_s7 + $0xf0] sm:$0xff]   ;;  %v3560_v4 = vld [vmem:[%s4392_s7 + $0xf8] sm:$0xff]   ;;  %v3568_v12 = vld [vmem:[%s4392_s7 + $0x1c0] sm:$0xff]  }
  0xe5   : > { %3296 = vmatprep.subr.bf16.mxu0 %v3542_v48  ;;  %v3557_v0 = vld [vmem:[%s4392_s7 + $0xb0] sm:$0xff]   ;;  %v3563_v6 = vld [vmem:[%s4392_s7 + $0xb8] sm:$0xff]   ;;  %v3569_v13 = vld [vmem:[%s4392_s7 + $0x180] sm:$0xff]  }
  0xe6   : > { %3317 = vmatpush3.bf16.msra.mxu1 %v3541_v47  ;;  %v3570_v14 = vld [vmem:[%s4392_s7 + $0x148] sm:$0xff]   ;;  %v3574_v18 = vld [vmem:[%s4392_s7 + $0x150] sm:$0xff]   ;;  %v3578_v22 = vld [vmem:[%s4392_s7 + $0x158] sm:$0xff]   ;;  %v3132_v47 = vcombine.low %v4431_v2, %v4431_v2 }
  0xe7   : > { %3318 = vmatprep.subr.bf16.mxu1 %v3544_v50  ;;  %v3571_v15 = vld [vmem:[%s4392_s7 + $0x108] sm:$0xff]   ;;  %v3575_v19 = vld [vmem:[%s4392_s7 + $0x110] sm:$0xff]   ;;  %v3579_v23 = vld [vmem:[%s4392_s7 + $0x118] sm:$0xff]  }
  0xe8   : > { %3297 = vmatpush3.bf16.msra.mxu0 %v3543_v49  ;;  %v3572_v16 = vld [vmem:[%s4392_s7 + $0x1c8] sm:$0xff]   ;;  %v3576_v20 = vld [vmem:[%s4392_s7 + $0x1d0] sm:$0xff]   ;;  %v3580_v24 = vld [vmem:[%s4392_s7 + $0x1d8] sm:$0xff]  }
  0xe9   : > { %3298 = vmatprep.subr.bf16.mxu0 %v3546_v52  ;;  %v3573_v17 = vld [vmem:[%s4392_s7 + $0x188] sm:$0xff]   ;;  %v3577_v21 = vld [vmem:[%s4392_s7 + $0x190] sm:$0xff]   ;;  %v3581_v25 = vld [vmem:[%s4392_s7 + $0x198] sm:$0xff]  }
  0xea   : > { %3319 = vmatpush3.bf16.msra.mxu1 %v3545_v51  ;;  %v3582_v26 = vld [vmem:[%s4392_s7 + $0x160] sm:$0xff]   ;;  %v3586_v30 = vld [vmem:[%s4392_s7 + $0x168] sm:$0xff]   ;;  %v3590_v34 = vld [vmem:[%s4392_s7 + $0x170] sm:$0xff]  }
  0xeb   : > { %3320 = vmatprep.subr.bf16.mxu1 %v3548_v54  ;;  %v3583_v27 = vld [vmem:[%s4392_s7 + $0x120] sm:$0xff]   ;;  %v3587_v31 = vld [vmem:[%s4392_s7 + $0x128] sm:$0xff]   ;;  %v3591_v35 = vld [vmem:[%s4392_s7 + $0x130] sm:$0xff]  }
  0xec   : > { %3299 = vmatpush3.bf16.msra.mxu0 %v3547_v53  ;;  %v3584_v28 = vld [vmem:[%s4392_s7 + $0x1e0] sm:$0xff]   ;;  %v3588_v32 = vld [vmem:[%s4392_s7 + $0x1e8] sm:$0xff]   ;;  %v3592_v36 = vld [vmem:[%s4392_s7 + $0x1f0] sm:$0xff]  }
  0xed   : > { %3300 = vmatprep.subr.bf16.mxu0 %v3550_v56  ;;  %v3585_v29 = vld [vmem:[%s4392_s7 + $0x1a0] sm:$0xff]   ;;  %v3589_v33 = vld [vmem:[%s4392_s7 + $0x1a8] sm:$0xff]   ;;  %v3593_v38 = vld [vmem:[%s4392_s7 + $0x1b0] sm:$0xff]  }
  0xee   : > { %3321 = vmatpush3.bf16.msra.mxu1 %v3549_v55  ;;  %v4474_v37 = vld [vmem:[%s4620_s0 + $0x20] sm:$0xff]  ;;  %v3594_v39 = vld [vmem:[%s4392_s7 + $0x178] sm:$0xff]   ;;  %v4481_v40 = vld [vmem:[%s4620_s0 + $0x28] sm:$0xff] }
  0xef   : > { %3322 = vmatprep.subr.bf16.mxu1 %v3552_v58  ;;  %v3595_v41 = vld [vmem:[%s4392_s7 + $0x138] sm:$0xff]   ;;  %v3135_v45 = vcombine.high %v4474_v37, %v4474_v37  ;;  %v3600_v46 = vld [vmem:[%s4392_s7 + $0x240] sm:$0xff]   ;;  %v3137_v49 = vcombine.high %v4481_v40, %v4481_v40  ;;  %v3606_v52 = vld [vmem:[%s4392_s7 + $0x248] sm:$0xff]  }
  0xf0   : > { %3301 = vmatpush3.bf16.msra.mxu0 %v3551_v57  ;;  %v3596_v42 = vld [vmem:[%s4392_s7 + $0x1f8] sm:$0xff]   ;;  %v3603_v48 = vld [vmem:[%s4392_s7 + $0x200] sm:$0xff]   ;;  %v3607_v53 = vld [vmem:[%s4392_s7 + $0x208] sm:$0xff]  }
  0xf1   : > { %3302 = vmatprep.subr.bf16.mxu0 %v3554_v60  ;;  %v3599_v44 = vld [vmem:[%s4392_s7 + $0x1b8] sm:$0xff]   ;;  %v3604_v50 = vld [vmem:[%s4392_s7 + $0x2c0] sm:$0xff]   ;;  %v3608_v54 = vld [vmem:[%s4392_s7 + $0x2c8] sm:$0xff]  }
  0xf2   : > { %3323 = vmatpush3.bf16.msra.mxu1 %v3553_v59  ;;  %v3605_v51 = vld [vmem:[%s4392_s7 + $0x280] sm:$0xff]   ;;  %v3609_v55 = vld [vmem:[%s4392_s7 + $0x288] sm:$0xff]   ;;  %v3610_v56 = vld [vmem:[%s4392_s7 + $0x250] sm:$0xff]  }
  0xf3   : > { %3324 = vmatprep.subr.bf16.mxu1 %v3556_v62  ;;  %v3611_v57 = vld [vmem:[%s4392_s7 + $0x210] sm:$0xff]   ;;  %v3614_v60 = vld [vmem:[%s4392_s7 + $0x258] sm:$0xff]   ;;  %v3620_v2 = vld [vmem:[%s4392_s7 + $0x2e0] sm:$0xff]  }
  0xf4   : > { %3303 = vmatpush3.bf16.msra.mxu0 %v3555_v61  ;;  %v3612_v58 = vld [vmem:[%s4392_s7 + $0x2d0] sm:$0xff]   ;;  %v3615_v61 = vld [vmem:[%s4392_s7 + $0x218] sm:$0xff]  }
  0xf5   : > { %3304 = vmatprep.subr.bf16.mxu0 %v3558_v1  ;;  %v3613_v59 = vld [vmem:[%s4392_s7 + $0x290] sm:$0xff]   ;;  %v3616_v62 = vld [vmem:[%s4392_s7 + $0x2d8] sm:$0xff]   ;;  %v3619_v1 = vld [vmem:[%s4392_s7 + $0x220] sm:$0xff]  }
  0xf6   : > { %3325 = vmatpush3.bf16.msra.mxu1 %v3557_v0  ;;  %v3617_v63 = vld [vmem:[%s4392_s7 + $0x298] sm:$0xff]   ;;  %v3618_v0 = vld [vmem:[%s4392_s7 + $0x260] sm:$0xff]  }
  0xf7   : > { %3326 = vmatprep.subr.bf16.mxu1 %v3560_v4  ;;  %v3622_v4 = vld [vmem:[%s4392_s7 + $0x268] sm:$0xff]  }
  0xf8   : > { %3305 = vmatpush3.bf16.msra.mxu0 %v3559_v3  ;;  %v3621_v3 = vld [vmem:[%s4392_s7 + $0x2a0] sm:$0xff]  }
  0xf9   : > { %3334 = vmatprep.subr.bf16.mxu0 %v3564_v8  ;;  %v3626_v8 = vld [vmem:[%s4392_s7 + $0x270] sm:$0xff]  }
  0xfa   : > { %3327 = vmatpush3.bf16.msra.mxu1 %v3563_v6  ;;  %v3624_v6 = vld [vmem:[%s4392_s7 + $0x2e8] sm:$0xff]  }
  0xfb   : > { %2679 = vmatmul.mubr.bf16.vlgmr.msra.gmra.mrb[0].mxu0 %v3126_v5  ;;  %3356 = vmatprep.subr.bf16.mxu1 %v3568_v12  ;;  %v3623_v5 = vld [vmem:[%s4392_s7 + $0x228] sm:$0xff]   ;;  %v3629_v12 = vld [vmem:[%s4392_s7 + $0x2b0] sm:$0xff]  }
  0xfc   : > { %3335 = vmatpush3.bf16.msra.mxu0 %v3567_v10  ;;  %2758 = vmatprep.mubr.bf16.mxu0 %v3131_v7  ;;  %v3625_v7 = vld [vmem:[%s4392_s7 + $0x2a8] sm:$0xff]   ;;  %v3628_v10 = vld [vmem:[%s4392_s7 + $0x2f0] sm:$0xff]  }
  0xfd   : > { %2719 = vmatmul.mubr.bf16.vlgmr.msra.gmra.mrb[0].mxu1 %v3128_v9  ;;  %3336 = vmatprep.subr.bf16.mxu0 %v3570_v14  ;;  %v3627_v9 = vld [vmem:[%s4392_s7 + $0x230] sm:$0xff]   ;;  %v3631_v14 = vld [vmem:[%s4392_s7 + $0x238] sm:$0xff]  }
  0xfe   : > { %3357 = vmatpush3.bf16.msra.mxu1 %v3569_v13  ;;  %2798 = vmatprep.mubr.bf16.mxu1 %v3133_v11  ;;  %v4524_v11 = vld [vmem:[%s4620_s0 + $0x30] sm:$0xff]  ;;  %v3630_v13 = vld [vmem:[%s4392_s7 + $0x278] sm:$0xff]  }
  0xff   : > { %3358 = vmatprep.subr.bf16.mxu1 %v3572_v16  ;;  %v3134_v16 = vcombine.low %v4474_v37, %v4474_v37  ;;  %v3655_v37 = vld [vmem:[%s4392_s7 + $0x320] sm:$0xff]  }
 0x100   : > { %3337 = vmatpush3.bf16.msra.mxu0 %v3571_v15  ;;  %v3632_v15 = vld [vmem:[%s4392_s7 + $0x2f8] sm:$0xff]  }
 0x101   : > { %3338 = vmatprep.subr.bf16.mxu0 %v3574_v18  ;;  %v3139_v18 = vcombine.high %v4524_v11, %v4524_v11 }
 0x102   : > { %3359 = vmatpush3.bf16.msra.mxu1 %v3573_v17  ;;  %v3635_v17 = vld [vmem:[%s4392_s7 + $0x2b8] sm:$0xff]  }
 0x103   : > { %3360 = vmatprep.subr.bf16.mxu1 %v3576_v20  ;;  %v3136_v20 = vcombine.low %v4481_v40, %v4481_v40  ;;  %v3658_v40 = vld [vmem:[%s4392_s7 + $0x368] sm:$0xff]  }
 0x104   : > { %3339 = vmatpush3.bf16.msra.mxu0 %v3575_v19  ;;  %v3636_v19 = vld [vmem:[%s4392_s7 + $0x340] sm:$0xff]  }
 0x105   : > { %3340 = vmatprep.subr.bf16.mxu0 %v3578_v22  ;;  %v3640_v22 = vld [vmem:[%s4392_s7 + $0x3c0] sm:$0xff]  }
 0x106   : > { %3361 = vmatpush3.bf16.msra.mxu1 %v3577_v21  ;;  %v3639_v21 = vld [vmem:[%s4392_s7 + $0x300] sm:$0xff]  }
 0x107   : > { %3362 = vmatprep.subr.bf16.mxu1 %v3580_v24  ;;  %v3642_v24 = vld [vmem:[%s4392_s7 + $0x348] sm:$0xff]  }
 0x108   : > { %3341 = vmatpush3.bf16.msra.mxu0 %v3579_v23  ;;  %v3641_v23 = vld [vmem:[%s4392_s7 + $0x380] sm:$0xff]  }
 0x109   : > { %3342 = vmatprep.subr.bf16.mxu0 %v3582_v26  ;;  %v3644_v26 = vld [vmem:[%s4392_s7 + $0x3c8] sm:$0xff]  }
 0x10a   : > { %3363 = vmatpush3.bf16.msra.mxu1 %v3581_v25  ;;  %v3643_v25 = vld [vmem:[%s4392_s7 + $0x308] sm:$0xff]  }
 0x10b   : > { %3364 = vmatprep.subr.bf16.mxu1 %v3584_v28  ;;  %v3646_v28 = vld [vmem:[%s4392_s7 + $0x350] sm:$0xff]  }
 0x10c   : > { %3343 = vmatpush3.bf16.msra.mxu0 %v3583_v27  ;;  %v3645_v27 = vld [vmem:[%s4392_s7 + $0x388] sm:$0xff]  }
 0x10d   : > { %3344 = vmatprep.subr.bf16.mxu0 %v3586_v30  ;;  %v3648_v30 = vld [vmem:[%s4392_s7 + $0x3d0] sm:$0xff]  }
 0x10e   : > { %3365 = vmatpush3.bf16.msra.mxu1 %v3585_v29  ;;  %v3647_v29 = vld [vmem:[%s4392_s7 + $0x310] sm:$0xff]  }
 0x10f   : > { %3366 = vmatprep.subr.bf16.mxu1 %v3588_v32  ;;  %v3650_v32 = vld [vmem:[%s4392_s7 + $0x358] sm:$0xff]  }
 0x110   : > { %3345 = vmatpush3.bf16.msra.mxu0 %v3587_v31  ;;  %v3649_v31 = vld [vmem:[%s4392_s7 + $0x390] sm:$0xff]  }
 0x111   : > { %3346 = vmatprep.subr.bf16.mxu0 %v3590_v34  ;;  %v3652_v34 = vld [vmem:[%s4392_s7 + $0x3d8] sm:$0xff]  }
 0x112   : > { %3367 = vmatpush3.bf16.msra.mxu1 %v3589_v33  ;;  %v3651_v33 = vld [vmem:[%s4392_s7 + $0x318] sm:$0xff]  }
 0x113   : > { %3368 = vmatprep.subr.bf16.mxu1 %v3592_v36  ;;  %v3654_v36 = vld [vmem:[%s4392_s7 + $0x360] sm:$0xff]  }
 0x114   : > { %3347 = vmatpush3.bf16.msra.mxu0 %v3591_v35  ;;  %v3653_v35 = vld [vmem:[%s4392_s7 + $0x398] sm:$0xff]  }
 0x115   : > { %3348 = vmatprep.subr.bf16.mxu0 %v3594_v39  ;;  %v3657_v39 = vld [vmem:[%s4392_s7 + $0x3a0] sm:$0xff]  }
 0x116   : > { %3369 = vmatpush3.bf16.msra.mxu1 %v3593_v38  ;;  %v3656_v38 = vld [vmem:[%s4392_s7 + $0x3e0] sm:$0xff]  }
 0x117   : > { %3370 = vmatprep.subr.bf16.mxu1 %v3596_v42  ;;  %v3660_v42 = vld [vmem:[%s4392_s7 + $0x3e8] sm:$0xff]  }
 0x118   : > { %3349 = vmatpush3.bf16.msra.mxu0 %v3595_v41  ;;  %v3659_v41 = vld [vmem:[%s4392_s7 + $0x328] sm:$0xff]  }
 0x119   : > { %3378 = vmatprep.subr.bf16.mxu0 %v3600_v46  ;;  %v3664_v46 = vld [vmem:[%s4392_s7 + $0x3f0] sm:$0xff]  }
 0x11a   : > { %3371 = vmatpush3.bf16.msra.mxu1 %v3599_v44  ;;  %v3662_v44 = vld [vmem:[%s4392_s7 + $0x370] sm:$0xff]  }
 0x11b   : > { %2759 = vmatmul.mubr.bf16.vlgmr.msra.gmra.mrb[4].mxu0 %v3130_v43  ;;  %3400 = vmatprep.subr.bf16.mxu1 %v3604_v50  ;;  %v3661_v43 = vld [vmem:[%s4392_s7 + $0x3a8] sm:$0xff]   ;;  %v3668_v50 = vld [vmem:[%s4392_s7 + $0x3f8] sm:$0xff]  }
 0x11c   : > { %3379 = vmatpush3.bf16.msra.mxu0 %v3603_v48  ;;  %2838 = vmatprep.mubr.bf16.mxu0 %v3135_v45  ;;  %v3663_v45 = vld [vmem:[%s4392_s7 + $0x330] sm:$0xff]   ;;  %v3666_v48 = vld [vmem:[%s4392_s7 + $0x378] sm:$0xff]  }
 0x11d   : > { %2799 = vmatmul.mubr.bf16.vlgmr.msra.gmra.mrb[4].mxu1 %v3132_v47  ;;  %3380 = vmatprep.subr.bf16.mxu0 %v3606_v52  ;;  %v3665_v47 = vld [vmem:[%s4392_s7 + $0x3b0] sm:$0xff]   ;;  %v3671_v52 = vld [vmem:[%s4392_s7 + $0x3b8] sm:$0xff]  }
 0x11e   : > { %3401 = vmatpush3.bf16.msra.mxu1 %v3605_v51  ;;  %2878 = vmatprep.mubr.bf16.mxu1 %v3137_v49  ;;  %v3667_v49 = vld [vmem:[%s4392_s7 + $0x338] sm:$0xff]   ;;  %v3138_v51 = vcombine.low %v4524_v11, %v4524_v11 }
 0x11f   : > { %3402 = vmatprep.subr.bf16.mxu1 %v3608_v54  ;;  %v1710_v54 = vld [vmem:[%s4620_s0 + $0x38] sm:$0xff] }
 0x120   : > { %3381 = vmatpush3.bf16.msra.mxu0 %v3607_v53  ;;  %v3672_v53 = vld [vmem:[%s4392_s7 + $0x440] sm:$0xff]  }
 0x121   : > { %3382 = vmatprep.subr.bf16.mxu0 %v3610_v56  ;;  %v3141_v56 = vcombine.high %v1710_v54, %v1710_v54 }
 0x122   : > { %3403 = vmatpush3.bf16.msra.mxu1 %v3609_v55  ;;  %v3140_v55 = vcombine.low %v1710_v54, %v1710_v54 }
 0x123   : > { %3404 = vmatprep.subr.bf16.mxu1 %v3612_v58  ;;  %v3676_v58 = vld [vmem:[%s4392_s7 + $0x448] sm:$0xff]  }
 0x124   : > { %3383 = vmatpush3.bf16.msra.mxu0 %v3611_v57  ;;  %v3675_v57 = vld [vmem:[%s4392_s7 + $0x400] sm:$0xff]  }
 0x125   : > { %3384 = vmatprep.subr.bf16.mxu0 %v3614_v60  ;;  %v3678_v60 = vld [vmem:[%s4392_s7 + $0x450] sm:$0xff]  }
 0x126   : > { %3405 = vmatpush3.bf16.msra.mxu1 %v3613_v59  ;;  %v3677_v59 = vld [vmem:[%s4392_s7 + $0x408] sm:$0xff]  }
 0x127   : > { %3406 = vmatprep.subr.bf16.mxu1 %v3616_v62  ;;  %v3680_v62 = vld [vmem:[%s4392_s7 + $0x458] sm:$0xff]  }
 0x128   : > { %3385 = vmatpush3.bf16.msra.mxu0 %v3615_v61  ;;  %v3679_v61 = vld [vmem:[%s4392_s7 + $0x410] sm:$0xff]  }
 0x129   : > { %3386 = vmatprep.subr.bf16.mxu0 %v3618_v0  ;;  %v3682_v0 = vld [vmem:[%s4392_s7 + $0x460] sm:$0xff]  }
 0x12a   : > { %3407 = vmatpush3.bf16.msra.mxu1 %v3617_v63  ;;  %v3681_v63 = vld [vmem:[%s4392_s7 + $0x418] sm:$0xff]  }
 0x12b   : > { %3408 = vmatprep.subr.bf16.mxu1 %v3620_v2  ;;  %v1711_v2 = vld [vmem:[%s4620_s0 + $0x40] sm:$0xff] }
 0x12c   : > { %3387 = vmatpush3.bf16.msra.mxu0 %v3619_v1  ;;  %v3683_v1 = vld [vmem:[%s4392_s7 + $0x420] sm:$0xff]  }
 0x12d   : > { %3388 = vmatprep.subr.bf16.mxu0 %v3622_v4  ;;  %v3143_v4 = vcombine.high %v1711_v2, %v1711_v2 }
 0x12e   : > { %3409 = vmatpush3.bf16.msra.mxu1 %v3621_v3  ;;  %v3684_v3 = vld [vmem:[%s4392_s7 + $0x468] sm:$0xff]  }
 0x12f   : > { %3410 = vmatprep.subr.bf16.mxu1 %v3624_v6  ;;  %v3686_v6 = vld [vmem:[%s4392_s7 + $0x470] sm:$0xff]  }
 0x130   : > { %3389 = vmatpush3.bf16.msra.mxu0 %v3623_v5  ;;  %v3685_v5 = vld [vmem:[%s4392_s7 + $0x428] sm:$0xff]  }
 0x131   : > { %3390 = vmatprep.subr.bf16.mxu0 %v3626_v8  ;;  %v3688_v8 = vld [vmem:[%s4392_s7 + $0x478] sm:$0xff]  }
 0x132   : > { %3411 = vmatpush3.bf16.msra.mxu1 %v3625_v7  ;;  %v3687_v7 = vld [vmem:[%s4392_s7 + $0x430] sm:$0xff]  }
 0x133   : > { %3412 = vmatprep.subr.bf16.mxu1 %v3628_v10  ;;  %v3142_v10 = vcombine.low %v1711_v2, %v1711_v2 }
 0x134   : > { %3391 = vmatpush3.bf16.msra.mxu0 %v3627_v9  ;;  %v3689_v9 = vld [vmem:[%s4392_s7 + $0x438] sm:$0xff]   ;;  %s1413_s7 = scalar_lea.vmem %s4623_s3, %s3124_s4 }
 0x135   : > { %3392 = vmatprep.subr.bf16.mxu0 %v3630_v13 }
 0x136   : > { %3413 = vmatpush3.bf16.msra.mxu1 %v3629_v12  ;;  %v3125_v12 = vld [vmem:[%s1405_s30] ss:$0 sm:$0xff] }
 0x137   : > { %3414 = vmatprep.subr.bf16.mxu1 %v3632_v15 }
 0x138   : > { %3393 = vmatpush3.bf16.msra.mxu0 %v3631_v14 }
 0x139   : > { %3422 = vmatprep.subr.bf16.mxu0 %v3636_v19 }
 0x13a   : > { %3415 = vmatpush3.bf16.msra.mxu1 %v3635_v17 }
 0x13b   : > { %2839 = vmatmul.mubr.bf16.vlgmr.msra.gmra.mrb[8].mxu0 %v3134_v16  ;;  %3444 = vmatprep.subr.bf16.mxu1 %v3640_v22 }
 0x13c   : > { %3423 = vmatpush3.bf16.msra.mxu0 %v3639_v21  ;;  %2918 = vmatprep.mubr.bf16.mxu0 %v3139_v18 }
 0x13d   : > { %2879 = vmatmul.mubr.bf16.vlgmr.msra.gmra.mrb[8].mxu1 %v3136_v20  ;;  %3424 = vmatprep.subr.bf16.mxu0 %v3642_v24 }
 0x13e   : > { %3445 = vmatpush3.bf16.msra.mxu1 %v3641_v23  ;;  %2958 = vmatprep.mubr.bf16.mxu1 %v3141_v56 }
 0x13f   : > { %3446 = vmatprep.subr.bf16.mxu1 %v3644_v26 }
 0x140   : > { %3425 = vmatpush3.bf16.msra.mxu0 %v3643_v25 }
 0x141   : > { %3426 = vmatprep.subr.bf16.mxu0 %v3646_v28 }
 0x142   : > { %3447 = vmatpush3.bf16.msra.mxu1 %v3645_v27 }
 0x143   : > { %3448 = vmatprep.subr.bf16.mxu1 %v3648_v30 }
 0x144   : > { %3427 = vmatpush3.bf16.msra.mxu0 %v3647_v29 }
 0x145   : > { %3428 = vmatprep.subr.bf16.mxu0 %v3650_v32 }
 0x146   : > { %3449 = vmatpush3.bf16.msra.mxu1 %v3649_v31 }
 0x147   : > { %3450 = vmatprep.subr.bf16.mxu1 %v3652_v34 }
 0x148   : > { %3429 = vmatpush3.bf16.msra.mxu0 %v3651_v33 }
 0x149   : > { %3430 = vmatprep.subr.bf16.mxu0 %v3654_v36 }
 0x14a   : > { %3451 = vmatpush3.bf16.msra.mxu1 %v3653_v35 }
 0x14b   : > { %3452 = vmatprep.subr.bf16.mxu1 %v3656_v38 }
 0x14c   : > { %3431 = vmatpush3.bf16.msra.mxu0 %v3655_v37 }
 0x14d   : > { %3432 = vmatprep.subr.bf16.mxu0 %v3658_v40 }
 0x14e   : > { %3453 = vmatpush3.bf16.msra.mxu1 %v3657_v39 }
 0x14f   : > { %3454 = vmatprep.subr.bf16.mxu1 %v3660_v42 }
 0x150   : > { %3433 = vmatpush3.bf16.msra.mxu0 %v3659_v41 }
 0x151   : > { %3434 = vmatprep.subr.bf16.mxu0 %v3662_v44 }
 0x152   : > { %3455 = vmatpush3.bf16.msra.mxu1 %v3661_v43 }
 0x153   : > { %3456 = vmatprep.subr.bf16.mxu1 %v3664_v46 }
 0x154   : > { %3435 = vmatpush3.bf16.msra.mxu0 %v3663_v45 }
 0x155   : > { %3436 = vmatprep.subr.bf16.mxu0 %v3666_v48 }
 0x156   : > { %3457 = vmatpush3.bf16.msra.mxu1 %v3665_v47 }
 0x157   : > { %3458 = vmatprep.subr.bf16.mxu1 %v3668_v50 }
 0x158   : > { %3437 = vmatpush3.bf16.msra.mxu0 %v3667_v49 }
 0x159   : > { %3466 = vmatprep.subr.bf16.mxu0 %v3672_v53 }
 0x15a   : > { %3459 = vmatpush3.bf16.msra.mxu1 %v3671_v52 }
 0x15b   : > { %2919 = vmatmul.mubr.bf16.vlgmr.msra.gmra.mrb[12].mxu0 %v3138_v51 }
 0x15c   : > { %3467 = vmatpush3.bf16.msra.mxu0 %v3675_v57  ;;  %2998 = vmatprep.mubr.bf16.mxu0 %v3143_v4 }
 0x15d   : > { %2959 = vmatmul.mubr.bf16.vlgmr.msra.gmra.mrb[12].mxu1 %v3140_v55  ;;  %3468 = vmatprep.subr.bf16.mxu0 %v3676_v58 }
 0x160   : > { %3469 = vmatpush3.bf16.msra.mxu0 %v3677_v59 }
 0x161   : > { %3470 = vmatprep.subr.bf16.mxu0 %v3678_v60 }
 0x164   : > { %3471 = vmatpush3.bf16.msra.mxu0 %v3679_v61 }
 0x165   : > { %3472 = vmatprep.subr.bf16.mxu0 %v3680_v62 }
 0x168   : > { %3473 = vmatpush3.bf16.msra.mxu0 %v3681_v63 }
 0x169   : > { %3474 = vmatprep.subr.bf16.mxu0 %v3682_v0 }
 0x16c   : > { %3475 = vmatpush3.bf16.msra.mxu0 %v3683_v1 }
 0x16d   : > { %3476 = vmatprep.subr.bf16.mxu0 %v3684_v3 }
 0x170   : > { %3477 = vmatpush3.bf16.msra.mxu0 %v3685_v5 }
 0x171   : > { %3478 = vmatprep.subr.bf16.mxu0 %v3686_v6 }
 0x174   : > { %3479 = vmatpush3.bf16.msra.mxu0 %v3687_v7 }
 0x175   : > { %3480 = vmatprep.subr.bf16.mxu0 %v3688_v8 }
 0x178   : > { %3481 = vmatpush3.bf16.msra.mxu0 %v3689_v9 }
 0x17b   : > { %2999 = vmatmul.mubr.bf16.vlgmr.msra.gmra.mrb[16].mxu0 %v3142_v10 }
 0x1ce   : > { %v3306_v11 = vpop.f32.mrb[0].mxu0 }
 0x1cf   : > { %v3307_v13 = vpop.f32.mrb[1].mxu0 }
 0x1d0   : > { %v3308_v14 = vadd.f32 %v3307_v13, %v3306_v11  ;;  %v3309_v15 = vpop.f32.mrb[2].mxu0  ;;  %v3328_v16 = vpop.f32.mrb[0].mxu1 }
 0x1d1   : > { %v3310_v17 = vpop.f32.mrb[3].mxu0  ;;  %v3329_v18 = vpop.f32.mrb[1].mxu1 }
 0x1d2   : > { %v2681_v19 = vadd.f32 %v3308_v14, %v3125_v12  ;;  %v3330_v20 = vadd.f32 %v3329_v18, %v3328_v16  ;;  %v3331_v21 = vpop.f32.mrb[2].mxu1 }
 0x1d3   : > { %v3332_v22 = vpop.f32.mrb[3].mxu1 }
 0x1d4   : > { %v2721_v23 = vadd.f32 %v3330_v20, %v2681_v19 }
 0x1ee   : > { %v3350_v24 = vpop.f32.mrb[4].mxu0 }
 0x1ef   : > { %v3351_v25 = vpop.f32.mrb[5].mxu0 }
 0x1f0   : > { %v3352_v26 = vadd.f32 %v3351_v25, %v3350_v24  ;;  %v3353_v27 = vpop.f32.mrb[6].mxu0  ;;  %v3372_v28 = vpop.f32.mrb[4].mxu1 }
 0x1f1   : > { %v3354_v29 = vpop.f32.mrb[7].mxu0  ;;  %v3373_v30 = vpop.f32.mrb[5].mxu1 }
 0x1f2   : > { %v2761_v31 = vadd.f32 %v3352_v26, %v2721_v23  ;;  %v3374_v32 = vadd.f32 %v3373_v30, %v3372_v28  ;;  %v3375_v33 = vpop.f32.mrb[6].mxu1 }
 0x1f3   : > { %v3376_v34 = vpop.f32.mrb[7].mxu1 }
 0x1f4   : > { %v2801_v35 = vadd.f32 %v3374_v32, %v2761_v31 }
 0x20e   : > { %v3394_v36 = vpop.f32.mrb[8].mxu0 }
 0x20f   : > { %v3395_v37 = vpop.f32.mrb[9].mxu0 }
 0x210   : > { %v3396_v38 = vadd.f32 %v3395_v37, %v3394_v36  ;;  %v3397_v39 = vpop.f32.mrb[10].mxu0  ;;  %v3416_v40 = vpop.f32.mrb[8].mxu1 }
 0x211   : > { %v3398_v41 = vpop.f32.mrb[11].mxu0  ;;  %v3417_v42 = vpop.f32.mrb[9].mxu1 }
 0x212   : > { %v2841_v43 = vadd.f32 %v3396_v38, %v2801_v35  ;;  %v3418_v44 = vadd.f32 %v3417_v42, %v3416_v40  ;;  %v3419_v45 = vpop.f32.mrb[10].mxu1 }
 0x213   : > { %v3420_v46 = vpop.f32.mrb[11].mxu1 }
 0x214   : > { %v2881_v47 = vadd.f32 %v3418_v44, %v2841_v43 }
 0x22e   : > { %v3438_v48 = vpop.f32.mrb[12].mxu0 }
 0x22f   : > { %v3439_v49 = vpop.f32.mrb[13].mxu0 }
 0x230   : > { %v3440_v50 = vadd.f32 %v3439_v49, %v3438_v48  ;;  %v3441_v51 = vpop.f32.mrb[14].mxu0  ;;  %v3460_v52 = vpop.f32.mrb[12].mxu1 }
 0x231   : > { %v3442_v53 = vpop.f32.mrb[15].mxu0  ;;  %v3461_v55 = vpop.f32.mrb[13].mxu1 }
 0x232   : > { %v2921_v54 = vadd.f32 %v3440_v50, %v2881_v47  ;;  %v3462_v56 = vadd.f32 %v3461_v55, %v3460_v52  ;;  %v3463_v57 = vpop.f32.mrb[14].mxu1 }
 0x233   : > { %v3464_v58 = vpop.f32.mrb[15].mxu1 }
 0x234   : > { %v2961_v59 = vadd.f32 %v3462_v56, %v2921_v54 }
 0x24e   : > { %v3482_v60 = vpop.f32.mrb[16].mxu0 }
 0x24f   : > { %v3483_v61 = vpop.f32.mrb[17].mxu0 }
 0x250   : > { %v3484_v62 = vadd.f32 %v3483_v61, %v3482_v60  ;;  %v3485_v63 = vpop.f32.mrb[18].mxu0 }
 0x251   : > { %v3486_v0 = vpop.f32.mrb[19].mxu0 }
 0x252   : > { %v3001_v1 = vadd.f32 %v3484_v62, %v2961_v59 }
 0x254   : > { %v3006_v2 = vmax.f32 %v3001_v1, 0.0 }
 0x256   : > { %v3007_v3 = vpack.c.bf16 %v3006_v2, %v3006_v2 }
 0x258   : > { %3008 = vst [vmem:[%s1413_s7] sm:$0xf] %v3007_v3 }
 0x259 PF: > { %s13_s16 = sadd.s32 1, %s3730_s16   ;;  %s4624_s12 = smov %s3718_s13 }
 0x25a   : > { %p10_p10 = scmp.ge.s32.totalorder %s13_s16, 6   ;;  %s4625_s13 = smov %s3787_s20 }
 0x25b   : > { %s4626_s14 = smov %s3726_s15  ;;  %s4627_s15 = smov %s4629_s17 }
 0x25c   :  { %12 = sbr.rel (!%p10_p10) target bundleno = 3 (0x3), region = 114 }

</bundles_post_ra>
